<compile_context>
chip_gen: v5e
topology: v5e:2x2
jax: 0.10.0
libtpu: 0.0.40
codegen_flags: <defaults>
</compile_context>

<pallas_src>
import functools

import jax
import jax.numpy as jnp
from jax.experimental import pallas as pl
from jax.experimental.pallas import tpu as pltpu

LATENT_S = 53     # forced by Linear(53, 60) at the head of the decoder
L_IN = 67         # forced by Flatten -> Linear(552, 120):  8 * (L_IN + 2) == 552


# --------------------------------------------------------------------------
# Single fused Pallas kernel
# --------------------------------------------------------------------------
def _vae_fused_kernel(*refs, N):
    """Whole VAEconv.forward in one kernel invocation.

    refs = (x_ref, eps_ref, <param refs in fixed order>, o_ref)
    """
    x_ref, eps_ref = refs[0], refs[1]
    o_ref = refs[-1]
    params = iter(refs[2:-1])
    nxt = lambda: next(params)

    def conv(xs, w_ref, b_ref, *, K, pad, relu):
        # xs: list of N per-batch activations (C_in, L) living in vregs/VMEM.
        # w_ref: (C_out, K*C_in) im2col-ordered weights; b_ref: (C_out, 1).
        C_in, L = xs[0].shape
        L_out = L + 2 * pad - K + 1
        cols = []
        for xn in xs:
            if pad > 0:
                z = jnp.zeros((C_in, pad), dtype=xn.dtype)
                xp = jnp.concatenate([z, xn, z], axis=1)       # in-kernel padding
            else:
                xp = xn
            # im2col: K shifted windows stacked along the contraction axis.
            cols.append(jnp.concatenate([xp[:, k:k + L_out] for k in range(K)],
                                        axis=0))               # (K*C_in, L_out)
        # Fold batch into the lane axis -> single MXU matmul per conv layer.
        X = jnp.concatenate(cols, axis=1) if len(cols) > 1 else cols[0]
        y = jnp.dot(w_ref[...], X, preferred_element_type=jnp.float32) + b_ref[...]
        if relu:
            y = jnp.maximum(y, 0.0)
        return [y[:, n * L_out:(n + 1) * L_out] for n in range(len(xs))]

    def linear(h, w_ref, b_ref, *, relu):
        y = jnp.dot(h, w_ref[...], preferred_element_type=jnp.float32) + b_ref[...]
        if relu:
            y = jnp.maximum(y, 0.0)
        return y

    # ---------------- encoder ----------------
    x = x_ref[...]                                # (N, 67) == x0.view(-1, 1, 67)
    hs = [x[n:n + 1, :] for n in range(N)]        # N x (C_in=1, L=67)
    hs = conv(hs, nxt(), nxt(), K=3, pad=1, relu=True)    # N x (16, 67)
    hs = conv(hs, nxt(), nxt(), K=3, pad=1, relu=True)    # N x (8, 67)
    hs = conv(hs, nxt(), nxt(), K=2, pad=1, relu=True)    # N x (16, 68)
    hs = conv(hs, nxt(), nxt(), K=2, pad=1, relu=True)    # N x (8, 69)

    # Flatten(start_dim=1): channel-major concat along lanes -> (N, 552).
    rows = []
    for hn in hs:
        C = hn.shape[0]
        rows.append(jnp.concatenate([hn[c:c + 1, :] for c in range(C)], axis=1))
    h = jnp.concatenate(rows, axis=0)             # (N, 552)

    h = linear(h, nxt(), nxt(), relu=True)        # (N, 120)
    h = linear(h, nxt(), nxt(), relu=True)        # (N, 60)

    # Last encoder Linear pre-split into mu / log_sigma halves, reparam fused.
    mu_z = linear(h, nxt(), nxt(), relu=False)          # (N, 53)
    log_sigma_z = linear(h, nxt(), nxt(), relu=False)   # (N, 53)
    z = mu_z + jnp.exp(log_sigma_z) * eps_ref[...]      # (N, 53)

    # ---------------- decoder ----------------
    d = linear(z, nxt(), nxt(), relu=True)        # (N, 60)
    d = linear(d, nxt(), nxt(), relu=True)        # (N, 120)
    d = linear(d, nxt(), nxt(), relu=True)        # (N, 576)

    # Unflatten(1, (36, 16)): lane slices stacked along sublanes, per batch.
    ds = []
    for n in range(N):
        row = d[n:n + 1, :]
        ds.append(jnp.concatenate([row[:, c * 16:(c + 1) * 16] for c in range(36)],
                                  axis=0))        # (36, 16)

    ds = conv(ds, nxt(), nxt(), K=2, pad=0, relu=True)    # N x (18, 15)
    ds = conv(ds, nxt(), nxt(), K=2, pad=1, relu=True)    # N x (9, 16)
    ds = conv(ds, nxt(), nxt(), K=3, pad=1, relu=True)    # N x (18, 16)
    ds = conv(ds, nxt(), nxt(), K=3, pad=1, relu=False)   # N x (1, 16)

    o_ref[...] = jnp.concatenate(ds, axis=0).astype(o_ref.dtype)   # (N, 16)


# --------------------------------------------------------------------------
# Wrapper: flatten params into the fixed arg order and call pallas_call once
# --------------------------------------------------------------------------
def _conv_args(w, b):
    # (C_out, C_in, K) -> (C_out, K*C_in) with row ordering k-major, ci-minor,
    # matching the im2col built inside the kernel.
    C_out, C_in, K = w.shape
    w2 = jnp.transpose(w, (0, 2, 1)).reshape(C_out, K * C_in)
    return [w2, b.reshape(C_out, 1)]


def _lin_args(w, b):
    return [w, b.reshape(1, -1)]


def vae_conv_forward(params, x0, eps):
    N = x0.shape[0]
    args = [x0, eps]
    for w, b in params["e_conv"]:
        args += _conv_args(w, b)
    for w, b in params["e_lin"][:2]:
        args += _lin_args(w, b)
    w3, b3 = params["e_lin"][2]      # split 106-wide head into mu / log_sigma
    args += [w3[:, :LATENT_S], b3[:LATENT_S].reshape(1, LATENT_S),
             w3[:, LATENT_S:], b3[LATENT_S:].reshape(1, LATENT_S)]
    for w, b in params["d_lin"]:
        args += _lin_args(w, b)
    for w, b in params["d_conv"]:
        args += _conv_args(w, b)

    in_specs = [pl.BlockSpec(a.shape, lambda i, nd=a.ndim: (0,) * nd) for a in args]
    out = pl.pallas_call(
        functools.partial(_vae_fused_kernel, N=N),
        out_shape=jax.ShapeDtypeStruct((N, 16), x0.dtype),
        grid=(1,),                           # one step: whole batch + all params in VMEM
        in_specs=in_specs,
        out_specs=pl.BlockSpec((N, 16), lambda i: (0, 0)),
        compiler_params=pltpu.CompilerParams(dimension_semantics=("arbitrary",)),
    )(*args)
    return out.reshape(N, 1, 16)             # mu_x_pred in PyTorch NCL layout


# --------------------------------------------------------------------------
# Parameters (deterministic, PyTorch-default-style uniform init)
# --------------------------------------------------------------------------
def init_params(key):
    keys = iter(jax.random.split(key, 64))

    def lin(fi, fo):
        bd = 1.0 / (fi ** 0.5)
        w = jax.random.uniform(next(keys), (fi, fo), jnp.float32, -bd, bd)
        b = jax.random.uniform(next(keys), (fo,), jnp.float32, -bd, bd)
        return w, b

    def conv(co, ci, k):
        bd = 1.0 / ((ci * k) ** 0.5)
        w = jax.random.uniform(next(keys), (co, ci, k), jnp.float32, -bd, bd)
        b = jax.random.uniform(next(keys), (co,), jnp.float32, -bd, bd)
        return w, b

    return {
        # encoder: 4 Conv1d + 3 Linear
        "e_conv": [conv(16, 1, 3), conv(8, 16, 3), conv(16, 8, 2), conv(8, 16, 2)],
        "e_lin":  [lin(552, 120), lin(120, 60), lin(60, 2 * LATENT_S)],
        # decoder: 3 Linear + 4 Conv1d
        "d_lin":  [lin(LATENT_S, 60), lin(60, 120), lin(120, 576)],
        "d_conv": [conv(18, 36, 2), conv(9, 18, 2), conv(18, 9, 3), conv(1, 18, 3)],
    }


# --------------------------------------------------------------------------
# Pure-JAX reference (for correctness check only)
# --------------------------------------------------------------------------
def _conv1d_ref(x, w, b, padding):
    y = jax.lax.conv_general_dilated(
        x, w, window_strides=(1,), padding=[(padding, padding)],
        dimension_numbers=("NCH", "OIH", "NCH"),
        precision=jax.lax.Precision.HIGHEST)
    return y + b.reshape(1, -1, 1)


def vae_conv_reference(params, x0, eps):
    hp = jax.lax.Precision.HIGHEST
    N = x0.shape[0]
    h = x0.reshape(N, 1, L_IN)
    for w, b in params["e_conv"]:
        h = jax.nn.relu(_conv1d_ref(h, w, b, padding=1))
    h = h.reshape(N, -1)
    for w, b in params["e_lin"][:2]:
        h = jax.nn.relu(jnp.dot(h, w, precision=hp) + b)
    w3, b3 = params["e_lin"][2]
    enc = jnp.dot(h, w3, precision=hp) + b3
    mu, ls = enc[:, :LATENT_S], enc[:, LATENT_S:]
    d = mu + jnp.exp(ls) * eps
    for w, b in params["d_lin"]:
        d = jax.nn.relu(jnp.dot(d, w, precision=hp) + b)
    d = d.reshape(N, 36, 16)
    pads = (0, 1, 1, 1)
    relus = (True, True, True, False)
    for (w, b), p, r in zip(params["d_conv"], pads, relus):
        d = _conv1d_ref(d, w, b, padding=p)
        if r:
            d = jax.nn.relu(d)
    return d


# --------------------------------------------------------------------------
if __name__ == "__main__":
    key = jax.random.PRNGKey(0)
    k_param, k_x, k_eps = jax.random.split(key, 3)

    N = 4
    params = init_params(k_param)
    x0 = jax.random.normal(k_x, (N, L_IN), jnp.float32)
    # torch.randn(mu_z.shape): noise passed in explicitly for determinism
    eps = jax.random.normal(k_eps, (N, LATENT_S), jnp.float32)

    mu_x_pred = jax.jit(vae_conv_forward)(params, x0, eps)
    mu_x_pred = jax.block_until_ready(mu_x_pred)

    assert mu_x_pred.shape == (N, 1, 16), mu_x_pred.shape
    assert bool(jnp.all(jnp.isfinite(mu_x_pred)))

    ref = jax.block_until_ready(jax.jit(vae_conv_reference)(params, x0, eps))
    max_err = float(jnp.max(jnp.abs(mu_x_pred - ref)))
    assert max_err < 1e-2, f"mismatch vs reference: {max_err}"

    print("KERNEL_OK")
</pallas_src>

<mosaic_0001>
module attributes {stable_mosaic.version = 11 : i64} {
  func.func @_vae_fused_kernel(%arg0: i32, %arg1: memref<4x67xf32, #tpu.memory_space<vmem>>, %arg2: memref<4x53xf32, #tpu.memory_space<vmem>>, %arg3: memref<16x3xf32, #tpu.memory_space<vmem>>, %arg4: memref<16x1xf32, #tpu.memory_space<vmem>>, %arg5: memref<8x48xf32, #tpu.memory_space<vmem>>, %arg6: memref<8x1xf32, #tpu.memory_space<vmem>>, %arg7: memref<16x16xf32, #tpu.memory_space<vmem>>, %arg8: memref<16x1xf32, #tpu.memory_space<vmem>>, %arg9: memref<8x32xf32, #tpu.memory_space<vmem>>, %arg10: memref<8x1xf32, #tpu.memory_space<vmem>>, %arg11: memref<552x120xf32, #tpu.memory_space<vmem>>, %arg12: memref<1x120xf32, #tpu.memory_space<vmem>>, %arg13: memref<120x60xf32, #tpu.memory_space<vmem>>, %arg14: memref<1x60xf32, #tpu.memory_space<vmem>>, %arg15: memref<60x53xf32, #tpu.memory_space<vmem>>, %arg16: memref<1x53xf32, #tpu.memory_space<vmem>>, %arg17: memref<60x53xf32, #tpu.memory_space<vmem>>, %arg18: memref<1x53xf32, #tpu.memory_space<vmem>>, %arg19: memref<53x60xf32, #tpu.memory_space<vmem>>, %arg20: memref<1x60xf32, #tpu.memory_space<vmem>>, %arg21: memref<60x120xf32, #tpu.memory_space<vmem>>, %arg22: memref<1x120xf32, #tpu.memory_space<vmem>>, %arg23: memref<120x576xf32, #tpu.memory_space<vmem>>, %arg24: memref<1x576xf32, #tpu.memory_space<vmem>>, %arg25: memref<18x72xf32, #tpu.memory_space<vmem>>, %arg26: memref<18x1xf32, #tpu.memory_space<vmem>>, %arg27: memref<9x36xf32, #tpu.memory_space<vmem>>, %arg28: memref<9x1xf32, #tpu.memory_space<vmem>>, %arg29: memref<18x27xf32, #tpu.memory_space<vmem>>, %arg30: memref<18x1xf32, #tpu.memory_space<vmem>>, %arg31: memref<1x54xf32, #tpu.memory_space<vmem>>, %arg32: memref<1x1xf32, #tpu.memory_space<vmem>>, %arg33: memref<4x16xf32, #tpu.memory_space<vmem>>) attributes {dimension_semantics = [#tpu.dimension_semantics<arbitrary>], iteration_bounds = array<i64: 1>, scalar_prefetch = 0 : i64, scratch_operands = 0 : i64, tpu.core_type = #tpu.core_type<tc>, window_params = [{pipeline_mode = #tpu.pipeline_mode<synchronous>, transform_indices = @transform_0, window_bounds = array<i64: 4, 67>}, {pipeline_mode = #tpu.pipeline_mode<synchronous>, transform_indices = @transform_1, window_bounds = array<i64: 4, 53>}, {pipeline_mode = #tpu.pipeline_mode<synchronous>, transform_indices = @transform_2, window_bounds = array<i64: 16, 3>}, {pipeline_mode = #tpu.pipeline_mode<synchronous>, transform_indices = @transform_3, window_bounds = array<i64: 16, 1>}, {pipeline_mode = #tpu.pipeline_mode<synchronous>, transform_indices = @transform_4, window_bounds = array<i64: 8, 48>}, {pipeline_mode = #tpu.pipeline_mode<synchronous>, transform_indices = @transform_5, window_bounds = array<i64: 8, 1>}, {pipeline_mode = #tpu.pipeline_mode<synchronous>, transform_indices = @transform_6, window_bounds = array<i64: 16, 16>}, {pipeline_mode = #tpu.pipeline_mode<synchronous>, transform_indices = @transform_7, window_bounds = array<i64: 16, 1>}, {pipeline_mode = #tpu.pipeline_mode<synchronous>, transform_indices = @transform_8, window_bounds = array<i64: 8, 32>}, {pipeline_mode = #tpu.pipeline_mode<synchronous>, transform_indices = @transform_9, window_bounds = array<i64: 8, 1>}, {pipeline_mode = #tpu.pipeline_mode<synchronous>, transform_indices = @transform_10, window_bounds = array<i64: 552, 120>}, {pipeline_mode = #tpu.pipeline_mode<synchronous>, transform_indices = @transform_11, window_bounds = array<i64: 1, 120>}, {pipeline_mode = #tpu.pipeline_mode<synchronous>, transform_indices = @transform_12, window_bounds = array<i64: 120, 60>}, {pipeline_mode = #tpu.pipeline_mode<synchronous>, transform_indices = @transform_13, window_bounds = array<i64: 1, 60>}, {pipeline_mode = #tpu.pipeline_mode<synchronous>, transform_indices = @transform_14, window_bounds = array<i64: 60, 53>}, {pipeline_mode = #tpu.pipeline_mode<synchronous>, transform_indices = @transform_15, window_bounds = array<i64: 1, 53>}, {pipeline_mode = #tpu.pipeline_mode<synchronous>, transform_indices = @transform_16, window_bounds = array<i64: 60, 53>}, {pipeline_mode = #tpu.pipeline_mode<synchronous>, transform_indices = @transform_17, window_bounds = array<i64: 1, 53>}, {pipeline_mode = #tpu.pipeline_mode<synchronous>, transform_indices = @transform_18, window_bounds = array<i64: 53, 60>}, {pipeline_mode = #tpu.pipeline_mode<synchronous>, transform_indices = @transform_19, window_bounds = array<i64: 1, 60>}, {pipeline_mode = #tpu.pipeline_mode<synchronous>, transform_indices = @transform_20, window_bounds = array<i64: 60, 120>}, {pipeline_mode = #tpu.pipeline_mode<synchronous>, transform_indices = @transform_21, window_bounds = array<i64: 1, 120>}, {pipeline_mode = #tpu.pipeline_mode<synchronous>, transform_indices = @transform_22, window_bounds = array<i64: 120, 576>}, {pipeline_mode = #tpu.pipeline_mode<synchronous>, transform_indices = @transform_23, window_bounds = array<i64: 1, 576>}, {pipeline_mode = #tpu.pipeline_mode<synchronous>, transform_indices = @transform_24, window_bounds = array<i64: 18, 72>}, {pipeline_mode = #tpu.pipeline_mode<synchronous>, transform_indices = @transform_25, window_bounds = array<i64: 18, 1>}, {pipeline_mode = #tpu.pipeline_mode<synchronous>, transform_indices = @transform_26, window_bounds = array<i64: 9, 36>}, {pipeline_mode = #tpu.pipeline_mode<synchronous>, transform_indices = @transform_27, window_bounds = array<i64: 9, 1>}, {pipeline_mode = #tpu.pipeline_mode<synchronous>, transform_indices = @transform_28, window_bounds = array<i64: 18, 27>}, {pipeline_mode = #tpu.pipeline_mode<synchronous>, transform_indices = @transform_29, window_bounds = array<i64: 18, 1>}, {pipeline_mode = #tpu.pipeline_mode<synchronous>, transform_indices = @transform_30, window_bounds = array<i64: 1, 54>}, {pipeline_mode = #tpu.pipeline_mode<synchronous>, transform_indices = @transform_31, window_bounds = array<i64: 1, 1>}, {pipeline_mode = #tpu.pipeline_mode<synchronous>, transform_indices = @transform_32, window_bounds = array<i64: 4, 16>}]} {
    %c0 = arith.constant 0 : index
    %c0_0 = arith.constant 0 : index
    %0 = vector.load %arg1[%c0, %c0_0] : memref<4x67xf32, #tpu.memory_space<vmem>>, vector<4x67xf32>
    %1 = vector.extract_strided_slice %0 {offsets = [0, 0], sizes = [1, 67], strides = [1, 1]} : vector<4x67xf32> to vector<1x67xf32>
    %2 = vector.extract_strided_slice %0 {offsets = [1, 0], sizes = [1, 67], strides = [1, 1]} : vector<4x67xf32> to vector<1x67xf32>
    %3 = vector.extract_strided_slice %0 {offsets = [2, 0], sizes = [1, 67], strides = [1, 1]} : vector<4x67xf32> to vector<1x67xf32>
    %4 = vector.extract_strided_slice %0 {offsets = [3, 0], sizes = [1, 67], strides = [1, 1]} : vector<4x67xf32> to vector<1x67xf32>
    %cst = arith.constant 0.000000e+00 : f32
    %5 = vector.broadcast %cst : f32 to vector<1x1xf32>
    %6 = tpu.concatenate %5, %1, %5 in 1 : vector<1x1xf32>, vector<1x67xf32>, vector<1x1xf32> -> vector<1x69xf32>
    %7 = vector.extract_strided_slice %6 {offsets = [0, 0], sizes = [1, 67], strides = [1, 1]} : vector<1x69xf32> to vector<1x67xf32>
    %8 = vector.extract_strided_slice %6 {offsets = [0, 1], sizes = [1, 67], strides = [1, 1]} : vector<1x69xf32> to vector<1x67xf32>
    %9 = vector.extract_strided_slice %6 {offsets = [0, 2], sizes = [1, 67], strides = [1, 1]} : vector<1x69xf32> to vector<1x67xf32>
    %10 = tpu.concatenate %7, %8, %9 in 0 : vector<1x67xf32>, vector<1x67xf32>, vector<1x67xf32> -> vector<3x67xf32>
    %cst_1 = arith.constant 0.000000e+00 : f32
    %11 = vector.broadcast %cst_1 : f32 to vector<1x1xf32>
    %12 = tpu.concatenate %11, %2, %11 in 1 : vector<1x1xf32>, vector<1x67xf32>, vector<1x1xf32> -> vector<1x69xf32>
    %13 = vector.extract_strided_slice %12 {offsets = [0, 0], sizes = [1, 67], strides = [1, 1]} : vector<1x69xf32> to vector<1x67xf32>
    %14 = vector.extract_strided_slice %12 {offsets = [0, 1], sizes = [1, 67], strides = [1, 1]} : vector<1x69xf32> to vector<1x67xf32>
    %15 = vector.extract_strided_slice %12 {offsets = [0, 2], sizes = [1, 67], strides = [1, 1]} : vector<1x69xf32> to vector<1x67xf32>
    %16 = tpu.concatenate %13, %14, %15 in 0 : vector<1x67xf32>, vector<1x67xf32>, vector<1x67xf32> -> vector<3x67xf32>
    %cst_2 = arith.constant 0.000000e+00 : f32
    %17 = vector.broadcast %cst_2 : f32 to vector<1x1xf32>
    %18 = tpu.concatenate %17, %3, %17 in 1 : vector<1x1xf32>, vector<1x67xf32>, vector<1x1xf32> -> vector<1x69xf32>
    %19 = vector.extract_strided_slice %18 {offsets = [0, 0], sizes = [1, 67], strides = [1, 1]} : vector<1x69xf32> to vector<1x67xf32>
    %20 = vector.extract_strided_slice %18 {offsets = [0, 1], sizes = [1, 67], strides = [1, 1]} : vector<1x69xf32> to vector<1x67xf32>
    %21 = vector.extract_strided_slice %18 {offsets = [0, 2], sizes = [1, 67], strides = [1, 1]} : vector<1x69xf32> to vector<1x67xf32>
    %22 = tpu.concatenate %19, %20, %21 in 0 : vector<1x67xf32>, vector<1x67xf32>, vector<1x67xf32> -> vector<3x67xf32>
    %cst_3 = arith.constant 0.000000e+00 : f32
    %23 = vector.broadcast %cst_3 : f32 to vector<1x1xf32>
    %24 = tpu.concatenate %23, %4, %23 in 1 : vector<1x1xf32>, vector<1x67xf32>, vector<1x1xf32> -> vector<1x69xf32>
    %25 = vector.extract_strided_slice %24 {offsets = [0, 0], sizes = [1, 67], strides = [1, 1]} : vector<1x69xf32> to vector<1x67xf32>
    %26 = vector.extract_strided_slice %24 {offsets = [0, 1], sizes = [1, 67], strides = [1, 1]} : vector<1x69xf32> to vector<1x67xf32>
    %27 = vector.extract_strided_slice %24 {offsets = [0, 2], sizes = [1, 67], strides = [1, 1]} : vector<1x69xf32> to vector<1x67xf32>
    %28 = tpu.concatenate %25, %26, %27 in 0 : vector<1x67xf32>, vector<1x67xf32>, vector<1x67xf32> -> vector<3x67xf32>
    %29 = tpu.concatenate %10, %16, %22, %28 in 1 : vector<3x67xf32>, vector<3x67xf32>, vector<3x67xf32>, vector<3x67xf32> -> vector<3x268xf32>
    %c0_4 = arith.constant 0 : index
    %c0_5 = arith.constant 0 : index
    %30 = vector.load %arg3[%c0_4, %c0_5] : memref<16x3xf32, #tpu.memory_space<vmem>>, vector<16x3xf32>
    %cst_6 = arith.constant dense<0.000000e+00> : vector<16x268xf32>
    %31 = tpu.matmul %30, %29, %cst_6 {dimension_numbers = #tpu.dot_dimension_numbers<[1], [0], [0], [1], [0, 0, 1, 1], [], []>} : vector<16x3xf32>, vector<3x268xf32>, vector<16x268xf32> -> vector<16x268xf32>
    %c0_7 = arith.constant 0 : index
    %c0_8 = arith.constant 0 : index
    %32 = vector.load %arg4[%c0_7, %c0_8] : memref<16x1xf32, #tpu.memory_space<vmem>>, vector<16x1xf32>
    %33 = vector.broadcast %32 : vector<16x1xf32> to vector<16x268xf32>
    %34 = arith.addf %31, %33 : vector<16x268xf32>
    %cst_9 = arith.constant 0.000000e+00 : f32
    %35 = vector.broadcast %cst_9 : f32 to vector<16x268xf32>
    %36 = arith.maximumf %34, %35 : vector<16x268xf32>
    %37 = vector.extract_strided_slice %36 {offsets = [0, 0], sizes = [16, 67], strides = [1, 1]} : vector<16x268xf32> to vector<16x67xf32>
    %38 = vector.extract_strided_slice %36 {offsets = [0, 67], sizes = [16, 67], strides = [1, 1]} : vector<16x268xf32> to vector<16x67xf32>
    %39 = vector.extract_strided_slice %36 {offsets = [0, 134], sizes = [16, 67], strides = [1, 1]} : vector<16x268xf32> to vector<16x67xf32>
    %40 = vector.extract_strided_slice %36 {offsets = [0, 201], sizes = [16, 67], strides = [1, 1]} : vector<16x268xf32> to vector<16x67xf32>
    %cst_10 = arith.constant 0.000000e+00 : f32
    %41 = vector.broadcast %cst_10 : f32 to vector<16x1xf32>
    %42 = tpu.concatenate %41, %37, %41 in 1 : vector<16x1xf32>, vector<16x67xf32>, vector<16x1xf32> -> vector<16x69xf32>
    %43 = vector.extract_strided_slice %42 {offsets = [0, 0], sizes = [16, 67], strides = [1, 1]} : vector<16x69xf32> to vector<16x67xf32>
    %44 = vector.extract_strided_slice %42 {offsets = [0, 1], sizes = [16, 67], strides = [1, 1]} : vector<16x69xf32> to vector<16x67xf32>
    %45 = vector.extract_strided_slice %42 {offsets = [0, 2], sizes = [16, 67], strides = [1, 1]} : vector<16x69xf32> to vector<16x67xf32>
    %46 = tpu.concatenate %43, %44, %45 in 0 : vector<16x67xf32>, vector<16x67xf32>, vector<16x67xf32> -> vector<48x67xf32>
    %cst_11 = arith.constant 0.000000e+00 : f32
    %47 = vector.broadcast %cst_11 : f32 to vector<16x1xf32>
    %48 = tpu.concatenate %47, %38, %47 in 1 : vector<16x1xf32>, vector<16x67xf32>, vector<16x1xf32> -> vector<16x69xf32>
    %49 = vector.extract_strided_slice %48 {offsets = [0, 0], sizes = [16, 67], strides = [1, 1]} : vector<16x69xf32> to vector<16x67xf32>
    %50 = vector.extract_strided_slice %48 {offsets = [0, 1], sizes = [16, 67], strides = [1, 1]} : vector<16x69xf32> to vector<16x67xf32>
    %51 = vector.extract_strided_slice %48 {offsets = [0, 2], sizes = [16, 67], strides = [1, 1]} : vector<16x69xf32> to vector<16x67xf32>
    %52 = tpu.concatenate %49, %50, %51 in 0 : vector<16x67xf32>, vector<16x67xf32>, vector<16x67xf32> -> vector<48x67xf32>
    %cst_12 = arith.constant 0.000000e+00 : f32
    %53 = vector.broadcast %cst_12 : f32 to vector<16x1xf32>
    %54 = tpu.concatenate %53, %39, %53 in 1 : vector<16x1xf32>, vector<16x67xf32>, vector<16x1xf32> -> vector<16x69xf32>
    %55 = vector.extract_strided_slice %54 {offsets = [0, 0], sizes = [16, 67], strides = [1, 1]} : vector<16x69xf32> to vector<16x67xf32>
    %56 = vector.extract_strided_slice %54 {offsets = [0, 1], sizes = [16, 67], strides = [1, 1]} : vector<16x69xf32> to vector<16x67xf32>
    %57 = vector.extract_strided_slice %54 {offsets = [0, 2], sizes = [16, 67], strides = [1, 1]} : vector<16x69xf32> to vector<16x67xf32>
    %58 = tpu.concatenate %55, %56, %57 in 0 : vector<16x67xf32>, vector<16x67xf32>, vector<16x67xf32> -> vector<48x67xf32>
    %cst_13 = arith.constant 0.000000e+00 : f32
    %59 = vector.broadcast %cst_13 : f32 to vector<16x1xf32>
    %60 = tpu.concatenate %59, %40, %59 in 1 : vector<16x1xf32>, vector<16x67xf32>, vector<16x1xf32> -> vector<16x69xf32>
    %61 = vector.extract_strided_slice %60 {offsets = [0, 0], sizes = [16, 67], strides = [1, 1]} : vector<16x69xf32> to vector<16x67xf32>
    %62 = vector.extract_strided_slice %60 {offsets = [0, 1], sizes = [16, 67], strides = [1, 1]} : vector<16x69xf32> to vector<16x67xf32>
    %63 = vector.extract_strided_slice %60 {offsets = [0, 2], sizes = [16, 67], strides = [1, 1]} : vector<16x69xf32> to vector<16x67xf32>
    %64 = tpu.concatenate %61, %62, %63 in 0 : vector<16x67xf32>, vector<16x67xf32>, vector<16x67xf32> -> vector<48x67xf32>
    %65 = tpu.concatenate %46, %52, %58, %64 in 1 : vector<48x67xf32>, vector<48x67xf32>, vector<48x67xf32>, vector<48x67xf32> -> vector<48x268xf32>
    %c0_14 = arith.constant 0 : index
    %c0_15 = arith.constant 0 : index
    %66 = vector.load %arg5[%c0_14, %c0_15] : memref<8x48xf32, #tpu.memory_space<vmem>>, vector<8x48xf32>
    %cst_16 = arith.constant dense<0.000000e+00> : vector<8x268xf32>
    %67 = tpu.matmul %66, %65, %cst_16 {dimension_numbers = #tpu.dot_dimension_numbers<[1], [0], [0], [1], [0, 0, 1, 1], [], []>} : vector<8x48xf32>, vector<48x268xf32>, vector<8x268xf32> -> vector<8x268xf32>
    %c0_17 = arith.constant 0 : index
    %c0_18 = arith.constant 0 : index
    %68 = vector.load %arg6[%c0_17, %c0_18] : memref<8x1xf32, #tpu.memory_space<vmem>>, vector<8x1xf32>
    %69 = vector.broadcast %68 : vector<8x1xf32> to vector<8x268xf32>
    %70 = arith.addf %67, %69 : vector<8x268xf32>
    %cst_19 = arith.constant 0.000000e+00 : f32
    %71 = vector.broadcast %cst_19 : f32 to vector<8x268xf32>
    %72 = arith.maximumf %70, %71 : vector<8x268xf32>
    %73 = vector.extract_strided_slice %72 {offsets = [0, 0], sizes = [8, 67], strides = [1, 1]} : vector<8x268xf32> to vector<8x67xf32>
    %74 = vector.extract_strided_slice %72 {offsets = [0, 67], sizes = [8, 67], strides = [1, 1]} : vector<8x268xf32> to vector<8x67xf32>
    %75 = vector.extract_strided_slice %72 {offsets = [0, 134], sizes = [8, 67], strides = [1, 1]} : vector<8x268xf32> to vector<8x67xf32>
    %76 = vector.extract_strided_slice %72 {offsets = [0, 201], sizes = [8, 67], strides = [1, 1]} : vector<8x268xf32> to vector<8x67xf32>
    %cst_20 = arith.constant 0.000000e+00 : f32
    %77 = vector.broadcast %cst_20 : f32 to vector<8x1xf32>
    %78 = tpu.concatenate %77, %73, %77 in 1 : vector<8x1xf32>, vector<8x67xf32>, vector<8x1xf32> -> vector<8x69xf32>
    %79 = vector.extract_strided_slice %78 {offsets = [0, 0], sizes = [8, 68], strides = [1, 1]} : vector<8x69xf32> to vector<8x68xf32>
    %80 = vector.extract_strided_slice %78 {offsets = [0, 1], sizes = [8, 68], strides = [1, 1]} : vector<8x69xf32> to vector<8x68xf32>
    %81 = tpu.concatenate %79, %80 in 0 : vector<8x68xf32>, vector<8x68xf32> -> vector<16x68xf32>
    %cst_21 = arith.constant 0.000000e+00 : f32
    %82 = vector.broadcast %cst_21 : f32 to vector<8x1xf32>
    %83 = tpu.concatenate %82, %74, %82 in 1 : vector<8x1xf32>, vector<8x67xf32>, vector<8x1xf32> -> vector<8x69xf32>
    %84 = vector.extract_strided_slice %83 {offsets = [0, 0], sizes = [8, 68], strides = [1, 1]} : vector<8x69xf32> to vector<8x68xf32>
    %85 = vector.extract_strided_slice %83 {offsets = [0, 1], sizes = [8, 68], strides = [1, 1]} : vector<8x69xf32> to vector<8x68xf32>
    %86 = tpu.concatenate %84, %85 in 0 : vector<8x68xf32>, vector<8x68xf32> -> vector<16x68xf32>
    %cst_22 = arith.constant 0.000000e+00 : f32
    %87 = vector.broadcast %cst_22 : f32 to vector<8x1xf32>
    %88 = tpu.concatenate %87, %75, %87 in 1 : vector<8x1xf32>, vector<8x67xf32>, vector<8x1xf32> -> vector<8x69xf32>
    %89 = vector.extract_strided_slice %88 {offsets = [0, 0], sizes = [8, 68], strides = [1, 1]} : vector<8x69xf32> to vector<8x68xf32>
    %90 = vector.extract_strided_slice %88 {offsets = [0, 1], sizes = [8, 68], strides = [1, 1]} : vector<8x69xf32> to vector<8x68xf32>
    %91 = tpu.concatenate %89, %90 in 0 : vector<8x68xf32>, vector<8x68xf32> -> vector<16x68xf32>
    %cst_23 = arith.constant 0.000000e+00 : f32
    %92 = vector.broadcast %cst_23 : f32 to vector<8x1xf32>
    %93 = tpu.concatenate %92, %76, %92 in 1 : vector<8x1xf32>, vector<8x67xf32>, vector<8x1xf32> -> vector<8x69xf32>
    %94 = vector.extract_strided_slice %93 {offsets = [0, 0], sizes = [8, 68], strides = [1, 1]} : vector<8x69xf32> to vector<8x68xf32>
    %95 = vector.extract_strided_slice %93 {offsets = [0, 1], sizes = [8, 68], strides = [1, 1]} : vector<8x69xf32> to vector<8x68xf32>
    %96 = tpu.concatenate %94, %95 in 0 : vector<8x68xf32>, vector<8x68xf32> -> vector<16x68xf32>
    %97 = tpu.concatenate %81, %86, %91, %96 in 1 : vector<16x68xf32>, vector<16x68xf32>, vector<16x68xf32>, vector<16x68xf32> -> vector<16x272xf32>
    %c0_24 = arith.constant 0 : index
    %c0_25 = arith.constant 0 : index
    %98 = vector.load %arg7[%c0_24, %c0_25] : memref<16x16xf32, #tpu.memory_space<vmem>>, vector<16x16xf32>
    %cst_26 = arith.constant dense<0.000000e+00> : vector<16x272xf32>
    %99 = tpu.matmul %98, %97, %cst_26 {dimension_numbers = #tpu.dot_dimension_numbers<[1], [0], [0], [1], [0, 0, 1, 1], [], []>} : vector<16x16xf32>, vector<16x272xf32>, vector<16x272xf32> -> vector<16x272xf32>
    %c0_27 = arith.constant 0 : index
    %c0_28 = arith.constant 0 : index
    %100 = vector.load %arg8[%c0_27, %c0_28] : memref<16x1xf32, #tpu.memory_space<vmem>>, vector<16x1xf32>
    %101 = vector.broadcast %100 : vector<16x1xf32> to vector<16x272xf32>
    %102 = arith.addf %99, %101 : vector<16x272xf32>
    %cst_29 = arith.constant 0.000000e+00 : f32
    %103 = vector.broadcast %cst_29 : f32 to vector<16x272xf32>
    %104 = arith.maximumf %102, %103 : vector<16x272xf32>
    %105 = vector.extract_strided_slice %104 {offsets = [0, 0], sizes = [16, 68], strides = [1, 1]} : vector<16x272xf32> to vector<16x68xf32>
    %106 = vector.extract_strided_slice %104 {offsets = [0, 68], sizes = [16, 68], strides = [1, 1]} : vector<16x272xf32> to vector<16x68xf32>
    %107 = vector.extract_strided_slice %104 {offsets = [0, 136], sizes = [16, 68], strides = [1, 1]} : vector<16x272xf32> to vector<16x68xf32>
    %108 = vector.extract_strided_slice %104 {offsets = [0, 204], sizes = [16, 68], strides = [1, 1]} : vector<16x272xf32> to vector<16x68xf32>
    %cst_30 = arith.constant 0.000000e+00 : f32
    %109 = vector.broadcast %cst_30 : f32 to vector<16x1xf32>
    %110 = tpu.concatenate %109, %105, %109 in 1 : vector<16x1xf32>, vector<16x68xf32>, vector<16x1xf32> -> vector<16x70xf32>
    %111 = vector.extract_strided_slice %110 {offsets = [0, 0], sizes = [16, 69], strides = [1, 1]} : vector<16x70xf32> to vector<16x69xf32>
    %112 = vector.extract_strided_slice %110 {offsets = [0, 1], sizes = [16, 69], strides = [1, 1]} : vector<16x70xf32> to vector<16x69xf32>
    %113 = tpu.concatenate %111, %112 in 0 : vector<16x69xf32>, vector<16x69xf32> -> vector<32x69xf32>
    %cst_31 = arith.constant 0.000000e+00 : f32
    %114 = vector.broadcast %cst_31 : f32 to vector<16x1xf32>
    %115 = tpu.concatenate %114, %106, %114 in 1 : vector<16x1xf32>, vector<16x68xf32>, vector<16x1xf32> -> vector<16x70xf32>
    %116 = vector.extract_strided_slice %115 {offsets = [0, 0], sizes = [16, 69], strides = [1, 1]} : vector<16x70xf32> to vector<16x69xf32>
    %117 = vector.extract_strided_slice %115 {offsets = [0, 1], sizes = [16, 69], strides = [1, 1]} : vector<16x70xf32> to vector<16x69xf32>
    %118 = tpu.concatenate %116, %117 in 0 : vector<16x69xf32>, vector<16x69xf32> -> vector<32x69xf32>
    %cst_32 = arith.constant 0.000000e+00 : f32
    %119 = vector.broadcast %cst_32 : f32 to vector<16x1xf32>
    %120 = tpu.concatenate %119, %107, %119 in 1 : vector<16x1xf32>, vector<16x68xf32>, vector<16x1xf32> -> vector<16x70xf32>
    %121 = vector.extract_strided_slice %120 {offsets = [0, 0], sizes = [16, 69], strides = [1, 1]} : vector<16x70xf32> to vector<16x69xf32>
    %122 = vector.extract_strided_slice %120 {offsets = [0, 1], sizes = [16, 69], strides = [1, 1]} : vector<16x70xf32> to vector<16x69xf32>
    %123 = tpu.concatenate %121, %122 in 0 : vector<16x69xf32>, vector<16x69xf32> -> vector<32x69xf32>
    %cst_33 = arith.constant 0.000000e+00 : f32
    %124 = vector.broadcast %cst_33 : f32 to vector<16x1xf32>
    %125 = tpu.concatenate %124, %108, %124 in 1 : vector<16x1xf32>, vector<16x68xf32>, vector<16x1xf32> -> vector<16x70xf32>
    %126 = vector.extract_strided_slice %125 {offsets = [0, 0], sizes = [16, 69], strides = [1, 1]} : vector<16x70xf32> to vector<16x69xf32>
    %127 = vector.extract_strided_slice %125 {offsets = [0, 1], sizes = [16, 69], strides = [1, 1]} : vector<16x70xf32> to vector<16x69xf32>
    %128 = tpu.concatenate %126, %127 in 0 : vector<16x69xf32>, vector<16x69xf32> -> vector<32x69xf32>
    %129 = tpu.concatenate %113, %118, %123, %128 in 1 : vector<32x69xf32>, vector<32x69xf32>, vector<32x69xf32>, vector<32x69xf32> -> vector<32x276xf32>
    %c0_34 = arith.constant 0 : index
    %c0_35 = arith.constant 0 : index
    %130 = vector.load %arg9[%c0_34, %c0_35] : memref<8x32xf32, #tpu.memory_space<vmem>>, vector<8x32xf32>
    %cst_36 = arith.constant dense<0.000000e+00> : vector<8x276xf32>
    %131 = tpu.matmul %130, %129, %cst_36 {dimension_numbers = #tpu.dot_dimension_numbers<[1], [0], [0], [1], [0, 0, 1, 1], [], []>} : vector<8x32xf32>, vector<32x276xf32>, vector<8x276xf32> -> vector<8x276xf32>
    %c0_37 = arith.constant 0 : index
    %c0_38 = arith.constant 0 : index
    %132 = vector.load %arg10[%c0_37, %c0_38] : memref<8x1xf32, #tpu.memory_space<vmem>>, vector<8x1xf32>
    %133 = vector.broadcast %132 : vector<8x1xf32> to vector<8x276xf32>
    %134 = arith.addf %131, %133 : vector<8x276xf32>
    %cst_39 = arith.constant 0.000000e+00 : f32
    %135 = vector.broadcast %cst_39 : f32 to vector<8x276xf32>
    %136 = arith.maximumf %134, %135 : vector<8x276xf32>
    %137 = vector.extract_strided_slice %136 {offsets = [0, 0], sizes = [8, 69], strides = [1, 1]} : vector<8x276xf32> to vector<8x69xf32>
    %138 = vector.extract_strided_slice %136 {offsets = [0, 69], sizes = [8, 69], strides = [1, 1]} : vector<8x276xf32> to vector<8x69xf32>
    %139 = vector.extract_strided_slice %136 {offsets = [0, 138], sizes = [8, 69], strides = [1, 1]} : vector<8x276xf32> to vector<8x69xf32>
    %140 = vector.extract_strided_slice %136 {offsets = [0, 207], sizes = [8, 69], strides = [1, 1]} : vector<8x276xf32> to vector<8x69xf32>
    %141 = vector.extract_strided_slice %137 {offsets = [0, 0], sizes = [1, 69], strides = [1, 1]} : vector<8x69xf32> to vector<1x69xf32>
    %142 = vector.extract_strided_slice %137 {offsets = [1, 0], sizes = [1, 69], strides = [1, 1]} : vector<8x69xf32> to vector<1x69xf32>
    %143 = vector.extract_strided_slice %137 {offsets = [2, 0], sizes = [1, 69], strides = [1, 1]} : vector<8x69xf32> to vector<1x69xf32>
    %144 = vector.extract_strided_slice %137 {offsets = [3, 0], sizes = [1, 69], strides = [1, 1]} : vector<8x69xf32> to vector<1x69xf32>
    %145 = vector.extract_strided_slice %137 {offsets = [4, 0], sizes = [1, 69], strides = [1, 1]} : vector<8x69xf32> to vector<1x69xf32>
    %146 = vector.extract_strided_slice %137 {offsets = [5, 0], sizes = [1, 69], strides = [1, 1]} : vector<8x69xf32> to vector<1x69xf32>
    %147 = vector.extract_strided_slice %137 {offsets = [6, 0], sizes = [1, 69], strides = [1, 1]} : vector<8x69xf32> to vector<1x69xf32>
    %148 = vector.extract_strided_slice %137 {offsets = [7, 0], sizes = [1, 69], strides = [1, 1]} : vector<8x69xf32> to vector<1x69xf32>
    %149 = tpu.concatenate %141, %142, %143, %144, %145, %146, %147, %148 in 1 : vector<1x69xf32>, vector<1x69xf32>, vector<1x69xf32>, vector<1x69xf32>, vector<1x69xf32>, vector<1x69xf32>, vector<1x69xf32>, vector<1x69xf32> -> vector<1x552xf32>
    %150 = vector.extract_strided_slice %138 {offsets = [0, 0], sizes = [1, 69], strides = [1, 1]} : vector<8x69xf32> to vector<1x69xf32>
    %151 = vector.extract_strided_slice %138 {offsets = [1, 0], sizes = [1, 69], strides = [1, 1]} : vector<8x69xf32> to vector<1x69xf32>
    %152 = vector.extract_strided_slice %138 {offsets = [2, 0], sizes = [1, 69], strides = [1, 1]} : vector<8x69xf32> to vector<1x69xf32>
    %153 = vector.extract_strided_slice %138 {offsets = [3, 0], sizes = [1, 69], strides = [1, 1]} : vector<8x69xf32> to vector<1x69xf32>
    %154 = vector.extract_strided_slice %138 {offsets = [4, 0], sizes = [1, 69], strides = [1, 1]} : vector<8x69xf32> to vector<1x69xf32>
    %155 = vector.extract_strided_slice %138 {offsets = [5, 0], sizes = [1, 69], strides = [1, 1]} : vector<8x69xf32> to vector<1x69xf32>
    %156 = vector.extract_strided_slice %138 {offsets = [6, 0], sizes = [1, 69], strides = [1, 1]} : vector<8x69xf32> to vector<1x69xf32>
    %157 = vector.extract_strided_slice %138 {offsets = [7, 0], sizes = [1, 69], strides = [1, 1]} : vector<8x69xf32> to vector<1x69xf32>
    %158 = tpu.concatenate %150, %151, %152, %153, %154, %155, %156, %157 in 1 : vector<1x69xf32>, vector<1x69xf32>, vector<1x69xf32>, vector<1x69xf32>, vector<1x69xf32>, vector<1x69xf32>, vector<1x69xf32>, vector<1x69xf32> -> vector<1x552xf32>
    %159 = vector.extract_strided_slice %139 {offsets = [0, 0], sizes = [1, 69], strides = [1, 1]} : vector<8x69xf32> to vector<1x69xf32>
    %160 = vector.extract_strided_slice %139 {offsets = [1, 0], sizes = [1, 69], strides = [1, 1]} : vector<8x69xf32> to vector<1x69xf32>
    %161 = vector.extract_strided_slice %139 {offsets = [2, 0], sizes = [1, 69], strides = [1, 1]} : vector<8x69xf32> to vector<1x69xf32>
    %162 = vector.extract_strided_slice %139 {offsets = [3, 0], sizes = [1, 69], strides = [1, 1]} : vector<8x69xf32> to vector<1x69xf32>
    %163 = vector.extract_strided_slice %139 {offsets = [4, 0], sizes = [1, 69], strides = [1, 1]} : vector<8x69xf32> to vector<1x69xf32>
    %164 = vector.extract_strided_slice %139 {offsets = [5, 0], sizes = [1, 69], strides = [1, 1]} : vector<8x69xf32> to vector<1x69xf32>
    %165 = vector.extract_strided_slice %139 {offsets = [6, 0], sizes = [1, 69], strides = [1, 1]} : vector<8x69xf32> to vector<1x69xf32>
    %166 = vector.extract_strided_slice %139 {offsets = [7, 0], sizes = [1, 69], strides = [1, 1]} : vector<8x69xf32> to vector<1x69xf32>
    %167 = tpu.concatenate %159, %160, %161, %162, %163, %164, %165, %166 in 1 : vector<1x69xf32>, vector<1x69xf32>, vector<1x69xf32>, vector<1x69xf32>, vector<1x69xf32>, vector<1x69xf32>, vector<1x69xf32>, vector<1x69xf32> -> vector<1x552xf32>
    %168 = vector.extract_strided_slice %140 {offsets = [0, 0], sizes = [1, 69], strides = [1, 1]} : vector<8x69xf32> to vector<1x69xf32>
    %169 = vector.extract_strided_slice %140 {offsets = [1, 0], sizes = [1, 69], strides = [1, 1]} : vector<8x69xf32> to vector<1x69xf32>
    %170 = vector.extract_strided_slice %140 {offsets = [2, 0], sizes = [1, 69], strides = [1, 1]} : vector<8x69xf32> to vector<1x69xf32>
    %171 = vector.extract_strided_slice %140 {offsets = [3, 0], sizes = [1, 69], strides = [1, 1]} : vector<8x69xf32> to vector<1x69xf32>
    %172 = vector.extract_strided_slice %140 {offsets = [4, 0], sizes = [1, 69], strides = [1, 1]} : vector<8x69xf32> to vector<1x69xf32>
    %173 = vector.extract_strided_slice %140 {offsets = [5, 0], sizes = [1, 69], strides = [1, 1]} : vector<8x69xf32> to vector<1x69xf32>
    %174 = vector.extract_strided_slice %140 {offsets = [6, 0], sizes = [1, 69], strides = [1, 1]} : vector<8x69xf32> to vector<1x69xf32>
    %175 = vector.extract_strided_slice %140 {offsets = [7, 0], sizes = [1, 69], strides = [1, 1]} : vector<8x69xf32> to vector<1x69xf32>
    %176 = tpu.concatenate %168, %169, %170, %171, %172, %173, %174, %175 in 1 : vector<1x69xf32>, vector<1x69xf32>, vector<1x69xf32>, vector<1x69xf32>, vector<1x69xf32>, vector<1x69xf32>, vector<1x69xf32>, vector<1x69xf32> -> vector<1x552xf32>
    %177 = tpu.concatenate %149, %158, %167, %176 in 0 : vector<1x552xf32>, vector<1x552xf32>, vector<1x552xf32>, vector<1x552xf32> -> vector<4x552xf32>
    %c0_40 = arith.constant 0 : index
    %c0_41 = arith.constant 0 : index
    %178 = vector.load %arg11[%c0_40, %c0_41] : memref<552x120xf32, #tpu.memory_space<vmem>>, vector<552x120xf32>
    %cst_42 = arith.constant dense<0.000000e+00> : vector<4x120xf32>
    %179 = tpu.matmul %177, %178, %cst_42 {dimension_numbers = #tpu.dot_dimension_numbers<[1], [0], [0], [1], [0, 0, 1, 1], [], []>} : vector<4x552xf32>, vector<552x120xf32>, vector<4x120xf32> -> vector<4x120xf32>
    %c0_43 = arith.constant 0 : index
    %c0_44 = arith.constant 0 : index
    %180 = vector.load %arg12[%c0_43, %c0_44] : memref<1x120xf32, #tpu.memory_space<vmem>>, vector<1x120xf32>
    %181 = vector.broadcast %180 : vector<1x120xf32> to vector<4x120xf32>
    %182 = arith.addf %179, %181 : vector<4x120xf32>
    %cst_45 = arith.constant 0.000000e+00 : f32
    %183 = vector.broadcast %cst_45 : f32 to vector<4x120xf32>
    %184 = arith.maximumf %182, %183 : vector<4x120xf32>
    %c0_46 = arith.constant 0 : index
    %c0_47 = arith.constant 0 : index
    %185 = vector.load %arg13[%c0_46, %c0_47] : memref<120x60xf32, #tpu.memory_space<vmem>>, vector<120x60xf32>
    %cst_48 = arith.constant dense<0.000000e+00> : vector<4x60xf32>
    %186 = tpu.matmul %184, %185, %cst_48 {dimension_numbers = #tpu.dot_dimension_numbers<[1], [0], [0], [1], [0, 0, 1, 1], [], []>} : vector<4x120xf32>, vector<120x60xf32>, vector<4x60xf32> -> vector<4x60xf32>
    %c0_49 = arith.constant 0 : index
    %c0_50 = arith.constant 0 : index
    %187 = vector.load %arg14[%c0_49, %c0_50] : memref<1x60xf32, #tpu.memory_space<vmem>>, vector<1x60xf32>
    %188 = vector.broadcast %187 : vector<1x60xf32> to vector<4x60xf32>
    %189 = arith.addf %186, %188 : vector<4x60xf32>
    %cst_51 = arith.constant 0.000000e+00 : f32
    %190 = vector.broadcast %cst_51 : f32 to vector<4x60xf32>
    %191 = arith.maximumf %189, %190 : vector<4x60xf32>
    %c0_52 = arith.constant 0 : index
    %c0_53 = arith.constant 0 : index
    %192 = vector.load %arg15[%c0_52, %c0_53] : memref<60x53xf32, #tpu.memory_space<vmem>>, vector<60x53xf32>
    %cst_54 = arith.constant dense<0.000000e+00> : vector<4x53xf32>
    %193 = tpu.matmul %191, %192, %cst_54 {dimension_numbers = #tpu.dot_dimension_numbers<[1], [0], [0], [1], [0, 0, 1, 1], [], []>} : vector<4x60xf32>, vector<60x53xf32>, vector<4x53xf32> -> vector<4x53xf32>
    %c0_55 = arith.constant 0 : index
    %c0_56 = arith.constant 0 : index
    %194 = vector.load %arg16[%c0_55, %c0_56] : memref<1x53xf32, #tpu.memory_space<vmem>>, vector<1x53xf32>
    %195 = vector.broadcast %194 : vector<1x53xf32> to vector<4x53xf32>
    %196 = arith.addf %193, %195 : vector<4x53xf32>
    %c0_57 = arith.constant 0 : index
    %c0_58 = arith.constant 0 : index
    %197 = vector.load %arg17[%c0_57, %c0_58] : memref<60x53xf32, #tpu.memory_space<vmem>>, vector<60x53xf32>
    %cst_59 = arith.constant dense<0.000000e+00> : vector<4x53xf32>
    %198 = tpu.matmul %191, %197, %cst_59 {dimension_numbers = #tpu.dot_dimension_numbers<[1], [0], [0], [1], [0, 0, 1, 1], [], []>} : vector<4x60xf32>, vector<60x53xf32>, vector<4x53xf32> -> vector<4x53xf32>
    %c0_60 = arith.constant 0 : index
    %c0_61 = arith.constant 0 : index
    %199 = vector.load %arg18[%c0_60, %c0_61] : memref<1x53xf32, #tpu.memory_space<vmem>>, vector<1x53xf32>
    %200 = vector.broadcast %199 : vector<1x53xf32> to vector<4x53xf32>
    %201 = arith.addf %198, %200 : vector<4x53xf32>
    %202 = math.exp %201 : vector<4x53xf32>
    %c0_62 = arith.constant 0 : index
    %c0_63 = arith.constant 0 : index
    %203 = vector.load %arg2[%c0_62, %c0_63] : memref<4x53xf32, #tpu.memory_space<vmem>>, vector<4x53xf32>
    %204 = arith.mulf %202, %203 : vector<4x53xf32>
    %205 = arith.addf %196, %204 : vector<4x53xf32>
    %c0_64 = arith.constant 0 : index
    %c0_65 = arith.constant 0 : index
    %206 = vector.load %arg19[%c0_64, %c0_65] : memref<53x60xf32, #tpu.memory_space<vmem>>, vector<53x60xf32>
    %cst_66 = arith.constant dense<0.000000e+00> : vector<4x60xf32>
    %207 = tpu.matmul %205, %206, %cst_66 {dimension_numbers = #tpu.dot_dimension_numbers<[1], [0], [0], [1], [0, 0, 1, 1], [], []>} : vector<4x53xf32>, vector<53x60xf32>, vector<4x60xf32> -> vector<4x60xf32>
    %c0_67 = arith.constant 0 : index
    %c0_68 = arith.constant 0 : index
    %208 = vector.load %arg20[%c0_67, %c0_68] : memref<1x60xf32, #tpu.memory_space<vmem>>, vector<1x60xf32>
    %209 = vector.broadcast %208 : vector<1x60xf32> to vector<4x60xf32>
    %210 = arith.addf %207, %209 : vector<4x60xf32>
    %cst_69 = arith.constant 0.000000e+00 : f32
    %211 = vector.broadcast %cst_69 : f32 to vector<4x60xf32>
    %212 = arith.maximumf %210, %211 : vector<4x60xf32>
    %c0_70 = arith.constant 0 : index
    %c0_71 = arith.constant 0 : index
    %213 = vector.load %arg21[%c0_70, %c0_71] : memref<60x120xf32, #tpu.memory_space<vmem>>, vector<60x120xf32>
    %cst_72 = arith.constant dense<0.000000e+00> : vector<4x120xf32>
    %214 = tpu.matmul %212, %213, %cst_72 {dimension_numbers = #tpu.dot_dimension_numbers<[1], [0], [0], [1], [0, 0, 1, 1], [], []>} : vector<4x60xf32>, vector<60x120xf32>, vector<4x120xf32> -> vector<4x120xf32>
    %c0_73 = arith.constant 0 : index
    %c0_74 = arith.constant 0 : index
    %215 = vector.load %arg22[%c0_73, %c0_74] : memref<1x120xf32, #tpu.memory_space<vmem>>, vector<1x120xf32>
    %216 = vector.broadcast %215 : vector<1x120xf32> to vector<4x120xf32>
    %217 = arith.addf %214, %216 : vector<4x120xf32>
    %cst_75 = arith.constant 0.000000e+00 : f32
    %218 = vector.broadcast %cst_75 : f32 to vector<4x120xf32>
    %219 = arith.maximumf %217, %218 : vector<4x120xf32>
    %c0_76 = arith.constant 0 : index
    %c0_77 = arith.constant 0 : index
    %220 = vector.load %arg23[%c0_76, %c0_77] : memref<120x576xf32, #tpu.memory_space<vmem>>, vector<120x576xf32>
    %cst_78 = arith.constant dense<0.000000e+00> : vector<4x576xf32>
    %221 = tpu.matmul %219, %220, %cst_78 {dimension_numbers = #tpu.dot_dimension_numbers<[1], [0], [0], [1], [0, 0, 1, 1], [], []>} : vector<4x120xf32>, vector<120x576xf32>, vector<4x576xf32> -> vector<4x576xf32>
    %c0_79 = arith.constant 0 : index
    %c0_80 = arith.constant 0 : index
    %222 = vector.load %arg24[%c0_79, %c0_80] : memref<1x576xf32, #tpu.memory_space<vmem>>, vector<1x576xf32>
    %223 = vector.broadcast %222 : vector<1x576xf32> to vector<4x576xf32>
    %224 = arith.addf %221, %223 : vector<4x576xf32>
    %cst_81 = arith.constant 0.000000e+00 : f32
    %225 = vector.broadcast %cst_81 : f32 to vector<4x576xf32>
    %226 = arith.maximumf %224, %225 : vector<4x576xf32>
    %227 = vector.extract_strided_slice %226 {offsets = [0, 0], sizes = [1, 576], strides = [1, 1]} : vector<4x576xf32> to vector<1x576xf32>
    %228 = vector.extract_strided_slice %227 {offsets = [0, 0], sizes = [1, 16], strides = [1, 1]} : vector<1x576xf32> to vector<1x16xf32>
    %229 = vector.extract_strided_slice %227 {offsets = [0, 16], sizes = [1, 16], strides = [1, 1]} : vector<1x576xf32> to vector<1x16xf32>
    %230 = vector.extract_strided_slice %227 {offsets = [0, 32], sizes = [1, 16], strides = [1, 1]} : vector<1x576xf32> to vector<1x16xf32>
    %231 = vector.extract_strided_slice %227 {offsets = [0, 48], sizes = [1, 16], strides = [1, 1]} : vector<1x576xf32> to vector<1x16xf32>
    %232 = vector.extract_strided_slice %227 {offsets = [0, 64], sizes = [1, 16], strides = [1, 1]} : vector<1x576xf32> to vector<1x16xf32>
    %233 = vector.extract_strided_slice %227 {offsets = [0, 80], sizes = [1, 16], strides = [1, 1]} : vector<1x576xf32> to vector<1x16xf32>
    %234 = vector.extract_strided_slice %227 {offsets = [0, 96], sizes = [1, 16], strides = [1, 1]} : vector<1x576xf32> to vector<1x16xf32>
    %235 = vector.extract_strided_slice %227 {offsets = [0, 112], sizes = [1, 16], strides = [1, 1]} : vector<1x576xf32> to vector<1x16xf32>
    %236 = vector.extract_strided_slice %227 {offsets = [0, 128], sizes = [1, 16], strides = [1, 1]} : vector<1x576xf32> to vector<1x16xf32>
    %237 = vector.extract_strided_slice %227 {offsets = [0, 144], sizes = [1, 16], strides = [1, 1]} : vector<1x576xf32> to vector<1x16xf32>
    %238 = vector.extract_strided_slice %227 {offsets = [0, 160], sizes = [1, 16], strides = [1, 1]} : vector<1x576xf32> to vector<1x16xf32>
    %239 = vector.extract_strided_slice %227 {offsets = [0, 176], sizes = [1, 16], strides = [1, 1]} : vector<1x576xf32> to vector<1x16xf32>
    %240 = vector.extract_strided_slice %227 {offsets = [0, 192], sizes = [1, 16], strides = [1, 1]} : vector<1x576xf32> to vector<1x16xf32>
    %241 = vector.extract_strided_slice %227 {offsets = [0, 208], sizes = [1, 16], strides = [1, 1]} : vector<1x576xf32> to vector<1x16xf32>
    %242 = vector.extract_strided_slice %227 {offsets = [0, 224], sizes = [1, 16], strides = [1, 1]} : vector<1x576xf32> to vector<1x16xf32>
    %243 = vector.extract_strided_slice %227 {offsets = [0, 240], sizes = [1, 16], strides = [1, 1]} : vector<1x576xf32> to vector<1x16xf32>
    %244 = vector.extract_strided_slice %227 {offsets = [0, 256], sizes = [1, 16], strides = [1, 1]} : vector<1x576xf32> to vector<1x16xf32>
    %245 = vector.extract_strided_slice %227 {offsets = [0, 272], sizes = [1, 16], strides = [1, 1]} : vector<1x576xf32> to vector<1x16xf32>
    %246 = vector.extract_strided_slice %227 {offsets = [0, 288], sizes = [1, 16], strides = [1, 1]} : vector<1x576xf32> to vector<1x16xf32>
    %247 = vector.extract_strided_slice %227 {offsets = [0, 304], sizes = [1, 16], strides = [1, 1]} : vector<1x576xf32> to vector<1x16xf32>
    %248 = vector.extract_strided_slice %227 {offsets = [0, 320], sizes = [1, 16], strides = [1, 1]} : vector<1x576xf32> to vector<1x16xf32>
    %249 = vector.extract_strided_slice %227 {offsets = [0, 336], sizes = [1, 16], strides = [1, 1]} : vector<1x576xf32> to vector<1x16xf32>
    %250 = vector.extract_strided_slice %227 {offsets = [0, 352], sizes = [1, 16], strides = [1, 1]} : vector<1x576xf32> to vector<1x16xf32>
    %251 = vector.extract_strided_slice %227 {offsets = [0, 368], sizes = [1, 16], strides = [1, 1]} : vector<1x576xf32> to vector<1x16xf32>
    %252 = vector.extract_strided_slice %227 {offsets = [0, 384], sizes = [1, 16], strides = [1, 1]} : vector<1x576xf32> to vector<1x16xf32>
    %253 = vector.extract_strided_slice %227 {offsets = [0, 400], sizes = [1, 16], strides = [1, 1]} : vector<1x576xf32> to vector<1x16xf32>
    %254 = vector.extract_strided_slice %227 {offsets = [0, 416], sizes = [1, 16], strides = [1, 1]} : vector<1x576xf32> to vector<1x16xf32>
    %255 = vector.extract_strided_slice %227 {offsets = [0, 432], sizes = [1, 16], strides = [1, 1]} : vector<1x576xf32> to vector<1x16xf32>
    %256 = vector.extract_strided_slice %227 {offsets = [0, 448], sizes = [1, 16], strides = [1, 1]} : vector<1x576xf32> to vector<1x16xf32>
    %257 = vector.extract_strided_slice %227 {offsets = [0, 464], sizes = [1, 16], strides = [1, 1]} : vector<1x576xf32> to vector<1x16xf32>
    %258 = vector.extract_strided_slice %227 {offsets = [0, 480], sizes = [1, 16], strides = [1, 1]} : vector<1x576xf32> to vector<1x16xf32>
    %259 = vector.extract_strided_slice %227 {offsets = [0, 496], sizes = [1, 16], strides = [1, 1]} : vector<1x576xf32> to vector<1x16xf32>
    %260 = vector.extract_strided_slice %227 {offsets = [0, 512], sizes = [1, 16], strides = [1, 1]} : vector<1x576xf32> to vector<1x16xf32>
    %261 = vector.extract_strided_slice %227 {offsets = [0, 528], sizes = [1, 16], strides = [1, 1]} : vector<1x576xf32> to vector<1x16xf32>
    %262 = vector.extract_strided_slice %227 {offsets = [0, 544], sizes = [1, 16], strides = [1, 1]} : vector<1x576xf32> to vector<1x16xf32>
    %263 = vector.extract_strided_slice %227 {offsets = [0, 560], sizes = [1, 16], strides = [1, 1]} : vector<1x576xf32> to vector<1x16xf32>
    %264 = tpu.concatenate %228, %229, %230, %231, %232, %233, %234, %235, %236, %237, %238, %239, %240, %241, %242, %243 in 0 : vector<1x16xf32>, vector<1x16xf32>, vector<1x16xf32>, vector<1x16xf32>, vector<1x16xf32>, vector<1x16xf32>, vector<1x16xf32>, vector<1x16xf32>, vector<1x16xf32>, vector<1x16xf32>, vector<1x16xf32>, vector<1x16xf32>, vector<1x16xf32>, vector<1x16xf32>, vector<1x16xf32>, vector<1x16xf32> -> vector<16x16xf32>
    %265 = tpu.concatenate %244, %245, %246, %247, %248, %249, %250, %251, %252, %253, %254, %255, %256, %257, %258, %259 in 0 : vector<1x16xf32>, vector<1x16xf32>, vector<1x16xf32>, vector<1x16xf32>, vector<1x16xf32>, vector<1x16xf32>, vector<1x16xf32>, vector<1x16xf32>, vector<1x16xf32>, vector<1x16xf32>, vector<1x16xf32>, vector<1x16xf32>, vector<1x16xf32>, vector<1x16xf32>, vector<1x16xf32>, vector<1x16xf32> -> vector<16x16xf32>
    %266 = tpu.concatenate %260, %261, %262, %263 in 0 : vector<1x16xf32>, vector<1x16xf32>, vector<1x16xf32>, vector<1x16xf32> -> vector<4x16xf32>
    %267 = tpu.concatenate %264, %265, %266 in 0 : vector<16x16xf32>, vector<16x16xf32>, vector<4x16xf32> -> vector<36x16xf32>
    %268 = vector.extract_strided_slice %226 {offsets = [1, 0], sizes = [1, 576], strides = [1, 1]} : vector<4x576xf32> to vector<1x576xf32>
    %269 = vector.extract_strided_slice %268 {offsets = [0, 0], sizes = [1, 16], strides = [1, 1]} : vector<1x576xf32> to vector<1x16xf32>
    %270 = vector.extract_strided_slice %268 {offsets = [0, 16], sizes = [1, 16], strides = [1, 1]} : vector<1x576xf32> to vector<1x16xf32>
    %271 = vector.extract_strided_slice %268 {offsets = [0, 32], sizes = [1, 16], strides = [1, 1]} : vector<1x576xf32> to vector<1x16xf32>
    %272 = vector.extract_strided_slice %268 {offsets = [0, 48], sizes = [1, 16], strides = [1, 1]} : vector<1x576xf32> to vector<1x16xf32>
    %273 = vector.extract_strided_slice %268 {offsets = [0, 64], sizes = [1, 16], strides = [1, 1]} : vector<1x576xf32> to vector<1x16xf32>
    %274 = vector.extract_strided_slice %268 {offsets = [0, 80], sizes = [1, 16], strides = [1, 1]} : vector<1x576xf32> to vector<1x16xf32>
    %275 = vector.extract_strided_slice %268 {offsets = [0, 96], sizes = [1, 16], strides = [1, 1]} : vector<1x576xf32> to vector<1x16xf32>
    %276 = vector.extract_strided_slice %268 {offsets = [0, 112], sizes = [1, 16], strides = [1, 1]} : vector<1x576xf32> to vector<1x16xf32>
    %277 = vector.extract_strided_slice %268 {offsets = [0, 128], sizes = [1, 16], strides = [1, 1]} : vector<1x576xf32> to vector<1x16xf32>
    %278 = vector.extract_strided_slice %268 {offsets = [0, 144], sizes = [1, 16], strides = [1, 1]} : vector<1x576xf32> to vector<1x16xf32>
    %279 = vector.extract_strided_slice %268 {offsets = [0, 160], sizes = [1, 16], strides = [1, 1]} : vector<1x576xf32> to vector<1x16xf32>
    %280 = vector.extract_strided_slice %268 {offsets = [0, 176], sizes = [1, 16], strides = [1, 1]} : vector<1x576xf32> to vector<1x16xf32>
    %281 = vector.extract_strided_slice %268 {offsets = [0, 192], sizes = [1, 16], strides = [1, 1]} : vector<1x576xf32> to vector<1x16xf32>
    %282 = vector.extract_strided_slice %268 {offsets = [0, 208], sizes = [1, 16], strides = [1, 1]} : vector<1x576xf32> to vector<1x16xf32>
    %283 = vector.extract_strided_slice %268 {offsets = [0, 224], sizes = [1, 16], strides = [1, 1]} : vector<1x576xf32> to vector<1x16xf32>
    %284 = vector.extract_strided_slice %268 {offsets = [0, 240], sizes = [1, 16], strides = [1, 1]} : vector<1x576xf32> to vector<1x16xf32>
    %285 = vector.extract_strided_slice %268 {offsets = [0, 256], sizes = [1, 16], strides = [1, 1]} : vector<1x576xf32> to vector<1x16xf32>
    %286 = vector.extract_strided_slice %268 {offsets = [0, 272], sizes = [1, 16], strides = [1, 1]} : vector<1x576xf32> to vector<1x16xf32>
    %287 = vector.extract_strided_slice %268 {offsets = [0, 288], sizes = [1, 16], strides = [1, 1]} : vector<1x576xf32> to vector<1x16xf32>
    %288 = vector.extract_strided_slice %268 {offsets = [0, 304], sizes = [1, 16], strides = [1, 1]} : vector<1x576xf32> to vector<1x16xf32>
    %289 = vector.extract_strided_slice %268 {offsets = [0, 320], sizes = [1, 16], strides = [1, 1]} : vector<1x576xf32> to vector<1x16xf32>
    %290 = vector.extract_strided_slice %268 {offsets = [0, 336], sizes = [1, 16], strides = [1, 1]} : vector<1x576xf32> to vector<1x16xf32>
    %291 = vector.extract_strided_slice %268 {offsets = [0, 352], sizes = [1, 16], strides = [1, 1]} : vector<1x576xf32> to vector<1x16xf32>
    %292 = vector.extract_strided_slice %268 {offsets = [0, 368], sizes = [1, 16], strides = [1, 1]} : vector<1x576xf32> to vector<1x16xf32>
    %293 = vector.extract_strided_slice %268 {offsets = [0, 384], sizes = [1, 16], strides = [1, 1]} : vector<1x576xf32> to vector<1x16xf32>
    %294 = vector.extract_strided_slice %268 {offsets = [0, 400], sizes = [1, 16], strides = [1, 1]} : vector<1x576xf32> to vector<1x16xf32>
    %295 = vector.extract_strided_slice %268 {offsets = [0, 416], sizes = [1, 16], strides = [1, 1]} : vector<1x576xf32> to vector<1x16xf32>
    %296 = vector.extract_strided_slice %268 {offsets = [0, 432], sizes = [1, 16], strides = [1, 1]} : vector<1x576xf32> to vector<1x16xf32>
    %297 = vector.extract_strided_slice %268 {offsets = [0, 448], sizes = [1, 16], strides = [1, 1]} : vector<1x576xf32> to vector<1x16xf32>
    %298 = vector.extract_strided_slice %268 {offsets = [0, 464], sizes = [1, 16], strides = [1, 1]} : vector<1x576xf32> to vector<1x16xf32>
    %299 = vector.extract_strided_slice %268 {offsets = [0, 480], sizes = [1, 16], strides = [1, 1]} : vector<1x576xf32> to vector<1x16xf32>
    %300 = vector.extract_strided_slice %268 {offsets = [0, 496], sizes = [1, 16], strides = [1, 1]} : vector<1x576xf32> to vector<1x16xf32>
    %301 = vector.extract_strided_slice %268 {offsets = [0, 512], sizes = [1, 16], strides = [1, 1]} : vector<1x576xf32> to vector<1x16xf32>
    %302 = vector.extract_strided_slice %268 {offsets = [0, 528], sizes = [1, 16], strides = [1, 1]} : vector<1x576xf32> to vector<1x16xf32>
    %303 = vector.extract_strided_slice %268 {offsets = [0, 544], sizes = [1, 16], strides = [1, 1]} : vector<1x576xf32> to vector<1x16xf32>
    %304 = vector.extract_strided_slice %268 {offsets = [0, 560], sizes = [1, 16], strides = [1, 1]} : vector<1x576xf32> to vector<1x16xf32>
    %305 = tpu.concatenate %269, %270, %271, %272, %273, %274, %275, %276, %277, %278, %279, %280, %281, %282, %283, %284 in 0 : vector<1x16xf32>, vector<1x16xf32>, vector<1x16xf32>, vector<1x16xf32>, vector<1x16xf32>, vector<1x16xf32>, vector<1x16xf32>, vector<1x16xf32>, vector<1x16xf32>, vector<1x16xf32>, vector<1x16xf32>, vector<1x16xf32>, vector<1x16xf32>, vector<1x16xf32>, vector<1x16xf32>, vector<1x16xf32> -> vector<16x16xf32>
    %306 = tpu.concatenate %285, %286, %287, %288, %289, %290, %291, %292, %293, %294, %295, %296, %297, %298, %299, %300 in 0 : vector<1x16xf32>, vector<1x16xf32>, vector<1x16xf32>, vector<1x16xf32>, vector<1x16xf32>, vector<1x16xf32>, vector<1x16xf32>, vector<1x16xf32>, vector<1x16xf32>, vector<1x16xf32>, vector<1x16xf32>, vector<1x16xf32>, vector<1x16xf32>, vector<1x16xf32>, vector<1x16xf32>, vector<1x16xf32> -> vector<16x16xf32>
    %307 = tpu.concatenate %301, %302, %303, %304 in 0 : vector<1x16xf32>, vector<1x16xf32>, vector<1x16xf32>, vector<1x16xf32> -> vector<4x16xf32>
    %308 = tpu.concatenate %305, %306, %307 in 0 : vector<16x16xf32>, vector<16x16xf32>, vector<4x16xf32> -> vector<36x16xf32>
    %309 = vector.extract_strided_slice %226 {offsets = [2, 0], sizes = [1, 576], strides = [1, 1]} : vector<4x576xf32> to vector<1x576xf32>
    %310 = vector.extract_strided_slice %309 {offsets = [0, 0], sizes = [1, 16], strides = [1, 1]} : vector<1x576xf32> to vector<1x16xf32>
    %311 = vector.extract_strided_slice %309 {offsets = [0, 16], sizes = [1, 16], strides = [1, 1]} : vector<1x576xf32> to vector<1x16xf32>
    %312 = vector.extract_strided_slice %309 {offsets = [0, 32], sizes = [1, 16], strides = [1, 1]} : vector<1x576xf32> to vector<1x16xf32>
    %313 = vector.extract_strided_slice %309 {offsets = [0, 48], sizes = [1, 16], strides = [1, 1]} : vector<1x576xf32> to vector<1x16xf32>
    %314 = vector.extract_strided_slice %309 {offsets = [0, 64], sizes = [1, 16], strides = [1, 1]} : vector<1x576xf32> to vector<1x16xf32>
    %315 = vector.extract_strided_slice %309 {offsets = [0, 80], sizes = [1, 16], strides = [1, 1]} : vector<1x576xf32> to vector<1x16xf32>
    %316 = vector.extract_strided_slice %309 {offsets = [0, 96], sizes = [1, 16], strides = [1, 1]} : vector<1x576xf32> to vector<1x16xf32>
    %317 = vector.extract_strided_slice %309 {offsets = [0, 112], sizes = [1, 16], strides = [1, 1]} : vector<1x576xf32> to vector<1x16xf32>
    %318 = vector.extract_strided_slice %309 {offsets = [0, 128], sizes = [1, 16], strides = [1, 1]} : vector<1x576xf32> to vector<1x16xf32>
    %319 = vector.extract_strided_slice %309 {offsets = [0, 144], sizes = [1, 16], strides = [1, 1]} : vector<1x576xf32> to vector<1x16xf32>
    %320 = vector.extract_strided_slice %309 {offsets = [0, 160], sizes = [1, 16], strides = [1, 1]} : vector<1x576xf32> to vector<1x16xf32>
    %321 = vector.extract_strided_slice %309 {offsets = [0, 176], sizes = [1, 16], strides = [1, 1]} : vector<1x576xf32> to vector<1x16xf32>
    %322 = vector.extract_strided_slice %309 {offsets = [0, 192], sizes = [1, 16], strides = [1, 1]} : vector<1x576xf32> to vector<1x16xf32>
    %323 = vector.extract_strided_slice %309 {offsets = [0, 208], sizes = [1, 16], strides = [1, 1]} : vector<1x576xf32> to vector<1x16xf32>
    %324 = vector.extract_strided_slice %309 {offsets = [0, 224], sizes = [1, 16], strides = [1, 1]} : vector<1x576xf32> to vector<1x16xf32>
    %325 = vector.extract_strided_slice %309 {offsets = [0, 240], sizes = [1, 16], strides = [1, 1]} : vector<1x576xf32> to vector<1x16xf32>
    %326 = vector.extract_strided_slice %309 {offsets = [0, 256], sizes = [1, 16], strides = [1, 1]} : vector<1x576xf32> to vector<1x16xf32>
    %327 = vector.extract_strided_slice %309 {offsets = [0, 272], sizes = [1, 16], strides = [1, 1]} : vector<1x576xf32> to vector<1x16xf32>
    %328 = vector.extract_strided_slice %309 {offsets = [0, 288], sizes = [1, 16], strides = [1, 1]} : vector<1x576xf32> to vector<1x16xf32>
    %329 = vector.extract_strided_slice %309 {offsets = [0, 304], sizes = [1, 16], strides = [1, 1]} : vector<1x576xf32> to vector<1x16xf32>
    %330 = vector.extract_strided_slice %309 {offsets = [0, 320], sizes = [1, 16], strides = [1, 1]} : vector<1x576xf32> to vector<1x16xf32>
    %331 = vector.extract_strided_slice %309 {offsets = [0, 336], sizes = [1, 16], strides = [1, 1]} : vector<1x576xf32> to vector<1x16xf32>
    %332 = vector.extract_strided_slice %309 {offsets = [0, 352], sizes = [1, 16], strides = [1, 1]} : vector<1x576xf32> to vector<1x16xf32>
    %333 = vector.extract_strided_slice %309 {offsets = [0, 368], sizes = [1, 16], strides = [1, 1]} : vector<1x576xf32> to vector<1x16xf32>
    %334 = vector.extract_strided_slice %309 {offsets = [0, 384], sizes = [1, 16], strides = [1, 1]} : vector<1x576xf32> to vector<1x16xf32>
    %335 = vector.extract_strided_slice %309 {offsets = [0, 400], sizes = [1, 16], strides = [1, 1]} : vector<1x576xf32> to vector<1x16xf32>
    %336 = vector.extract_strided_slice %309 {offsets = [0, 416], sizes = [1, 16], strides = [1, 1]} : vector<1x576xf32> to vector<1x16xf32>
    %337 = vector.extract_strided_slice %309 {offsets = [0, 432], sizes = [1, 16], strides = [1, 1]} : vector<1x576xf32> to vector<1x16xf32>
    %338 = vector.extract_strided_slice %309 {offsets = [0, 448], sizes = [1, 16], strides = [1, 1]} : vector<1x576xf32> to vector<1x16xf32>
    %339 = vector.extract_strided_slice %309 {offsets = [0, 464], sizes = [1, 16], strides = [1, 1]} : vector<1x576xf32> to vector<1x16xf32>
    %340 = vector.extract_strided_slice %309 {offsets = [0, 480], sizes = [1, 16], strides = [1, 1]} : vector<1x576xf32> to vector<1x16xf32>
    %341 = vector.extract_strided_slice %309 {offsets = [0, 496], sizes = [1, 16], strides = [1, 1]} : vector<1x576xf32> to vector<1x16xf32>
    %342 = vector.extract_strided_slice %309 {offsets = [0, 512], sizes = [1, 16], strides = [1, 1]} : vector<1x576xf32> to vector<1x16xf32>
    %343 = vector.extract_strided_slice %309 {offsets = [0, 528], sizes = [1, 16], strides = [1, 1]} : vector<1x576xf32> to vector<1x16xf32>
    %344 = vector.extract_strided_slice %309 {offsets = [0, 544], sizes = [1, 16], strides = [1, 1]} : vector<1x576xf32> to vector<1x16xf32>
    %345 = vector.extract_strided_slice %309 {offsets = [0, 560], sizes = [1, 16], strides = [1, 1]} : vector<1x576xf32> to vector<1x16xf32>
    %346 = tpu.concatenate %310, %311, %312, %313, %314, %315, %316, %317, %318, %319, %320, %321, %322, %323, %324, %325 in 0 : vector<1x16xf32>, vector<1x16xf32>, vector<1x16xf32>, vector<1x16xf32>, vector<1x16xf32>, vector<1x16xf32>, vector<1x16xf32>, vector<1x16xf32>, vector<1x16xf32>, vector<1x16xf32>, vector<1x16xf32>, vector<1x16xf32>, vector<1x16xf32>, vector<1x16xf32>, vector<1x16xf32>, vector<1x16xf32> -> vector<16x16xf32>
    %347 = tpu.concatenate %326, %327, %328, %329, %330, %331, %332, %333, %334, %335, %336, %337, %338, %339, %340, %341 in 0 : vector<1x16xf32>, vector<1x16xf32>, vector<1x16xf32>, vector<1x16xf32>, vector<1x16xf32>, vector<1x16xf32>, vector<1x16xf32>, vector<1x16xf32>, vector<1x16xf32>, vector<1x16xf32>, vector<1x16xf32>, vector<1x16xf32>, vector<1x16xf32>, vector<1x16xf32>, vector<1x16xf32>, vector<1x16xf32> -> vector<16x16xf32>
    %348 = tpu.concatenate %342, %343, %344, %345 in 0 : vector<1x16xf32>, vector<1x16xf32>, vector<1x16xf32>, vector<1x16xf32> -> vector<4x16xf32>
    %349 = tpu.concatenate %346, %347, %348 in 0 : vector<16x16xf32>, vector<16x16xf32>, vector<4x16xf32> -> vector<36x16xf32>
    %350 = vector.extract_strided_slice %226 {offsets = [3, 0], sizes = [1, 576], strides = [1, 1]} : vector<4x576xf32> to vector<1x576xf32>
    %351 = vector.extract_strided_slice %350 {offsets = [0, 0], sizes = [1, 16], strides = [1, 1]} : vector<1x576xf32> to vector<1x16xf32>
    %352 = vector.extract_strided_slice %350 {offsets = [0, 16], sizes = [1, 16], strides = [1, 1]} : vector<1x576xf32> to vector<1x16xf32>
    %353 = vector.extract_strided_slice %350 {offsets = [0, 32], sizes = [1, 16], strides = [1, 1]} : vector<1x576xf32> to vector<1x16xf32>
    %354 = vector.extract_strided_slice %350 {offsets = [0, 48], sizes = [1, 16], strides = [1, 1]} : vector<1x576xf32> to vector<1x16xf32>
    %355 = vector.extract_strided_slice %350 {offsets = [0, 64], sizes = [1, 16], strides = [1, 1]} : vector<1x576xf32> to vector<1x16xf32>
    %356 = vector.extract_strided_slice %350 {offsets = [0, 80], sizes = [1, 16], strides = [1, 1]} : vector<1x576xf32> to vector<1x16xf32>
    %357 = vector.extract_strided_slice %350 {offsets = [0, 96], sizes = [1, 16], strides = [1, 1]} : vector<1x576xf32> to vector<1x16xf32>
    %358 = vector.extract_strided_slice %350 {offsets = [0, 112], sizes = [1, 16], strides = [1, 1]} : vector<1x576xf32> to vector<1x16xf32>
    %359 = vector.extract_strided_slice %350 {offsets = [0, 128], sizes = [1, 16], strides = [1, 1]} : vector<1x576xf32> to vector<1x16xf32>
    %360 = vector.extract_strided_slice %350 {offsets = [0, 144], sizes = [1, 16], strides = [1, 1]} : vector<1x576xf32> to vector<1x16xf32>
    %361 = vector.extract_strided_slice %350 {offsets = [0, 160], sizes = [1, 16], strides = [1, 1]} : vector<1x576xf32> to vector<1x16xf32>
    %362 = vector.extract_strided_slice %350 {offsets = [0, 176], sizes = [1, 16], strides = [1, 1]} : vector<1x576xf32> to vector<1x16xf32>
    %363 = vector.extract_strided_slice %350 {offsets = [0, 192], sizes = [1, 16], strides = [1, 1]} : vector<1x576xf32> to vector<1x16xf32>
    %364 = vector.extract_strided_slice %350 {offsets = [0, 208], sizes = [1, 16], strides = [1, 1]} : vector<1x576xf32> to vector<1x16xf32>
    %365 = vector.extract_strided_slice %350 {offsets = [0, 224], sizes = [1, 16], strides = [1, 1]} : vector<1x576xf32> to vector<1x16xf32>
    %366 = vector.extract_strided_slice %350 {offsets = [0, 240], sizes = [1, 16], strides = [1, 1]} : vector<1x576xf32> to vector<1x16xf32>
    %367 = vector.extract_strided_slice %350 {offsets = [0, 256], sizes = [1, 16], strides = [1, 1]} : vector<1x576xf32> to vector<1x16xf32>
    %368 = vector.extract_strided_slice %350 {offsets = [0, 272], sizes = [1, 16], strides = [1, 1]} : vector<1x576xf32> to vector<1x16xf32>
    %369 = vector.extract_strided_slice %350 {offsets = [0, 288], sizes = [1, 16], strides = [1, 1]} : vector<1x576xf32> to vector<1x16xf32>
    %370 = vector.extract_strided_slice %350 {offsets = [0, 304], sizes = [1, 16], strides = [1, 1]} : vector<1x576xf32> to vector<1x16xf32>
    %371 = vector.extract_strided_slice %350 {offsets = [0, 320], sizes = [1, 16], strides = [1, 1]} : vector<1x576xf32> to vector<1x16xf32>
    %372 = vector.extract_strided_slice %350 {offsets = [0, 336], sizes = [1, 16], strides = [1, 1]} : vector<1x576xf32> to vector<1x16xf32>
    %373 = vector.extract_strided_slice %350 {offsets = [0, 352], sizes = [1, 16], strides = [1, 1]} : vector<1x576xf32> to vector<1x16xf32>
    %374 = vector.extract_strided_slice %350 {offsets = [0, 368], sizes = [1, 16], strides = [1, 1]} : vector<1x576xf32> to vector<1x16xf32>
    %375 = vector.extract_strided_slice %350 {offsets = [0, 384], sizes = [1, 16], strides = [1, 1]} : vector<1x576xf32> to vector<1x16xf32>
    %376 = vector.extract_strided_slice %350 {offsets = [0, 400], sizes = [1, 16], strides = [1, 1]} : vector<1x576xf32> to vector<1x16xf32>
    %377 = vector.extract_strided_slice %350 {offsets = [0, 416], sizes = [1, 16], strides = [1, 1]} : vector<1x576xf32> to vector<1x16xf32>
    %378 = vector.extract_strided_slice %350 {offsets = [0, 432], sizes = [1, 16], strides = [1, 1]} : vector<1x576xf32> to vector<1x16xf32>
    %379 = vector.extract_strided_slice %350 {offsets = [0, 448], sizes = [1, 16], strides = [1, 1]} : vector<1x576xf32> to vector<1x16xf32>
    %380 = vector.extract_strided_slice %350 {offsets = [0, 464], sizes = [1, 16], strides = [1, 1]} : vector<1x576xf32> to vector<1x16xf32>
    %381 = vector.extract_strided_slice %350 {offsets = [0, 480], sizes = [1, 16], strides = [1, 1]} : vector<1x576xf32> to vector<1x16xf32>
    %382 = vector.extract_strided_slice %350 {offsets = [0, 496], sizes = [1, 16], strides = [1, 1]} : vector<1x576xf32> to vector<1x16xf32>
    %383 = vector.extract_strided_slice %350 {offsets = [0, 512], sizes = [1, 16], strides = [1, 1]} : vector<1x576xf32> to vector<1x16xf32>
    %384 = vector.extract_strided_slice %350 {offsets = [0, 528], sizes = [1, 16], strides = [1, 1]} : vector<1x576xf32> to vector<1x16xf32>
    %385 = vector.extract_strided_slice %350 {offsets = [0, 544], sizes = [1, 16], strides = [1, 1]} : vector<1x576xf32> to vector<1x16xf32>
    %386 = vector.extract_strided_slice %350 {offsets = [0, 560], sizes = [1, 16], strides = [1, 1]} : vector<1x576xf32> to vector<1x16xf32>
    %387 = tpu.concatenate %351, %352, %353, %354, %355, %356, %357, %358, %359, %360, %361, %362, %363, %364, %365, %366 in 0 : vector<1x16xf32>, vector<1x16xf32>, vector<1x16xf32>, vector<1x16xf32>, vector<1x16xf32>, vector<1x16xf32>, vector<1x16xf32>, vector<1x16xf32>, vector<1x16xf32>, vector<1x16xf32>, vector<1x16xf32>, vector<1x16xf32>, vector<1x16xf32>, vector<1x16xf32>, vector<1x16xf32>, vector<1x16xf32> -> vector<16x16xf32>
    %388 = tpu.concatenate %367, %368, %369, %370, %371, %372, %373, %374, %375, %376, %377, %378, %379, %380, %381, %382 in 0 : vector<1x16xf32>, vector<1x16xf32>, vector<1x16xf32>, vector<1x16xf32>, vector<1x16xf32>, vector<1x16xf32>, vector<1x16xf32>, vector<1x16xf32>, vector<1x16xf32>, vector<1x16xf32>, vector<1x16xf32>, vector<1x16xf32>, vector<1x16xf32>, vector<1x16xf32>, vector<1x16xf32>, vector<1x16xf32> -> vector<16x16xf32>
    %389 = tpu.concatenate %383, %384, %385, %386 in 0 : vector<1x16xf32>, vector<1x16xf32>, vector<1x16xf32>, vector<1x16xf32> -> vector<4x16xf32>
    %390 = tpu.concatenate %387, %388, %389 in 0 : vector<16x16xf32>, vector<16x16xf32>, vector<4x16xf32> -> vector<36x16xf32>
    %391 = vector.extract_strided_slice %267 {offsets = [0, 0], sizes = [36, 15], strides = [1, 1]} : vector<36x16xf32> to vector<36x15xf32>
    %392 = vector.extract_strided_slice %267 {offsets = [0, 1], sizes = [36, 15], strides = [1, 1]} : vector<36x16xf32> to vector<36x15xf32>
    %393 = tpu.concatenate %391, %392 in 0 : vector<36x15xf32>, vector<36x15xf32> -> vector<72x15xf32>
    %394 = vector.extract_strided_slice %308 {offsets = [0, 0], sizes = [36, 15], strides = [1, 1]} : vector<36x16xf32> to vector<36x15xf32>
    %395 = vector.extract_strided_slice %308 {offsets = [0, 1], sizes = [36, 15], strides = [1, 1]} : vector<36x16xf32> to vector<36x15xf32>
    %396 = tpu.concatenate %394, %395 in 0 : vector<36x15xf32>, vector<36x15xf32> -> vector<72x15xf32>
    %397 = vector.extract_strided_slice %349 {offsets = [0, 0], sizes = [36, 15], strides = [1, 1]} : vector<36x16xf32> to vector<36x15xf32>
    %398 = vector.extract_strided_slice %349 {offsets = [0, 1], sizes = [36, 15], strides = [1, 1]} : vector<36x16xf32> to vector<36x15xf32>
    %399 = tpu.concatenate %397, %398 in 0 : vector<36x15xf32>, vector<36x15xf32> -> vector<72x15xf32>
    %400 = vector.extract_strided_slice %390 {offsets = [0, 0], sizes = [36, 15], strides = [1, 1]} : vector<36x16xf32> to vector<36x15xf32>
    %401 = vector.extract_strided_slice %390 {offsets = [0, 1], sizes = [36, 15], strides = [1, 1]} : vector<36x16xf32> to vector<36x15xf32>
    %402 = tpu.concatenate %400, %401 in 0 : vector<36x15xf32>, vector<36x15xf32> -> vector<72x15xf32>
    %403 = tpu.concatenate %393, %396, %399, %402 in 1 : vector<72x15xf32>, vector<72x15xf32>, vector<72x15xf32>, vector<72x15xf32> -> vector<72x60xf32>
    %c0_82 = arith.constant 0 : index
    %c0_83 = arith.constant 0 : index
    %404 = vector.load %arg25[%c0_82, %c0_83] : memref<18x72xf32, #tpu.memory_space<vmem>>, vector<18x72xf32>
    %cst_84 = arith.constant dense<0.000000e+00> : vector<18x60xf32>
    %405 = tpu.matmul %404, %403, %cst_84 {dimension_numbers = #tpu.dot_dimension_numbers<[1], [0], [0], [1], [0, 0, 1, 1], [], []>} : vector<18x72xf32>, vector<72x60xf32>, vector<18x60xf32> -> vector<18x60xf32>
    %c0_85 = arith.constant 0 : index
    %c0_86 = arith.constant 0 : index
    %406 = vector.load %arg26[%c0_85, %c0_86] : memref<18x1xf32, #tpu.memory_space<vmem>>, vector<18x1xf32>
    %407 = vector.broadcast %406 : vector<18x1xf32> to vector<18x60xf32>
    %408 = arith.addf %405, %407 : vector<18x60xf32>
    %cst_87 = arith.constant 0.000000e+00 : f32
    %409 = vector.broadcast %cst_87 : f32 to vector<18x60xf32>
    %410 = arith.maximumf %408, %409 : vector<18x60xf32>
    %411 = vector.extract_strided_slice %410 {offsets = [0, 0], sizes = [18, 15], strides = [1, 1]} : vector<18x60xf32> to vector<18x15xf32>
    %412 = vector.extract_strided_slice %410 {offsets = [0, 15], sizes = [18, 15], strides = [1, 1]} : vector<18x60xf32> to vector<18x15xf32>
    %413 = vector.extract_strided_slice %410 {offsets = [0, 30], sizes = [18, 15], strides = [1, 1]} : vector<18x60xf32> to vector<18x15xf32>
    %414 = vector.extract_strided_slice %410 {offsets = [0, 45], sizes = [18, 15], strides = [1, 1]} : vector<18x60xf32> to vector<18x15xf32>
    %cst_88 = arith.constant 0.000000e+00 : f32
    %415 = vector.broadcast %cst_88 : f32 to vector<18x1xf32>
    %416 = tpu.concatenate %415, %411, %415 in 1 : vector<18x1xf32>, vector<18x15xf32>, vector<18x1xf32> -> vector<18x17xf32>
    %417 = vector.extract_strided_slice %416 {offsets = [0, 0], sizes = [18, 16], strides = [1, 1]} : vector<18x17xf32> to vector<18x16xf32>
    %418 = vector.extract_strided_slice %416 {offsets = [0, 1], sizes = [18, 16], strides = [1, 1]} : vector<18x17xf32> to vector<18x16xf32>
    %419 = tpu.concatenate %417, %418 in 0 : vector<18x16xf32>, vector<18x16xf32> -> vector<36x16xf32>
    %cst_89 = arith.constant 0.000000e+00 : f32
    %420 = vector.broadcast %cst_89 : f32 to vector<18x1xf32>
    %421 = tpu.concatenate %420, %412, %420 in 1 : vector<18x1xf32>, vector<18x15xf32>, vector<18x1xf32> -> vector<18x17xf32>
    %422 = vector.extract_strided_slice %421 {offsets = [0, 0], sizes = [18, 16], strides = [1, 1]} : vector<18x17xf32> to vector<18x16xf32>
    %423 = vector.extract_strided_slice %421 {offsets = [0, 1], sizes = [18, 16], strides = [1, 1]} : vector<18x17xf32> to vector<18x16xf32>
    %424 = tpu.concatenate %422, %423 in 0 : vector<18x16xf32>, vector<18x16xf32> -> vector<36x16xf32>
    %cst_90 = arith.constant 0.000000e+00 : f32
    %425 = vector.broadcast %cst_90 : f32 to vector<18x1xf32>
    %426 = tpu.concatenate %425, %413, %425 in 1 : vector<18x1xf32>, vector<18x15xf32>, vector<18x1xf32> -> vector<18x17xf32>
    %427 = vector.extract_strided_slice %426 {offsets = [0, 0], sizes = [18, 16], strides = [1, 1]} : vector<18x17xf32> to vector<18x16xf32>
    %428 = vector.extract_strided_slice %426 {offsets = [0, 1], sizes = [18, 16], strides = [1, 1]} : vector<18x17xf32> to vector<18x16xf32>
    %429 = tpu.concatenate %427, %428 in 0 : vector<18x16xf32>, vector<18x16xf32> -> vector<36x16xf32>
    %cst_91 = arith.constant 0.000000e+00 : f32
    %430 = vector.broadcast %cst_91 : f32 to vector<18x1xf32>
    %431 = tpu.concatenate %430, %414, %430 in 1 : vector<18x1xf32>, vector<18x15xf32>, vector<18x1xf32> -> vector<18x17xf32>
    %432 = vector.extract_strided_slice %431 {offsets = [0, 0], sizes = [18, 16], strides = [1, 1]} : vector<18x17xf32> to vector<18x16xf32>
    %433 = vector.extract_strided_slice %431 {offsets = [0, 1], sizes = [18, 16], strides = [1, 1]} : vector<18x17xf32> to vector<18x16xf32>
    %434 = tpu.concatenate %432, %433 in 0 : vector<18x16xf32>, vector<18x16xf32> -> vector<36x16xf32>
    %435 = tpu.concatenate %419, %424, %429, %434 in 1 : vector<36x16xf32>, vector<36x16xf32>, vector<36x16xf32>, vector<36x16xf32> -> vector<36x64xf32>
    %c0_92 = arith.constant 0 : index
    %c0_93 = arith.constant 0 : index
    %436 = vector.load %arg27[%c0_92, %c0_93] : memref<9x36xf32, #tpu.memory_space<vmem>>, vector<9x36xf32>
    %cst_94 = arith.constant dense<0.000000e+00> : vector<9x64xf32>
    %437 = tpu.matmul %436, %435, %cst_94 {dimension_numbers = #tpu.dot_dimension_numbers<[1], [0], [0], [1], [0, 0, 1, 1], [], []>} : vector<9x36xf32>, vector<36x64xf32>, vector<9x64xf32> -> vector<9x64xf32>
    %c0_95 = arith.constant 0 : index
    %c0_96 = arith.constant 0 : index
    %438 = vector.load %arg28[%c0_95, %c0_96] : memref<9x1xf32, #tpu.memory_space<vmem>>, vector<9x1xf32>
    %439 = vector.broadcast %438 : vector<9x1xf32> to vector<9x64xf32>
    %440 = arith.addf %437, %439 : vector<9x64xf32>
    %cst_97 = arith.constant 0.000000e+00 : f32
    %441 = vector.broadcast %cst_97 : f32 to vector<9x64xf32>
    %442 = arith.maximumf %440, %441 : vector<9x64xf32>
    %443 = vector.extract_strided_slice %442 {offsets = [0, 0], sizes = [9, 16], strides = [1, 1]} : vector<9x64xf32> to vector<9x16xf32>
    %444 = vector.extract_strided_slice %442 {offsets = [0, 16], sizes = [9, 16], strides = [1, 1]} : vector<9x64xf32> to vector<9x16xf32>
    %445 = vector.extract_strided_slice %442 {offsets = [0, 32], sizes = [9, 16], strides = [1, 1]} : vector<9x64xf32> to vector<9x16xf32>
    %446 = vector.extract_strided_slice %442 {offsets = [0, 48], sizes = [9, 16], strides = [1, 1]} : vector<9x64xf32> to vector<9x16xf32>
    %cst_98 = arith.constant 0.000000e+00 : f32
    %447 = vector.broadcast %cst_98 : f32 to vector<9x1xf32>
    %448 = tpu.concatenate %447, %443, %447 in 1 : vector<9x1xf32>, vector<9x16xf32>, vector<9x1xf32> -> vector<9x18xf32>
    %449 = vector.extract_strided_slice %448 {offsets = [0, 0], sizes = [9, 16], strides = [1, 1]} : vector<9x18xf32> to vector<9x16xf32>
    %450 = vector.extract_strided_slice %448 {offsets = [0, 1], sizes = [9, 16], strides = [1, 1]} : vector<9x18xf32> to vector<9x16xf32>
    %451 = vector.extract_strided_slice %448 {offsets = [0, 2], sizes = [9, 16], strides = [1, 1]} : vector<9x18xf32> to vector<9x16xf32>
    %452 = tpu.concatenate %449, %450, %451 in 0 : vector<9x16xf32>, vector<9x16xf32>, vector<9x16xf32> -> vector<27x16xf32>
    %cst_99 = arith.constant 0.000000e+00 : f32
    %453 = vector.broadcast %cst_99 : f32 to vector<9x1xf32>
    %454 = tpu.concatenate %453, %444, %453 in 1 : vector<9x1xf32>, vector<9x16xf32>, vector<9x1xf32> -> vector<9x18xf32>
    %455 = vector.extract_strided_slice %454 {offsets = [0, 0], sizes = [9, 16], strides = [1, 1]} : vector<9x18xf32> to vector<9x16xf32>
    %456 = vector.extract_strided_slice %454 {offsets = [0, 1], sizes = [9, 16], strides = [1, 1]} : vector<9x18xf32> to vector<9x16xf32>
    %457 = vector.extract_strided_slice %454 {offsets = [0, 2], sizes = [9, 16], strides = [1, 1]} : vector<9x18xf32> to vector<9x16xf32>
    %458 = tpu.concatenate %455, %456, %457 in 0 : vector<9x16xf32>, vector<9x16xf32>, vector<9x16xf32> -> vector<27x16xf32>
    %cst_100 = arith.constant 0.000000e+00 : f32
    %459 = vector.broadcast %cst_100 : f32 to vector<9x1xf32>
    %460 = tpu.concatenate %459, %445, %459 in 1 : vector<9x1xf32>, vector<9x16xf32>, vector<9x1xf32> -> vector<9x18xf32>
    %461 = vector.extract_strided_slice %460 {offsets = [0, 0], sizes = [9, 16], strides = [1, 1]} : vector<9x18xf32> to vector<9x16xf32>
    %462 = vector.extract_strided_slice %460 {offsets = [0, 1], sizes = [9, 16], strides = [1, 1]} : vector<9x18xf32> to vector<9x16xf32>
    %463 = vector.extract_strided_slice %460 {offsets = [0, 2], sizes = [9, 16], strides = [1, 1]} : vector<9x18xf32> to vector<9x16xf32>
    %464 = tpu.concatenate %461, %462, %463 in 0 : vector<9x16xf32>, vector<9x16xf32>, vector<9x16xf32> -> vector<27x16xf32>
    %cst_101 = arith.constant 0.000000e+00 : f32
    %465 = vector.broadcast %cst_101 : f32 to vector<9x1xf32>
    %466 = tpu.concatenate %465, %446, %465 in 1 : vector<9x1xf32>, vector<9x16xf32>, vector<9x1xf32> -> vector<9x18xf32>
    %467 = vector.extract_strided_slice %466 {offsets = [0, 0], sizes = [9, 16], strides = [1, 1]} : vector<9x18xf32> to vector<9x16xf32>
    %468 = vector.extract_strided_slice %466 {offsets = [0, 1], sizes = [9, 16], strides = [1, 1]} : vector<9x18xf32> to vector<9x16xf32>
    %469 = vector.extract_strided_slice %466 {offsets = [0, 2], sizes = [9, 16], strides = [1, 1]} : vector<9x18xf32> to vector<9x16xf32>
    %470 = tpu.concatenate %467, %468, %469 in 0 : vector<9x16xf32>, vector<9x16xf32>, vector<9x16xf32> -> vector<27x16xf32>
    %471 = tpu.concatenate %452, %458, %464, %470 in 1 : vector<27x16xf32>, vector<27x16xf32>, vector<27x16xf32>, vector<27x16xf32> -> vector<27x64xf32>
    %c0_102 = arith.constant 0 : index
    %c0_103 = arith.constant 0 : index
    %472 = vector.load %arg29[%c0_102, %c0_103] : memref<18x27xf32, #tpu.memory_space<vmem>>, vector<18x27xf32>
    %cst_104 = arith.constant dense<0.000000e+00> : vector<18x64xf32>
    %473 = tpu.matmul %472, %471, %cst_104 {dimension_numbers = #tpu.dot_dimension_numbers<[1], [0], [0], [1], [0, 0, 1, 1], [], []>} : vector<18x27xf32>, vector<27x64xf32>, vector<18x64xf32> -> vector<18x64xf32>
    %c0_105 = arith.constant 0 : index
    %c0_106 = arith.constant 0 : index
    %474 = vector.load %arg30[%c0_105, %c0_106] : memref<18x1xf32, #tpu.memory_space<vmem>>, vector<18x1xf32>
    %475 = vector.broadcast %474 : vector<18x1xf32> to vector<18x64xf32>
    %476 = arith.addf %473, %475 : vector<18x64xf32>
    %cst_107 = arith.constant 0.000000e+00 : f32
    %477 = vector.broadcast %cst_107 : f32 to vector<18x64xf32>
    %478 = arith.maximumf %476, %477 : vector<18x64xf32>
    %479 = vector.extract_strided_slice %478 {offsets = [0, 0], sizes = [18, 16], strides = [1, 1]} : vector<18x64xf32> to vector<18x16xf32>
    %480 = vector.extract_strided_slice %478 {offsets = [0, 16], sizes = [18, 16], strides = [1, 1]} : vector<18x64xf32> to vector<18x16xf32>
    %481 = vector.extract_strided_slice %478 {offsets = [0, 32], sizes = [18, 16], strides = [1, 1]} : vector<18x64xf32> to vector<18x16xf32>
    %482 = vector.extract_strided_slice %478 {offsets = [0, 48], sizes = [18, 16], strides = [1, 1]} : vector<18x64xf32> to vector<18x16xf32>
    %cst_108 = arith.constant 0.000000e+00 : f32
    %483 = vector.broadcast %cst_108 : f32 to vector<18x1xf32>
    %484 = tpu.concatenate %483, %479, %483 in 1 : vector<18x1xf32>, vector<18x16xf32>, vector<18x1xf32> -> vector<18x18xf32>
    %485 = vector.extract_strided_slice %484 {offsets = [0, 0], sizes = [18, 16], strides = [1, 1]} : vector<18x18xf32> to vector<18x16xf32>
    %486 = vector.extract_strided_slice %484 {offsets = [0, 1], sizes = [18, 16], strides = [1, 1]} : vector<18x18xf32> to vector<18x16xf32>
    %487 = vector.extract_strided_slice %484 {offsets = [0, 2], sizes = [18, 16], strides = [1, 1]} : vector<18x18xf32> to vector<18x16xf32>
    %488 = tpu.concatenate %485, %486, %487 in 0 : vector<18x16xf32>, vector<18x16xf32>, vector<18x16xf32> -> vector<54x16xf32>
    %cst_109 = arith.constant 0.000000e+00 : f32
    %489 = vector.broadcast %cst_109 : f32 to vector<18x1xf32>
    %490 = tpu.concatenate %489, %480, %489 in 1 : vector<18x1xf32>, vector<18x16xf32>, vector<18x1xf32> -> vector<18x18xf32>
    %491 = vector.extract_strided_slice %490 {offsets = [0, 0], sizes = [18, 16], strides = [1, 1]} : vector<18x18xf32> to vector<18x16xf32>
    %492 = vector.extract_strided_slice %490 {offsets = [0, 1], sizes = [18, 16], strides = [1, 1]} : vector<18x18xf32> to vector<18x16xf32>
    %493 = vector.extract_strided_slice %490 {offsets = [0, 2], sizes = [18, 16], strides = [1, 1]} : vector<18x18xf32> to vector<18x16xf32>
    %494 = tpu.concatenate %491, %492, %493 in 0 : vector<18x16xf32>, vector<18x16xf32>, vector<18x16xf32> -> vector<54x16xf32>
    %cst_110 = arith.constant 0.000000e+00 : f32
    %495 = vector.broadcast %cst_110 : f32 to vector<18x1xf32>
    %496 = tpu.concatenate %495, %481, %495 in 1 : vector<18x1xf32>, vector<18x16xf32>, vector<18x1xf32> -> vector<18x18xf32>
    %497 = vector.extract_strided_slice %496 {offsets = [0, 0], sizes = [18, 16], strides = [1, 1]} : vector<18x18xf32> to vector<18x16xf32>
    %498 = vector.extract_strided_slice %496 {offsets = [0, 1], sizes = [18, 16], strides = [1, 1]} : vector<18x18xf32> to vector<18x16xf32>
    %499 = vector.extract_strided_slice %496 {offsets = [0, 2], sizes = [18, 16], strides = [1, 1]} : vector<18x18xf32> to vector<18x16xf32>
    %500 = tpu.concatenate %497, %498, %499 in 0 : vector<18x16xf32>, vector<18x16xf32>, vector<18x16xf32> -> vector<54x16xf32>
    %cst_111 = arith.constant 0.000000e+00 : f32
    %501 = vector.broadcast %cst_111 : f32 to vector<18x1xf32>
    %502 = tpu.concatenate %501, %482, %501 in 1 : vector<18x1xf32>, vector<18x16xf32>, vector<18x1xf32> -> vector<18x18xf32>
    %503 = vector.extract_strided_slice %502 {offsets = [0, 0], sizes = [18, 16], strides = [1, 1]} : vector<18x18xf32> to vector<18x16xf32>
    %504 = vector.extract_strided_slice %502 {offsets = [0, 1], sizes = [18, 16], strides = [1, 1]} : vector<18x18xf32> to vector<18x16xf32>
    %505 = vector.extract_strided_slice %502 {offsets = [0, 2], sizes = [18, 16], strides = [1, 1]} : vector<18x18xf32> to vector<18x16xf32>
    %506 = tpu.concatenate %503, %504, %505 in 0 : vector<18x16xf32>, vector<18x16xf32>, vector<18x16xf32> -> vector<54x16xf32>
    %507 = tpu.concatenate %488, %494, %500, %506 in 1 : vector<54x16xf32>, vector<54x16xf32>, vector<54x16xf32>, vector<54x16xf32> -> vector<54x64xf32>
    %c0_112 = arith.constant 0 : index
    %c0_113 = arith.constant 0 : index
    %508 = vector.load %arg31[%c0_112, %c0_113] : memref<1x54xf32, #tpu.memory_space<vmem>>, vector<1x54xf32>
    %cst_114 = arith.constant dense<0.000000e+00> : vector<1x64xf32>
    %509 = tpu.matmul %508, %507, %cst_114 {dimension_numbers = #tpu.dot_dimension_numbers<[1], [0], [0], [1], [0, 0, 1, 1], [], []>} : vector<1x54xf32>, vector<54x64xf32>, vector<1x64xf32> -> vector<1x64xf32>
    %c0_115 = arith.constant 0 : index
    %c0_116 = arith.constant 0 : index
    %510 = vector.load %arg32[%c0_115, %c0_116] : memref<1x1xf32, #tpu.memory_space<vmem>>, vector<1x1xf32>
    %511 = vector.broadcast %510 : vector<1x1xf32> to vector<1x64xf32>
    %512 = arith.addf %509, %511 : vector<1x64xf32>
    %513 = vector.extract_strided_slice %512 {offsets = [0, 0], sizes = [1, 16], strides = [1, 1]} : vector<1x64xf32> to vector<1x16xf32>
    %514 = vector.extract_strided_slice %512 {offsets = [0, 16], sizes = [1, 16], strides = [1, 1]} : vector<1x64xf32> to vector<1x16xf32>
    %515 = vector.extract_strided_slice %512 {offsets = [0, 32], sizes = [1, 16], strides = [1, 1]} : vector<1x64xf32> to vector<1x16xf32>
    %516 = vector.extract_strided_slice %512 {offsets = [0, 48], sizes = [1, 16], strides = [1, 1]} : vector<1x64xf32> to vector<1x16xf32>
    %517 = tpu.concatenate %513, %514, %515, %516 in 0 : vector<1x16xf32>, vector<1x16xf32>, vector<1x16xf32>, vector<1x16xf32> -> vector<4x16xf32>
    %c0_117 = arith.constant 0 : index
    %c0_118 = arith.constant 0 : index
    %518 = vector.load %arg33[%c0_117, %c0_118] : memref<4x16xf32, #tpu.memory_space<vmem>>, vector<4x16xf32>
    tpu.vector_store %arg33[%c0_117, %c0_118], %517 {strides = array<i32>} : memref<4x16xf32, #tpu.memory_space<vmem>>, vector<4x16xf32>,
    return
  }
  func.func @transform_0(%arg0: i32) -> (i32, i32) {
    %c0_i32 = arith.constant 0 : i32
    %c0_i32_0 = arith.constant 0 : i32
    %c0_i32_1 = arith.constant 0 : i32
    return %c0_i32, %c0_i32_0 : i32, i32
  }
  func.func @transform_1(%arg0: i32) -> (i32, i32) {
    %c0_i32 = arith.constant 0 : i32
    %c0_i32_0 = arith.constant 0 : i32
    %c0_i32_1 = arith.constant 0 : i32
    return %c0_i32, %c0_i32_0 : i32, i32
  }
  func.func @transform_2(%arg0: i32) -> (i32, i32) {
    %c0_i32 = arith.constant 0 : i32
    %c0_i32_0 = arith.constant 0 : i32
    %c0_i32_1 = arith.constant 0 : i32
    return %c0_i32, %c0_i32_0 : i32, i32
  }
  func.func @transform_3(%arg0: i32) -> (i32, i32) {
    %c0_i32 = arith.constant 0 : i32
    %c0_i32_0 = arith.constant 0 : i32
    %c0_i32_1 = arith.constant 0 : i32
    return %c0_i32, %c0_i32_0 : i32, i32
  }
  func.func @transform_4(%arg0: i32) -> (i32, i32) {
    %c0_i32 = arith.constant 0 : i32
    %c0_i32_0 = arith.constant 0 : i32
    %c0_i32_1 = arith.constant 0 : i32
    return %c0_i32, %c0_i32_0 : i32, i32
  }
  func.func @transform_5(%arg0: i32) -> (i32, i32) {
    %c0_i32 = arith.constant 0 : i32
    %c0_i32_0 = arith.constant 0 : i32
    %c0_i32_1 = arith.constant 0 : i32
    return %c0_i32, %c0_i32_0 : i32, i32
  }
  func.func @transform_6(%arg0: i32) -> (i32, i32) {
    %c0_i32 = arith.constant 0 : i32
    %c0_i32_0 = arith.constant 0 : i32
    %c0_i32_1 = arith.constant 0 : i32
    return %c0_i32, %c0_i32_0 : i32, i32
  }
  func.func @transform_7(%arg0: i32) -> (i32, i32) {
    %c0_i32 = arith.constant 0 : i32
    %c0_i32_0 = arith.constant 0 : i32
    %c0_i32_1 = arith.constant 0 : i32
    return %c0_i32, %c0_i32_0 : i32, i32
  }
  func.func @transform_8(%arg0: i32) -> (i32, i32) {
    %c0_i32 = arith.constant 0 : i32
    %c0_i32_0 = arith.constant 0 : i32
    %c0_i32_1 = arith.constant 0 : i32
    return %c0_i32, %c0_i32_0 : i32, i32
  }
  func.func @transform_9(%arg0: i32) -> (i32, i32) {
    %c0_i32 = arith.constant 0 : i32
    %c0_i32_0 = arith.constant 0 : i32
    %c0_i32_1 = arith.constant 0 : i32
    return %c0_i32, %c0_i32_0 : i32, i32
  }
  func.func @transform_10(%arg0: i32) -> (i32, i32) {
    %c0_i32 = arith.constant 0 : i32
    %c0_i32_0 = arith.constant 0 : i32
    %c0_i32_1 = arith.constant 0 : i32
    return %c0_i32, %c0_i32_0 : i32, i32
  }
  func.func @transform_11(%arg0: i32) -> (i32, i32) {
    %c0_i32 = arith.constant 0 : i32
    %c0_i32_0 = arith.constant 0 : i32
    %c0_i32_1 = arith.constant 0 : i32
    return %c0_i32, %c0_i32_0 : i32, i32
  }
  func.func @transform_12(%arg0: i32) -> (i32, i32) {
    %c0_i32 = arith.constant 0 : i32
    %c0_i32_0 = arith.constant 0 : i32
    %c0_i32_1 = arith.constant 0 : i32
    return %c0_i32, %c0_i32_0 : i32, i32
  }
  func.func @transform_13(%arg0: i32) -> (i32, i32) {
    %c0_i32 = arith.constant 0 : i32
    %c0_i32_0 = arith.constant 0 : i32
    %c0_i32_1 = arith.constant 0 : i32
    return %c0_i32, %c0_i32_0 : i32, i32
  }
  func.func @transform_14(%arg0: i32) -> (i32, i32) {
    %c0_i32 = arith.constant 0 : i32
    %c0_i32_0 = arith.constant 0 : i32
    %c0_i32_1 = arith.constant 0 : i32
    return %c0_i32, %c0_i32_0 : i32, i32
  }
  func.func @transform_15(%arg0: i32) -> (i32, i32) {
    %c0_i32 = arith.constant 0 : i32
    %c0_i32_0 = arith.constant 0 : i32
    %c0_i32_1 = arith.constant 0 : i32
    return %c0_i32, %c0_i32_0 : i32, i32
  }
  func.func @transform_16(%arg0: i32) -> (i32, i32) {
    %c0_i32 = arith.constant 0 : i32
    %c0_i32_0 = arith.constant 0 : i32
    %c0_i32_1 = arith.constant 0 : i32
    return %c0_i32, %c0_i32_0 : i32, i32
  }
  func.func @transform_17(%arg0: i32) -> (i32, i32) {
    %c0_i32 = arith.constant 0 : i32
    %c0_i32_0 = arith.constant 0 : i32
    %c0_i32_1 = arith.constant 0 : i32
    return %c0_i32, %c0_i32_0 : i32, i32
  }
  func.func @transform_18(%arg0: i32) -> (i32, i32) {
    %c0_i32 = arith.constant 0 : i32
    %c0_i32_0 = arith.constant 0 : i32
    %c0_i32_1 = arith.constant 0 : i32
    return %c0_i32, %c0_i32_0 : i32, i32
  }
  func.func @transform_19(%arg0: i32) -> (i32, i32) {
    %c0_i32 = arith.constant 0 : i32
    %c0_i32_0 = arith.constant 0 : i32
    %c0_i32_1 = arith.constant 0 : i32
    return %c0_i32, %c0_i32_0 : i32, i32
  }
  func.func @transform_20(%arg0: i32) -> (i32, i32) {
    %c0_i32 = arith.constant 0 : i32
    %c0_i32_0 = arith.constant 0 : i32
    %c0_i32_1 = arith.constant 0 : i32
    return %c0_i32, %c0_i32_0 : i32, i32
  }
  func.func @transform_21(%arg0: i32) -> (i32, i32) {
    %c0_i32 = arith.constant 0 : i32
    %c0_i32_0 = arith.constant 0 : i32
    %c0_i32_1 = arith.constant 0 : i32
    return %c0_i32, %c0_i32_0 : i32, i32
  }
  func.func @transform_22(%arg0: i32) -> (i32, i32) {
    %c0_i32 = arith.constant 0 : i32
    %c0_i32_0 = arith.constant 0 : i32
    %c0_i32_1 = arith.constant 0 : i32
    return %c0_i32, %c0_i32_0 : i32, i32
  }
  func.func @transform_23(%arg0: i32) -> (i32, i32) {
    %c0_i32 = arith.constant 0 : i32
    %c0_i32_0 = arith.constant 0 : i32
    %c0_i32_1 = arith.constant 0 : i32
    return %c0_i32, %c0_i32_0 : i32, i32
  }
  func.func @transform_24(%arg0: i32) -> (i32, i32) {
    %c0_i32 = arith.constant 0 : i32
    %c0_i32_0 = arith.constant 0 : i32
    %c0_i32_1 = arith.constant 0 : i32
    return %c0_i32, %c0_i32_0 : i32, i32
  }
  func.func @transform_25(%arg0: i32) -> (i32, i32) {
    %c0_i32 = arith.constant 0 : i32
    %c0_i32_0 = arith.constant 0 : i32
    %c0_i32_1 = arith.constant 0 : i32
    return %c0_i32, %c0_i32_0 : i32, i32
  }
  func.func @transform_26(%arg0: i32) -> (i32, i32) {
    %c0_i32 = arith.constant 0 : i32
    %c0_i32_0 = arith.constant 0 : i32
    %c0_i32_1 = arith.constant 0 : i32
    return %c0_i32, %c0_i32_0 : i32, i32
  }
  func.func @transform_27(%arg0: i32) -> (i32, i32) {
    %c0_i32 = arith.constant 0 : i32
    %c0_i32_0 = arith.constant 0 : i32
    %c0_i32_1 = arith.constant 0 : i32
    return %c0_i32, %c0_i32_0 : i32, i32
  }
  func.func @transform_28(%arg0: i32) -> (i32, i32) {
    %c0_i32 = arith.constant 0 : i32
    %c0_i32_0 = arith.constant 0 : i32
    %c0_i32_1 = arith.constant 0 : i32
    return %c0_i32, %c0_i32_0 : i32, i32
  }
  func.func @transform_29(%arg0: i32) -> (i32, i32) {
    %c0_i32 = arith.constant 0 : i32
    %c0_i32_0 = arith.constant 0 : i32
    %c0_i32_1 = arith.constant 0 : i32
    return %c0_i32, %c0_i32_0 : i32, i32
  }
  func.func @transform_30(%arg0: i32) -> (i32, i32) {
    %c0_i32 = arith.constant 0 : i32
    %c0_i32_0 = arith.constant 0 : i32
    %c0_i32_1 = arith.constant 0 : i32
    return %c0_i32, %c0_i32_0 : i32, i32
  }
  func.func @transform_31(%arg0: i32) -> (i32, i32) {
    %c0_i32 = arith.constant 0 : i32
    %c0_i32_0 = arith.constant 0 : i32
    %c0_i32_1 = arith.constant 0 : i32
    return %c0_i32, %c0_i32_0 : i32, i32
  }
  func.func @transform_32(%arg0: i32) -> (i32, i32) {
    %c0_i32 = arith.constant 0 : i32
    %c0_i32_0 = arith.constant 0 : i32
    %c0_i32_1 = arith.constant 0 : i32
    return %c0_i32, %c0_i32_0 : i32, i32
  }
}

</mosaic_0001>

<bundles_post_ra>
// kernel: vae_conv_forward.1
= control target key start
LH: loop header
LB: loop body
LE: loop exit
PB: predicated region body
PF: predicated region fallthrough
CT: control target
= control target key end

     0   :  { %s4543_s6 = smov 1   ;;  %s4544_s10 = smov 2   ;;  %s6676_s0 = inlined_call_operand.smem [shape: u32[33], index: -1, kind: input, shape index: {}] }
   0x1   :  { %s4624_s5 = sld [smem:[%s6676_s0]]   ;;  %s4545_s14 = smov 3  }
   0x2   :  { %s4629_s9 = sld [smem:[%s6676_s0 + %s4543_s6]]   ;;  %s4546_s18 = smov 4  }
   0x3   :  { %s4634_s13 = sld [smem:[%s6676_s0 + %s4544_s10]]   ;;  %s4547_s22 = smov 5  }
   0x4   :  { %s4639_s17 = sld [smem:[%s6676_s0 + %s4545_s14]]   ;;  %s4548_s26 = smov 6  }
   0x5   :  { %s4644_s21 = sld [smem:[%s6676_s0 + %s4546_s18]]   ;;  %s4549_s30 = smov 7  }
   0x6   :  { %s4649_s25 = sld [smem:[%s6676_s0 + %s4547_s22]]   ;;  %s4550_s4 = smov 8  }
   0x7   :  { %s4654_s29 = sld [smem:[%s6676_s0 + %s4548_s26]]   ;;  %s4551_s10 = smov 9  }
   0x8   :  { %6695 = sst [smem:[#allocation6_spill]] %s4629_s9  ;;  %s4552_s15 = smov 10  }
   0x9   :  { %s4659_s3 = sld [smem:[%s6676_s0 + %s4549_s30]]   ;;  %s4553_s20 = smov 11  }
   0xa   :  { %s4664_s8 = sld [smem:[%s6676_s0 + %s4550_s4]]   ;;  %s4554_s26 = smov 12  }
   0xb   :  { %s4669_s14 = sld [smem:[%s6676_s0 + %s4551_s10]]   ;;  %s4555_s1 = smov 13  }
   0xc   :  { %s4674_s19 = sld [smem:[%s6676_s0 + %s4552_s15]]   ;;  %s4556_s7 = smov 14  }
   0xd   :  { %s4679_s24 = sld [smem:[%s6676_s0 + %s4553_s20]]   ;;  %s4557_s15 = smov 15  }
   0xe   :  { %s4684_s30 = sld [smem:[%s6676_s0 + %s4554_s26]]   ;;  %s4558_s22 = smov 16  }
   0xf   :  { %s4689_s6 = sld [smem:[%s6676_s0 + %s4555_s1]]   ;;  %s4559_s28 = smov 17  }
  0x10   :  { %s4694_s12 = sld [smem:[%s6676_s0 + %s4556_s7]]   ;;  %s4560_s7 = smov 18  }
  0x11   :  { %s4699_s20 = sld [smem:[%s6676_s0 + %s4557_s15]]   ;;  %s4561_s15 = smov 19  }
  0x12   :  { %s4704_s27 = sld [smem:[%s6676_s0 + %s4558_s22]]   ;;  %s4562_s22 = smov 20  }
  0x13   :  { %s4709_s4 = sld [smem:[%s6676_s0 + %s4559_s28]]   ;;  %s4563_s28 = smov 21  }
  0x14   :  { %s4714_s9 = sld [smem:[%s6676_s0 + %s4560_s7]]   ;;  %s4564_s7 = smov 22  }
  0x15   :  { %6696 = sst [smem:[#allocation7_spill]] %s4689_s6  ;;  %s4574_s23 = smov 32  }
  0x16   :  { %s4724_s6 = sld [smem:[%s6676_s0 + %s4562_s22]]   ;;  %s4566_s22 = smov 24  }
  0x17   :  { %6697 = sst [smem:[#allocation8_spill]] %s4699_s20 }
  0x18   :  { %s4719_s20 = sld [smem:[%s6676_s0 + %s4561_s15]]   ;;  %s4565_s15 = smov 23  }
  0x19   :  { %6698 = sst [smem:[#allocation9_spill]] %s4709_s4 }
  0x1a   :  { %6699 = sst [smem:[#allocation10_spill]] %s4714_s9 }
  0x1b   :  { %s4729_s4 = sld [smem:[%s6676_s0 + %s4563_s28]]   ;;  %s4567_s28 = smov 25  }
  0x1c   :  { %6701 = sst [smem:[#allocation12_spill]] %s4724_s6 }
  0x1d   :  { %s4734_s9 = sld [smem:[%s6676_s0 + %s4564_s7]]   ;;  %s4568_s7 = smov 26  }
  0x1e   :  { %6700 = sst [smem:[#allocation11_spill]] %s4719_s20 }
  0x1f   :  { %s4739_s20 = sld [smem:[%s6676_s0 + %s4565_s15]]   ;;  %s4569_s15 = smov 27  }
  0x20   :  { %s4744_s6 = sld [smem:[%s6676_s0 + %s4566_s22]]   ;;  %s4570_s22 = smov 28  }
  0x21   :  { %6702 = sst [smem:[#allocation13_spill]] %s4729_s4 }
  0x22   :  { %s4749_s4 = sld [smem:[%s6676_s0 + %s4567_s28]]   ;;  %s4571_s28 = smov 29  }
  0x23   :  { %6703 = sst [smem:[#allocation14_spill]] %s4734_s9 }
  0x24   :  { %s4754_s9 = sld [smem:[%s6676_s0 + %s4568_s7]]   ;;  %s4572_s7 = smov 30  }
  0x25   :  { %6704 = sst [smem:[#allocation15_spill]] %s4739_s20 }
  0x26   :  { %6705 = sst [smem:[#allocation16_spill]] %s4744_s6 }
  0x27   :  { %s4759_s20 = sld [smem:[%s6676_s0 + %s4569_s15]]   ;;  %s4573_s15 = smov 31  }
  0x28   :  { %6706 = sst [smem:[#allocation17_spill]] %s4749_s4 }
  0x29   :  { %s4764_s6 = sld [smem:[%s6676_s0 + %s4570_s22]]  }
  0x2a   :  { %6707 = sst [smem:[#allocation18_spill]] %s4754_s9 }
  0x2b   :  { %s4769_s4 = sld [smem:[%s6676_s0 + %s4571_s28]]  }
  0x2c   :  { %s4774_s9 = sld [smem:[%s6676_s0 + %s4572_s7]]  }
  0x2d   :  { %6708 = sst [smem:[#allocation19_spill]] %s4759_s20 }
  0x2e   :  { %s3478_s20 = sld [smem:[%s6676_s0 + %s4573_s15]]  }
  0x2f   :  { %6709 = sst [smem:[#allocation20_spill]] %s4764_s6 }
  0x30   :  { %s4782_s6 = sld [smem:[%s6676_s0 + %s4574_s23]]  }
  0x34   :  { %v70_v0 = vstv %s3478_s20 }
  0x35   :  { %71 = vst [vmem:[#allocation2] sm:$0x1] %v70_v0 }
  0x36   :  { %v137_v1 = vld [vmem:[%s4624_s5] sm:$0xf]  ;;  %s4575_s28 = smov 1  }
  0x37   :  { %v159_v2 = vrot.slane %v137_v1, 1  ;;  %v193_v3 = vrot.slane %v137_v1, 3 }
  0x39   :  { %160 = vrot.lane.b32.xlu0 %v159_v2, %s4575_s28  ;;  %194 = vrot.lane.b32.xlu1 %v193_v3, %s4575_s28 }
  0x3a   :  { %72 = vsyncpa [#allocation4], 0  ;;  %v176_v4 = vrot.slane %v137_v1, 2  ;;  %vm142_vm0 = vcmask 7168   ;;  %vm144_vm1 = vcmask 556032   ;;  %s4576_s0 = smov 126  }
  0x3b   :  { %s4577_s5 = smov 127   ;;  %vm155_vm2 = vcmask 1040384   ;;  %vm157_vm3 = vcmask 1041408   ;;  %s4578_s20 = smov 67   ;;  %vm249_vm4 = vcmask 1042432   ;;  %v228_v39 = vld [vmem:[%s4634_s13] sm:$0xff] }
  0x3c   :  { %s4579_s1 = smov 6   ;;  %s4580_s2 = smov 73   ;;  %vm242_vm5 = vcmask 23552   ;;  %v230_v40 = vld [vmem:[%s4639_s17] sm:$0xff]  ;;  %v231_v41 = vld [vmem:[%s4639_s17 + $0x8] sm:$0xff]  ;;  %v4581_v42 = vmov 0  }
  0x3d   :  { %3602 = vset.pattern.permute.xlu1 %v4581_v42  ;;  %3601 = vset.pattern.permute.xlu0 %v4581_v42  ;;  %v229_v43 = vld [vmem:[%s4634_s13 + $0x8] sm:$0xff]  ;;  %vm222_vm6 = vcmask 547840   ;;  %vm224_vm7 = vcmask 48128   ;;  %vm226_vm8 = vcmask 596992   ;;  %s4582_s13 = smov 62   ;;  %s4583_s17 = smov 56  }
  0x3e   :  { %3718 = vset.pattern.permute.xlu2 %v4581_v42  ;;  %s4584_s7 = smov 123   ;;  %vm369_vm9 = vcmask 506880   ;;  %vm418_vm10 = vcmask 457728   ;;  %vm516_vm11 = vcmask 392192   ;;  %s4587_s10 = smov 76   ;;  %vm665_vm12 = vcmask 130048  }
  0x3f   :  { %vm645_vm13 = vcmask 64512   ;;  %vm648_vm14 = vcmask 621568   ;;  %s4590_s11 = smov 121   ;;  %vm778_vm15 = vcmask 498688   ;;  %s4591_s15 = smov 69  }
  0x40   :  { %s4592_s16 = smov 10   ;;  %s4593_s18 = smov 79  }
  0x41   :  { %177 = vrot.lane.b32.xlu0 %v176_v4, %s4575_s28  ;;  %139 = vrot.lane.b32.xlu1 %v137_v1, %s4575_s28  ;;  %s4596_s23 = smov 89   ;;  %s4597_s22 = smov 59  }
  0x42   :  { %s4598_s26 = smov 99  }
  0xab   :  { %v161_v5 = vpop.permute.xlu0 %160  ;;  %v195_v6 = vpop.permute.xlu1 %194 }
  0xac   :  { %v163_v7 = vsel %vm142_vm0, 0.0, %v161_v5  ;;  %v197_v11 = vsel %vm142_vm0, 0.0, %v195_v6 }
  0xad   :  { %v164_v8 = vsel %vm144_vm1, %v163_v7, 0.0  ;;  %v198_v12 = vsel %vm144_vm1, %v197_v11, 0.0 }
  0xae   :  { %v170_v9 = vrot.slane %v164_v8, 6  ;;  %v166_v10 = vrot.slane %v164_v8, 7  ;;  %v204_v16 = vrot.slane %v198_v12, 6  ;;  %v200_v23 = vrot.slane %v198_v12, 7 }
  0xb0   :  { %171 = vrot.lane.b32.xlu0 %v170_v9, %s4576_s0  ;;  %167 = vrot.lane.b32.xlu2 %v166_v10, %s4577_s5 }
  0xb3   :  { %v178_v13 = vpop.permute.xlu0 %177  ;;  %v140_v14 = vpop.permute.xlu1 %139 }
  0xb4   :  { %v180_v15 = vsel %vm142_vm0, 0.0, %v178_v13  ;;  %v143_v20 = vsel %vm142_vm0, 0.0, %v140_v14 }
  0xb5   :  { %v181_v17 = vsel %vm144_vm1, %v180_v15, 0.0  ;;  %v145_v21 = vsel %vm144_vm1, %v143_v20, 0.0 }
  0xb6   :  { %v187_v18 = vrot.slane %v181_v17, 6  ;;  %v183_v19 = vrot.slane %v181_v17, 7  ;;  %v147_v22 = vrot.slane %v145_v21, 7  ;;  %v151_v24 = vrot.slane %v145_v21, 6 }
  0xb8   :  { %205 = vrot.lane.b32.xlu0 %v204_v16, %s4576_s0  ;;  %188 = vrot.lane.b32.xlu1 %v187_v18, %s4576_s0 }
  0xb9   :  { %184 = vrot.lane.b32.xlu2 %v183_v19, %s4577_s5 }
  0xc0   :  { %148 = vrot.lane.b32.xlu1 %v147_v22, %s4577_s5 }
  0xc1   :  { %201 = vrot.lane.b32.xlu2 %v200_v23, %s4577_s5 }
  0xc9   :  { %152 = vrot.lane.b32.xlu2 %v151_v24, %s4576_s0 }
 0x10a   :  { %v168_v25 = vpop.permute.xlu2 %167 }
 0x10b   :  { %v174_v27 = vsel %vm155_vm2, %v164_v8, %v168_v25 }
 0x113   :  { %v185_v26 = vpop.permute.xlu2 %184 }
 0x114   :  { %v191_v31 = vsel %vm155_vm2, %v181_v17, %v185_v26 }
 0x11b   :  { %v202_v30 = vpop.permute.xlu2 %201 }
 0x11c   :  { %v208_v32 = vsel %vm155_vm2, %v198_v12, %v202_v30 }
 0x122   :  { %v172_v28 = vpop.permute.xlu0 %171 }
 0x123   :  { %v175_v29 = vsel %vm157_vm3, %v174_v27, %v172_v28  ;;  %v153_v37 = vpop.permute.xlu2 %152 }
 0x124   :  { %211 = vrot.lane.b32.xlu0 %v175_v29, %s4578_s20 }
 0x12a   :  { %v189_v33 = vpop.permute.xlu1 %188  ;;  %v206_v34 = vpop.permute.xlu0 %205 }
 0x12b   :  { %v192_v35 = vsel %vm157_vm3, %v191_v31, %v189_v33  ;;  %v209_v36 = vsel %vm157_vm3, %v208_v32, %v206_v34 }
 0x12c   :  { %215 = vrot.lane.b32.xlu1 %v192_v35, %s4579_s1  ;;  %219 = vrot.lane.b32.xlu2 %v209_v36, %s4580_s2 }
 0x12d   :  { %239 = vperm.xlu0 %3601, %v231_v41  }
 0x132   :  { %v149_v44 = vpop.permute.xlu1 %148 }
 0x133   :  { %v156_v45 = vsel %vm155_vm2, %v145_v21, %v149_v44 }
 0x134   :  { %234 = vperm.xlu1 %3602, %v230_v40   ;;  %v158_v46 = vsel %vm157_vm3, %v156_v45, %v153_v37 }
 0x186   :  { %v220_v38 = vpop.permute.xlu2 %219 }
 0x187   :  { %3486 = vmatpush.msk.msra.mxu2 %vm249_vm4, %v220_v38 }
 0x188   :  { %3487 = vmatmul.msk.f32.vlgmr.msra.gmra.mxu2 %vm242_vm5, %v228_v39 }
 0x190   :  { %3488 = vmatmul.msk.f32.gmra.mxu2 %vm242_vm5, %v229_v43 }
 0x196   :  { %v212_v47 = vpop.permute.xlu0 %211 }
 0x197   :  { %v223_v48 = vsel %vm222_vm6, %v158_v46, %v212_v47 }
 0x198   :  { %3480 = vmatpush.msk.msra.mxu0 %vm249_vm4, %v223_v48 }
 0x199   :  { %3481 = vmatmul.msk.f32.vlgmr.msra.gmra.mxu0 %vm242_vm5, %v228_v39 }
 0x19e   :  { %v216_v49 = vpop.permute.xlu1 %215 }
 0x19f   :  { %v225_v50 = vsel %vm224_vm7, %v212_v47, %v216_v49  ;;  %v240_v62 = vpop.permute.xlu0 %239 }
 0x1a0   :  { %v227_v51 = vsel %vm226_vm8, %v225_v50, %v220_v38 }
 0x1a1   :  { %3483 = vmatpush.msk.msra.mxu1 %vm249_vm4, %v227_v51  ;;  %3482 = vmatmul.msk.f32.gmra.mxu0 %vm242_vm5, %v229_v43 }
 0x1a2   :  { %3484 = vmatmul.msk.f32.vlgmr.msra.gmra.mxu1 %vm242_vm5, %v228_v39 }
 0x1a6   :  { %v235_v54 = vpop.permute.xlu1 %234 }
 0x1aa   :  { %3485 = vmatmul.msk.f32.gmra.mxu1 %vm242_vm5, %v229_v43  ;;  %vm757_vm5 = vcmask 564224  }
 0x20b   :  { %v321_v52 = vpop.f32.mrf.mxu2 }
 0x20c   :  { %v322_v63 = vadd.f32 %v321_v52, %v235_v54 }
 0x20e   :  { %v329_v4 = vmax.f32 %v322_v63, 0.0 }
 0x213   :  { %v324_v59 = vpop.f32.mrf.mxu2 }
 0x214   :  { %v325_v1 = vadd.f32 %v324_v59, %v240_v62 }
 0x216   :  { %v275_v53 = vpop.f32.mrf.mxu0  ;;  %v332_v6 = vmax.f32 %v325_v1, 0.0 }
 0x217   :  { %v276_v55 = vadd.f32 %v275_v53, %v235_v54 }
 0x219   :  { %v327_v58 = vmax.f32 %v276_v55, 0.0 }
 0x21e   :  { %v278_v61 = vpop.f32.mrf.mxu0 }
 0x21f   :  { %v298_v56 = vpop.f32.mrf.mxu1  ;;  %v279_v2 = vadd.f32 %v278_v61, %v240_v62 }
 0x220   :  { %v299_v57 = vadd.f32 %v298_v56, %v235_v54 }
 0x221   :  { %v330_v8 = vmax.f32 %v279_v2, 0.0 }
 0x222   :  { %v328_v60 = vmax.f32 %v299_v57, 0.0 }
 0x223   :  { %v3628_v13 = vpack.i.bf16 %v327_v58, %v330_v8 }
 0x224   :  { %v3603_v0 = vpack.i.bf16 %v328_v60, %v327_v58  ;;  %v3623_v9 = vpack.i.bf16 %v329_v4, %v328_v60 }
 0x226   :  { %3604 = vrot.lane.b32.xlu1 %v3603_v0, %s4582_s13 }
 0x227   :  { %v301_v3 = vpop.f32.mrf.mxu1 }
 0x228   :  { %v302_v5 = vadd.f32 %v301_v3, %v240_v62 }
 0x22a   :  { %v331_v7 = vmax.f32 %v302_v5, 0.0 }
 0x22c   :  { %v3618_v10 = vpack.i.bf16 %v332_v6, %v331_v7  ;;  %v3608_v11 = vpack.i.bf16 %v331_v7, %v330_v8  ;;  %v3613_v12 = vpack.i.bf16 %v328_v60, %v331_v7 }
 0x22e   :  { %3624 = vrot.lane.b32.xlu1 %v3623_v9, %s4583_s17  ;;  %3619 = vrot.lane.b32.xlu0 %v3618_v10, %s4583_s17 }
 0x22f   :  { %3609 = vrot.lane.b32.xlu2 %v3608_v11, %s4582_s13 }
 0x237   :  { %3614 = vrot.lane.b32.xlu2 %v3613_v12, %s4584_s7 }
 0x23f   :  { %3629 = vrot.lane.b32.xlu2 %v3628_v13, %s4575_s28 }
 0x289   :  { %v3610_v14 = vpop.permute.xlu2 %3609 }
 0x28a   :  { %v3612_v15 = vunpack.i.h.bf16 %v3610_v14  ;;  %v3611_v16 = vunpack.i.l.bf16 %v3610_v14 }
 0x28c   :  { %v371_v22 = vsel %vm369_vm9, %v3611_v16, %v3612_v15 }
 0x28d   :  { %v375_v27 = vsel %vm142_vm0, 0.0, %v371_v22 }
 0x28e   :  { %v377_v31 = vsel %vm144_vm1, %v375_v27, 0.0 }
 0x291   :  { %v3615_v17 = vpop.permute.xlu2 %3614 }
 0x292   :  { %v3617_v18 = vunpack.i.h.bf16 %v3615_v17  ;;  %v3616_v19 = vunpack.i.l.bf16 %v3615_v17 }
 0x294   :  { %v394_v20 = vsel %vm142_vm0, 0.0, %v3617_v18  ;;  %v395_v21 = vsel %vm142_vm0, 0.0, %v3616_v19 }
 0x295   :  { %v4842_v23 = vsel %vm144_vm1, %v395_v21, 0.0  ;;  %v396_v24 = vsel %vm144_vm1, %v394_v20, 0.0  ;;  %v510_v21 = vld [vmem:[%s4649_s25] sm:$0xff]  ;;  %s4586_s25 = smov 68  }
 0x296   :  { %v3708_v25 = vpack.i.bf16 %v396_v24, %v4842_v23 }
 0x298   :  { %v3605_v26 = vpop.permute.xlu1 %3604 }
 0x299   :  { %v3607_v28 = vunpack.i.h.bf16 %v3605_v26  ;;  %v3606_v29 = vunpack.i.l.bf16 %v3605_v26  ;;  %v3630_v41 = vpop.permute.xlu2 %3629 }
 0x29a   :  { %v3632_v46 = vunpack.i.h.bf16 %v3630_v41  ;;  %v3631_v47 = vunpack.i.l.bf16 %v3630_v41 }
 0x29b   :  { %v370_v30 = vsel %vm369_vm9, %v3606_v29, %v3607_v28 }
 0x29c   :  { %v374_v32 = vsel %vm142_vm0, 0.0, %v370_v30  ;;  %v341_v53 = vsel %vm142_vm0, 0.0, %v3632_v46  ;;  %v342_v54 = vsel %vm142_vm0, 0.0, %v3631_v47 }
 0x29d   :  { %v376_v33 = vsel %vm144_vm1, %v374_v32, 0.0  ;;  %v4866_v55 = vsel %vm144_vm1, %v341_v53, 0.0  ;;  %v4869_v56 = vsel %vm144_vm1, %v342_v54, 0.0  ;;  %v509_v53 = vld [vmem:[%s4644_s21] sm:$0xff]  ;;  %s4585_s21 = smov 8  }
 0x29e   :  { %v3643_v34 = vpack.i.bf16 %v376_v33, %v377_v31  ;;  %v3663_v57 = vpack.i.bf16 %v4866_v55, %v4869_v56 }
 0x2a0   :  { %v3625_v35 = vpop.permute.xlu1 %3624  ;;  %v3620_v36 = vpop.permute.xlu0 %3619  ;;  %3644 = vrot.lane.b32.xlu1 %v3643_v34, %s4577_s5  ;;  %3634 = vrot.lane.b32.xlu0 %v3643_v34, %s4576_s0 }
 0x2a1   :  { %v3627_v37 = vunpack.i.h.bf16 %v3625_v35  ;;  %v3626_v38 = vunpack.i.l.bf16 %v3625_v35  ;;  %v3622_v39 = vunpack.i.h.bf16 %v3620_v36  ;;  %v3621_v40 = vunpack.i.l.bf16 %v3620_v36 }
 0x2a3   :  { %v419_v42 = vsel %vm418_vm10, %v3626_v38, %v3627_v37  ;;  %v420_v43 = vsel %vm418_vm10, %v3621_v40, %v3622_v39 }
 0x2a4   :  { %v424_v44 = vsel %vm142_vm0, 0.0, %v420_v43  ;;  %v423_v45 = vsel %vm142_vm0, 0.0, %v419_v42 }
 0x2a5   :  { %v426_v48 = vsel %vm144_vm1, %v424_v44, 0.0  ;;  %v425_v49 = vsel %vm144_vm1, %v423_v45, 0.0 }
 0x2a6   :  { %v3648_v50 = vpack.i.bf16 %v426_v48, %v4842_v23  ;;  %v3638_v51 = vpack.i.bf16 %v425_v49, %v396_v24  ;;  %v3713_v52 = vpack.i.bf16 %v425_v49, %v426_v48 }
 0x2a8   :  { %3649 = vrot.lane.b32.xlu2 %v3648_v50, %s4576_s0  ;;  %3654 = vrot.lane.b32.xlu1 %v3648_v50, %s4577_s5 }
 0x2a9   :  { %3639 = vrot.lane.b32.xlu0 %v3638_v51, %s4576_s0 }
 0x2b0   :  { %3659 = vrot.lane.b32.xlu2 %v3638_v51, %s4577_s5 }
 0x2b1   :  { %3664 = vrot.lane.b32.xlu0 %v3663_v57, %s4576_s0 }
 0x2b8   :  { %3669 = vrot.lane.b32.xlu2 %v3663_v57, %s4577_s5 }
 0x302   :  { %v3650_v60 = vpop.permute.xlu2 %3649 }
 0x303   :  { %v3652_v62 = vunpack.i.h.bf16 %v3650_v60  ;;  %v3651_v63 = vunpack.i.l.bf16 %v3650_v60 }
 0x30a   :  { %v3660_v5 = vpop.permute.xlu2 %3659 }
 0x30b   :  { %v3662_v7 = vunpack.i.h.bf16 %v3660_v5  ;;  %v3661_v10 = vunpack.i.l.bf16 %v3660_v5 }
 0x312   :  { %v3645_v58 = vpop.permute.xlu1 %3644  ;;  %v3635_v59 = vpop.permute.xlu0 %3634 }
 0x313   :  { %3684 = vrot.lane.b32.xlu0 %v3645_v58, %s4578_s20  ;;  %v3670_v12 = vpop.permute.xlu2 %3669 }
 0x314   :  { %v3671_v36 = vunpack.i.l.bf16 %v3670_v12  ;;  %v3672_v40 = vunpack.i.h.bf16 %v3670_v12 }
 0x31a   :  { %v3655_v4 = vpop.permute.xlu1 %3654 }
 0x31b   :  { %v3640_v61 = vpop.permute.xlu0 %3639  ;;  %3689 = vrot.lane.b32.xlu0 %v3643_v34, %s4578_s20  ;;  %v3657_v6 = vunpack.i.h.bf16 %v3655_v4  ;;  %v3656_v9 = vunpack.i.l.bf16 %v3655_v4 }
 0x31c   :  { %v3642_v0 = vunpack.i.h.bf16 %v3640_v61  ;;  %v3641_v1 = vunpack.i.l.bf16 %v3640_v61 }
 0x31d   :  { %v3703_v8 = vpack.i.bf16 %v3662_v7, %v3657_v6  ;;  %v3693_v11 = vpack.i.bf16 %v3661_v10, %v3656_v9 }
 0x31e   :  { %v3698_v2 = vpack.i.bf16 %v3642_v0, %v3652_v62  ;;  %v3673_v3 = vpack.i.bf16 %v3641_v1, %v3651_v63 }
 0x320   :  { %3699 = vrot.lane.b32.xlu2 %v3698_v2, %s4580_s2  ;;  %3674 = vrot.lane.b32.xlu1 %v3673_v3, %s4579_s1 }
 0x323   :  { %3709 = vrot.lane.b32.xlu0 %v3708_v25, %s4579_s1  ;;  %v3665_v19 = vpop.permute.xlu0 %3664 }
 0x324   :  { %v3666_v23 = vunpack.i.l.bf16 %v3665_v19  ;;  %v3667_v30 = vunpack.i.h.bf16 %v3665_v19 }
 0x328   :  { %3704 = vrot.lane.b32.xlu2 %v3703_v8, %s4580_s2  ;;  %3679 = vrot.lane.b32.xlu1 %v3635_v59, %s4578_s20  ;;  %s4599_s20 = smov 49  }
 0x330   :  { %3694 = vrot.lane.b32.xlu1 %v3693_v11, %s4579_s1  ;;  %513 = vperm.xlu2 %3718, %v510_v21   ;;  %s4600_s1 = smov 20  }
 0x338   :  { %3714 = vrot.lane.b32.xlu1 %v3713_v52, %s4580_s2  ;;  %s6715_s2 = sld [smem:[#allocation6_spill]] }
 0x37a   :  { %v3700_v13 = vpop.permute.xlu2 %3699 }
 0x37b   :  { %v3701_v14 = vunpack.i.l.bf16 %v3700_v13  ;;  %v3702_v15 = vunpack.i.h.bf16 %v3700_v13 }
 0x37d   :  { %570 = vmatpush.msrb.mxu1 %v3701_v14 }
 0x37f   :  { %571 = vmatpush.msrb.mxu1 %v3702_v15 }
 0x382   :  { %v3705_v16 = vpop.permute.xlu2 %3704 }
 0x383   :  { %v3706_v17 = vunpack.i.l.bf16 %v3705_v16  ;;  %v3707_v18 = vunpack.i.h.bf16 %v3705_v16 }
 0x385   :  { %572 = vmatpush.msrb.mxu1 %v3706_v17  ;;  %v3685_v20 = vpop.permute.xlu0 %3684 }
 0x386   :  { %v3686_v31 = vunpack.i.l.bf16 %v3685_v20  ;;  %v3687_v37 = vunpack.i.h.bf16 %v3685_v20 }
 0x387   :  { %573 = vmatpush.msrb.mxu1 %v3707_v18 }
 0x388   :  { %v494_v42 = vsel %vm222_vm6, %v3671_v36, %v3686_v31  ;;  %v493_v47 = vsel %vm222_vm6, %v3672_v40, %v3687_v37 }
 0x38a   :  { %v514_v1 = vpop.permute.xlu2 %513 }
 0x38d   :  { %v3690_v25 = vpop.permute.xlu0 %3689 }
 0x38e   :  { %v3691_v41 = vunpack.i.l.bf16 %v3690_v25  ;;  %v3692_v44 = vunpack.i.h.bf16 %v3690_v25 }
 0x390   :  { %v492_v49 = vsel %vm222_vm6, %v4869_v56, %v3691_v41  ;;  %v491_v54 = vsel %vm222_vm6, %v4866_v55, %v3692_v44 }
 0x392   :  { %v3675_v22 = vpop.permute.xlu1 %3674 }
 0x393   :  { %v3677_v26 = vunpack.i.h.bf16 %v3675_v22  ;;  %v3676_v27 = vunpack.i.l.bf16 %v3675_v22 }
 0x395   :  { %v3710_v48 = vpop.permute.xlu0 %3709 }
 0x396   :  { %v3711_v57 = vunpack.i.l.bf16 %v3710_v48  ;;  %v3712_v56 = vunpack.i.h.bf16 %v3710_v48 }
 0x398   :  { %v498_v62 = vsel %vm224_vm7, %v3691_v41, %v3711_v57  ;;  %v497_v0 = vsel %vm224_vm7, %v3692_v44, %v3712_v56  ;;  %v652_v56 = vld [vmem:[%s4654_s29 + $0x8] sm:$0xff] }
 0x39a   :  { %v3680_v24 = vpop.permute.xlu1 %3679 }
 0x39b   :  { %v3682_v28 = vunpack.i.h.bf16 %v3680_v24  ;;  %v3681_v29 = vunpack.i.l.bf16 %v3680_v24 }
 0x39d   :  { %v496_v32 = vsel %vm222_vm6, %v3666_v23, %v3681_v29  ;;  %v502_v33 = vsel %vm224_vm7, %v3681_v29, %v3676_v27  ;;  %v501_v34 = vsel %vm224_vm7, %v3682_v28, %v3677_v26  ;;  %v495_v38 = vsel %vm222_vm6, %v3667_v30, %v3682_v28 }
 0x39e   :  { %530 = vmatpush.msra.mxu3 %v496_v32  ;;  %v508_v35 = vsel %vm226_vm8, %v502_v33, %v3701_v14  ;;  %v507_v39 = vsel %vm226_vm8, %v501_v34, %v3702_v15  ;;  %v653_v32 = vld [vmem:[%s4659_s3] sm:$0xff]  ;;  %vm891_vm6 = vcmask 261120  }
 0x39f   :  { %550 = vmatpush.msrb.mxu0 %v508_v35 }
 0x3a0   :  { %531 = vmatpush.msra.mxu3 %v495_v38 }
 0x3a1   :  { %551 = vmatpush.msrb.mxu0 %v507_v39  ;;  %v654_v39 = vld [vmem:[%s4659_s3 + $0x8] sm:$0xff]  ;;  %s4589_s3 = smov 53  }
 0x3a2   :  { %v3695_v43 = vpop.permute.xlu1 %3694  ;;  %532 = vmatpush.msra.mxu3 %v494_v42 }
 0x3a3   :  { %v3697_v45 = vunpack.i.h.bf16 %v3695_v43  ;;  %v3696_v46 = vunpack.i.l.bf16 %v3695_v43 }
 0x3a4   :  { %533 = vmatpush.msra.mxu3 %v493_v47  ;;  %v651_v47 = vld [vmem:[%s4654_s29] sm:$0xff]  ;;  %s4588_s29 = smov 61  }
 0x3a5   :  { %v500_v50 = vsel %vm224_vm7, %v3686_v31, %v3696_v46  ;;  %v499_v51 = vsel %vm224_vm7, %v3687_v37, %v3697_v45  ;;  %vm874_vm7 = vcmask 80896  }
 0x3a6   :  { %534 = vmatpush.msra.mxu3 %v492_v49  ;;  %v506_v52 = vsel %vm226_vm8, %v500_v50, %v3706_v17  ;;  %v505_v58 = vsel %vm226_vm8, %v499_v51, %v3707_v18 }
 0x3a7   :  { %552 = vmatpush.msrb.mxu0 %v506_v52 }
 0x3a8   :  { %535 = vmatpush.msra.mxu3 %v491_v54 }
 0x3a9   :  { %553 = vmatpush.msrb.mxu0 %v505_v58  ;;  %3489 = vmatmul.msk.f32.vlgmr.msra.gmra.mxu3 %vm516_vm11, %v509_v53 }
 0x3aa   :  { %v3715_v59 = vpop.permute.xlu1 %3714 }
 0x3ab   :  { %v3716_v60 = vunpack.i.l.bf16 %v3715_v59  ;;  %v3717_v61 = vunpack.i.h.bf16 %v3715_v59 }
 0x3ad   :  { %574 = vmatpush.msrb.mxu1 %v3716_v60  ;;  %v504_v63 = vsel %vm226_vm8, %v498_v62, %v3716_v60  ;;  %v503_v55 = vsel %vm226_vm8, %v497_v0, %v3717_v61  ;;  %vm879_vm8 = vcmask 646144  }
 0x3ae   :  { %554 = vmatpush.msrb.mxu0 %v504_v63 }
 0x3af   :  { %575 = vmatpush.msrb.mxu1 %v3717_v61 }
 0x3b0   :  { %555 = vmatpush.msrb.mxu0 %v503_v55  ;;  %3491 = vmatmul.msk.f32.vlgmr.msrb.gmra.mxu1 %vm516_vm11, %v509_v53 }
 0x3b1   :  { %3490 = vmatmul.msk.f32.vlgmr.msrb.gmra.mxu0 %vm516_vm11, %v509_v53 }
 0x42c   :  { %v537_v2 = vpop.f32.mrf.mxu3 }
 0x42d   :  { %v538_v3 = vadd.f32 %v537_v2, %v514_v1  ;;  %v577_v4 = vpop.f32.mrf.mxu1 }
 0x42e   :  { %v557_v5 = vpop.f32.mrf.mxu0  ;;  %v578_v6 = vadd.f32 %v577_v4, %v514_v1 }
 0x42f   :  { %v580_v7 = vmax.f32 %v538_v3, 0.0  ;;  %v558_v8 = vadd.f32 %v557_v5, %v514_v1 }
 0x430   :  { %v582_v9 = vmax.f32 %v578_v6, 0.0 }
 0x431   :  { %v581_v10 = vmax.f32 %v558_v8, 0.0 }
 0x433   :  { %v3724_v11 = vpack.i.bf16 %v582_v9, %v581_v10  ;;  %605 = vrot.lane.b32.xlu1 %v581_v10, %s4584_s7  ;;  %v3719_v12 = vpack.i.bf16 %v581_v10, %v580_v7  ;;  %s6718_s7 = sld [smem:[#allocation13_spill]] }
 0x435   :  { %3725 = vrot.lane.b32.xlu2 %v3724_v11, %s4583_s17  ;;  %3720 = vrot.lane.b32.xlu0 %v3719_v12, %s4582_s13  ;;  %s6716_s13 = sld [smem:[#allocation14_spill]] }
 0x436   :  { %s6717_s17 = sld [smem:[#allocation11_spill]] }
 0x43d   :  { %584 = vrot.lane.b32.xlu0 %v580_v7, %s4575_s28 }
 0x48f   :  { %v3726_v13 = vpop.permute.xlu2 %3725 }
 0x490   :  { %v3728_v14 = vunpack.i.h.bf16 %v3726_v13  ;;  %v3727_v15 = vunpack.i.l.bf16 %v3726_v13 }
 0x492   :  { %v618_v16 = vsel %vm418_vm10, %v3727_v15, %v3728_v14  ;;  %vm1102_vm10 = vcmask 965632  }
 0x493   :  { %v620_v17 = vsel %vm142_vm0, 0.0, %v618_v16 }
 0x494   :  { %v621_v18 = vsel %vm144_vm1, %v620_v17, 0.0 }
 0x495   :  { %623 = vrot.lane.b32.xlu2 %v621_v18, %s4577_s5 }
 0x4a5   :  { %v606_v19 = vpop.permute.xlu1 %605 }
 0x4a6   :  { %v608_v23 = vsel %vm142_vm0, 0.0, %v606_v19 }
 0x4a7   :  { %v3721_v20 = vpop.permute.xlu0 %3720  ;;  %v609_v26 = vsel %vm144_vm1, %v608_v23, 0.0 }
 0x4a8   :  { %v3723_v21 = vunpack.i.h.bf16 %v3721_v20  ;;  %v3722_v22 = vunpack.i.l.bf16 %v3721_v20 }
 0x4aa   :  { %v598_v24 = vsel %vm369_vm9, %v3722_v22, %v3723_v21  ;;  %vm1003_vm9 = vcmask 482304  }
 0x4ab   :  { %v600_v25 = vsel %vm142_vm0, 0.0, %v598_v24 }
 0x4ac   :  { %v601_v27 = vsel %vm144_vm1, %v600_v25, 0.0 }
 0x4ad   :  { %v3729_v28 = vpack.i.bf16 %v609_v26, %v601_v27 }
 0x4af   :  { %v585_v29 = vpop.permute.xlu0 %584  ;;  %3730 = vrot.lane.b32.xlu1 %v3729_v28, %s4577_s5 }
 0x4b0   :  { %v587_v30 = vsel %vm142_vm0, 0.0, %v585_v29 }
 0x4b1   :  { %v588_v31 = vsel %vm144_vm1, %v587_v30, 0.0 }
 0x4b2   :  { %590 = vrot.lane.b32.xlu2 %v588_v31, %s4577_s5 }
 0x4ba   :  { %657 = vperm.xlu2 %3718, %v653_v32  }
 0x4ef   :  { %v624_v38 = vpop.permute.xlu2 %623 }
 0x4f0   :  { %v3744_v40 = vpack.i.bf16 %v621_v18, %v624_v38 }
 0x50c   :  { %v591_v44 = vpop.permute.xlu2 %590 }
 0x514   :  { %v658_v62 = vpop.permute.xlu2 %657 }
 0x521   :  { %v3731_v33 = vpop.permute.xlu1 %3730 }
 0x522   :  { %v3733_v34 = vunpack.i.h.bf16 %v3731_v33  ;;  %v3732_v35 = vunpack.i.l.bf16 %v3731_v33 }
 0x524   :  { %v3734_v36 = vpack.i.bf16 %v609_v26, %v3733_v34  ;;  %v3739_v37 = vpack.i.bf16 %v601_v27, %v3732_v35 }
 0x526   :  { %3735 = vrot.lane.b32.xlu1 %v3734_v36, %s4585_s21  ;;  %3740 = vrot.lane.b32.xlu0 %v3739_v37, %s4586_s25  ;;  %s6719_s21 = sld [smem:[#allocation15_spill]]  ;;  %s4601_s25 = smov 96  }
 0x52e   :  { %662 = vperm.xlu1 %3602, %v654_v39   ;;  %3745 = vrot.lane.b32.xlu0 %v3744_v40, %s4587_s10  ;;  %s4602_s10 = smov 112  }
 0x598   :  { %v3741_v41 = vpop.permute.xlu0 %3740  ;;  %v3736_v45 = vpop.permute.xlu1 %3735 }
 0x599   :  { %v3743_v42 = vunpack.i.h.bf16 %v3741_v41  ;;  %v3742_v43 = vunpack.i.l.bf16 %v3741_v41  ;;  %v3737_v49 = vunpack.i.l.bf16 %v3736_v45  ;;  %v3738_v50 = vunpack.i.h.bf16 %v3736_v45 }
 0x59b   :  { %v644_v46 = vsel %vm144_vm1, %v591_v44, %v3742_v43  ;;  %v643_v48 = vsel %vm144_vm1, %v588_v31, %v3743_v42  ;;  %v647_v54 = vsel %vm645_vm13, %v3742_v43, %v3737_v49  ;;  %v646_v58 = vsel %vm645_vm13, %v3743_v42, %v3738_v50 }
 0x59c   :  { %686 = vmatpush.msrb.mxu2 %v644_v46  ;;  %vm819_vm1 = vcmask 433152   ;;  %vm1094_vm13 = vcmask 400384  }
 0x59e   :  { %687 = vmatpush.msrb.mxu2 %v643_v48 }
 0x59f   :  { %3492 = vmatmul.msk.f32.vlgmr.msrb.gmra.mxu2 %vm665_vm12, %v651_v47 }
 0x5a0   :  { %v3746_v51 = vpop.permute.xlu0 %3745  ;;  %v663_v6 = vpop.permute.xlu1 %662 }
 0x5a1   :  { %v3748_v52 = vunpack.i.h.bf16 %v3746_v51  ;;  %v3747_v53 = vunpack.i.l.bf16 %v3746_v51 }
 0x5a3   :  { %732 = vmatpush.msra.mxu0 %v3747_v53  ;;  %v650_v57 = vsel %vm648_vm14, %v647_v54, %v3747_v53  ;;  %v649_v59 = vsel %vm648_vm14, %v646_v58, %v3748_v52  ;;  %vm992_vm14 = vcmask 728064  }
 0x5a4   :  { %709 = vmatpush.msrb.mxu3 %v650_v57 }
 0x5a5   :  { %733 = vmatpush.msra.mxu0 %v3748_v52 }
 0x5a6   :  { %710 = vmatpush.msrb.mxu3 %v649_v59  ;;  %3496 = vmatmul.msk.f32.vlgmr.msra.gmra.mxu0 %vm665_vm12, %v651_v47 }
 0x5a7   :  { %3493 = vmatmul.msk.f32.gmra.mxu2 %vm665_vm12, %v652_v56  ;;  %3494 = vmatmul.msk.f32.vlgmr.msrb.gmra.mxu3 %vm665_vm12, %v651_v47 }
 0x5ae   :  { %3497 = vmatmul.msk.f32.gmra.mxu0 %vm665_vm12, %v652_v56 }
 0x5af   :  { %3495 = vmatmul.msk.f32.gmra.mxu3 %vm665_vm12, %v652_v56 }
 0x622   :  { %v689_v60 = vpop.f32.mrf.mxu2 }
 0x623   :  { %v735_v61 = vpop.f32.mrf.mxu0  ;;  %v690_v63 = vadd.f32 %v689_v60, %v658_v62 }
 0x624   :  { %v736_v17 = vadd.f32 %v735_v61, %v658_v62 }
 0x625   :  { %v741_v1 = vmax.f32 %v690_v63, 0.0 }
 0x626   :  { %v743_v18 = vmax.f32 %v736_v17, 0.0 }
 0x62a   :  { %v712_v0 = vpop.f32.mrf.mxu3  ;;  %v692_v3 = vpop.f32.mrf.mxu2 }
 0x62b   :  { %v713_v55 = vadd.f32 %v712_v0, %v658_v62  ;;  %v738_v4 = vpop.f32.mrf.mxu0  ;;  %v693_v7 = vadd.f32 %v692_v3, %v663_v6 }
 0x62c   :  { %v739_v8 = vadd.f32 %v738_v4, %v663_v6 }
 0x62d   :  { %v742_v2 = vmax.f32 %v713_v55, 0.0  ;;  %v744_v11 = vmax.f32 %v693_v7, 0.0 }
 0x62e   :  { %v746_v12 = vmax.f32 %v739_v8, 0.0 }
 0x62f   :  { %v3749_v5 = vpack.i.bf16 %v742_v2, %v741_v1  ;;  %v3774_v19 = vpack.i.bf16 %v741_v1, %v744_v11  ;;  %v3764_v20 = vpack.i.bf16 %v743_v18, %v742_v2 }
 0x631   :  { %3750 = vrot.lane.b32.xlu1 %v3749_v5, %s4588_s29 }
 0x632   :  { %v715_v9 = vpop.f32.mrf.mxu3 }
 0x633   :  { %v716_v10 = vadd.f32 %v715_v9, %v663_v6 }
 0x635   :  { %v745_v13 = vmax.f32 %v716_v10, 0.0  ;;  %v884_v10 = vld [vmem:[%s4664_s8] sm:$0xff]  ;;  %s4594_s8 = smov 118  }
 0x637   :  { %v3759_v14 = vpack.i.bf16 %v746_v12, %v745_v13  ;;  %v3754_v15 = vpack.i.bf16 %v745_v13, %v744_v11  ;;  %v3769_v16 = vpack.i.bf16 %v742_v2, %v745_v13  ;;  %v885_v2 = vld [vmem:[%s4669_s14] sm:$0xff]  ;;  %s4595_s14 = smov 30  }
 0x639   :  { %3760 = vrot.lane.b32.xlu2 %v3759_v14, %s4589_s3  ;;  %3755 = vrot.lane.b32.xlu0 %v3754_v15, %s4588_s29  ;;  %s4603_s29 = smov 48  }
 0x63a   :  { %3770 = vrot.lane.b32.xlu1 %v3769_v16, %s4590_s11  ;;  %s4605_s11 = smov 80  }
 0x641   :  { %3765 = vrot.lane.b32.xlu0 %v3764_v20, %s4589_s3  ;;  %3775 = vrot.lane.b32.xlu2 %v3774_v19, %s4575_s28  ;;  %s4604_s3 = smov 32  }
 0x693   :  { %v3761_v21 = vpop.permute.xlu2 %3760 }
 0x694   :  { %v3763_v34 = vunpack.i.h.bf16 %v3761_v21  ;;  %v3762_v35 = vunpack.i.l.bf16 %v3761_v21 }
 0x696   :  { %v821_v48 = vsel %vm819_vm1, %v3762_v35, %v3763_v34 }
 0x697   :  { %v825_v54 = vsel %vm142_vm0, 0.0, %v821_v48 }
 0x698   :  { %v827_v61 = vsel %vm757_vm5, %v825_v54, 0.0 }
 0x69b   :  { %v3776_v26 = vpop.permute.xlu2 %3775 }
 0x69c   :  { %v3778_v36 = vunpack.i.h.bf16 %v3776_v26  ;;  %v3777_v38 = vunpack.i.l.bf16 %v3776_v26 }
 0x69e   :  { %v755_v49 = vsel %vm142_vm0, 0.0, %v3778_v36  ;;  %v756_v50 = vsel %vm142_vm0, 0.0, %v3777_v38 }
 0x69f   :  { %v758_v58 = vsel %vm757_vm5, %v755_v49, 0.0  ;;  %v759_v56 = vsel %vm757_vm5, %v756_v50, 0.0 }
 0x6a0   :  { %v3794_v63 = vpack.i.bf16 %v758_v58, %v759_v56 }
 0x6a3   :  { %v3751_v22 = vpop.permute.xlu1 %3750 }
 0x6a4   :  { %v3753_v23 = vunpack.i.h.bf16 %v3751_v22  ;;  %v3752_v24 = vunpack.i.l.bf16 %v3751_v22 }
 0x6a6   :  { %v779_v25 = vsel %vm778_vm15, %v3752_v24, %v3753_v23 }
 0x6a7   :  { %v783_v33 = vsel %vm142_vm0, 0.0, %v779_v25 }
 0x6a8   :  { %v785_v44 = vsel %vm757_vm5, %v783_v33, 0.0 }
 0x6ab   :  { %v3756_v27 = vpop.permute.xlu0 %3755 }
 0x6ac   :  { %v3758_v28 = vunpack.i.h.bf16 %v3756_v27  ;;  %v3757_v29 = vunpack.i.l.bf16 %v3756_v27  ;;  %v3771_v30 = vpop.permute.xlu1 %3770 }
 0x6ad   :  { %v3773_v31 = vunpack.i.h.bf16 %v3771_v30  ;;  %v3772_v32 = vunpack.i.l.bf16 %v3771_v30 }
 0x6ae   :  { %v780_v37 = vsel %vm778_vm15, %v3757_v29, %v3758_v28  ;;  %vm990_vm15 = vcmask 162816  }
 0x6af   :  { %v799_v39 = vsel %vm142_vm0, 0.0, %v3773_v31  ;;  %v800_v40 = vsel %vm142_vm0, 0.0, %v3772_v32  ;;  %v784_v41 = vsel %vm142_vm0, 0.0, %v780_v37 }
 0x6b0   :  { %v801_v42 = vsel %vm757_vm5, %v799_v39, 0.0  ;;  %v802_v43 = vsel %vm757_vm5, %v800_v40, 0.0  ;;  %v786_v45 = vsel %vm757_vm5, %v784_v41, 0.0 }
 0x6b1   :  { %v3789_v46 = vpack.i.bf16 %v801_v42, %v802_v43  ;;  %v3779_v47 = vpack.i.bf16 %v785_v44, %v786_v45 }
 0x6b3   :  { %3790 = vrot.lane.b32.xlu2 %v3789_v46, %s4577_s5  ;;  %v3766_v51 = vpop.permute.xlu0 %3765  ;;  %3780 = vrot.lane.b32.xlu0 %v3779_v47, %s4577_s5 }
 0x6b4   :  { %v3768_v52 = vunpack.i.h.bf16 %v3766_v51  ;;  %v3767_v53 = vunpack.i.l.bf16 %v3766_v51 }
 0x6b6   :  { %v820_v57 = vsel %vm819_vm1, %v3767_v53, %v3768_v52 }
 0x6b7   :  { %v824_v59 = vsel %vm142_vm0, 0.0, %v820_v57 }
 0x6b8   :  { %v826_v60 = vsel %vm757_vm5, %v824_v59, 0.0 }
 0x6b9   :  { %v3784_v62 = vpack.i.bf16 %v826_v60, %v827_v61 }
 0x6bb   :  { %3785 = vrot.lane.b32.xlu1 %v3784_v62, %s4577_s5  ;;  %3795 = vrot.lane.b32.xlu0 %v3794_v63, %s4577_s5 }
 0x6c3   :  { %3800 = vrot.lane.b32.xlu0 %v3779_v47, %s4591_s15 }
 0x6cb   :  { %3825 = vrot.lane.b32.xlu0 %v3789_v46, %s4592_s16 }
 0x70d   :  { %v3791_v55 = vpop.permute.xlu2 %3790 }
 0x725   :  { %v3781_v0 = vpop.permute.xlu0 %3780 }
 0x726   :  { %3805 = vrot.lane.b32.xlu1 %v3781_v0, %s4591_s15 }
 0x72d   :  { %v3786_v1 = vpop.permute.xlu1 %3785  ;;  %v3796_v6 = vpop.permute.xlu0 %3795 }
 0x72e   :  { %3815 = vrot.lane.b32.xlu2 %v3786_v1, %s4593_s18  ;;  %3810 = vrot.lane.b32.xlu1 %v3791_v55, %s4592_s16  ;;  %v3797_v13 = vunpack.i.l.bf16 %v3796_v6  ;;  %v3798_v16 = vunpack.i.h.bf16 %v3796_v6 }
 0x735   :  { %v3801_v11 = vpop.permute.xlu0 %3800 }
 0x736   :  { %3820 = vrot.lane.b32.xlu2 %v3784_v62, %s4593_s18  ;;  %888 = vperm.xlu1 %3602, %v885_v2   ;;  %v3802_v17 = vunpack.i.l.bf16 %v3801_v11  ;;  %v3803_v19 = vunpack.i.h.bf16 %v3801_v11 }
 0x738   :  { %v871_v21 = vsel %vm757_vm5, %v759_v56, %v3802_v17  ;;  %v870_v26 = vsel %vm757_vm5, %v758_v58, %v3803_v19 }
 0x73d   :  { %v3826_v22 = vpop.permute.xlu0 %3825 }
 0x73e   :  { %v3827_v27 = vunpack.i.l.bf16 %v3826_v22  ;;  %v3828_v31 = vunpack.i.h.bf16 %v3826_v22  ;;  %v1221_v22 = vld [vmem:[%s4674_s19 + $0x60] sm:$0xff] }
 0x740   :  { %v876_v33 = vsel %vm874_vm7, %v3802_v17, %v3827_v27  ;;  %v875_v35 = vsel %vm874_vm7, %v3803_v19, %v3828_v31  ;;  %v1223_v19 = vld [vmem:[%s4674_s19 + $0x70] sm:$0xff]  ;;  %v1217_v27 = vld [vmem:[%s4674_s19 + $0x40] sm:$0xff] }
 0x788   :  { %v3816_v3 = vpop.permute.xlu2 %3815 }
 0x789   :  { %v3817_v4 = vunpack.i.l.bf16 %v3816_v3  ;;  %v3818_v5 = vunpack.i.h.bf16 %v3816_v3 }
 0x78b   :  { %947 = vmatpush.msra.mxu2 %v3817_v4 }
 0x78d   :  { %948 = vmatpush.msra.mxu2 %v3818_v5 }
 0x790   :  { %v3821_v7 = vpop.permute.xlu2 %3820 }
 0x791   :  { %v3822_v8 = vunpack.i.l.bf16 %v3821_v7  ;;  %v3823_v9 = vunpack.i.h.bf16 %v3821_v7 }
 0x793   :  { %949 = vmatpush.msra.mxu2 %v3822_v8  ;;  %v881_v34 = vsel %vm879_vm8, %v876_v33, %v3822_v8  ;;  %v880_v36 = vsel %vm879_vm8, %v875_v35, %v3823_v9  ;;  %v1213_v33 = vld [vmem:[%s4674_s19 + $0x20] sm:$0xff]  ;;  %v1212_v35 = vld [vmem:[%s4674_s19 + $0x18] sm:$0xff] }
 0x795   :  { %950 = vmatpush.msra.mxu2 %v3823_v9 }
 0x796   :  { %3500 = vmatmul.msk.f32.vlgmr.msra.gmra.mxu2 %vm891_vm6, %v884_v10 }
 0x798   :  { %v3806_v12 = vpop.permute.xlu1 %3805 }
 0x799   :  { %v3808_v14 = vunpack.i.h.bf16 %v3806_v12  ;;  %v3807_v15 = vunpack.i.l.bf16 %v3806_v12 }
 0x79b   :  { %v873_v18 = vsel %vm757_vm5, %v3797_v13, %v3807_v15  ;;  %v872_v20 = vsel %vm757_vm5, %v3798_v16, %v3808_v14 }
 0x79c   :  { %907 = vmatpush.msra.mxu1 %v873_v18  ;;  %v1224_v18 = vld [vmem:[%s4674_s19 + $0x78] sm:$0xff] }
 0x79d   :  { %1286 = vmatpush.msra.mxu3 %v1224_v18  ;;  %v1259_v18 = vld [vmem:[%s4674_s19 + $0x190] sm:$0xff] }
 0x79e   :  { %908 = vmatpush.msra.mxu1 %v872_v20  ;;  %v1222_v20 = vld [vmem:[%s4674_s19 + $0x68] sm:$0xff] }
 0x79f   :  { %1287 = vmatpush.msra.mxu3 %v1223_v19 }
 0x7a0   :  { %v3811_v23 = vpop.permute.xlu1 %3810  ;;  %909 = vmatpush.msra.mxu1 %v871_v21 }
 0x7a1   :  { %v3813_v24 = vunpack.i.h.bf16 %v3811_v23  ;;  %v3812_v25 = vunpack.i.l.bf16 %v3811_v23  ;;  %1288 = vmatpush.msra.mxu3 %v1222_v20  ;;  %v1220_v23 = vld [vmem:[%s4674_s19 + $0x58] sm:$0xff] }
 0x7a2   :  { %910 = vmatpush.msra.mxu1 %v870_v26 }
 0x7a3   :  { %3498 = vmatmul.msk.f32.vlgmr.msra.gmra.mxu1 %vm891_vm6, %v884_v10  ;;  %v878_v28 = vsel %vm874_vm7, %v3807_v15, %v3812_v25  ;;  %v877_v29 = vsel %vm874_vm7, %v3808_v14, %v3813_v24  ;;  %1289 = vmatpush.msra.mxu3 %v1221_v22  ;;  %v1219_v24 = vld [vmem:[%s4674_s19 + $0x50] sm:$0xff]  ;;  %v1218_v25 = vld [vmem:[%s4674_s19 + $0x48] sm:$0xff] }
 0x7a4   :  { %v883_v30 = vsel %vm879_vm8, %v878_v28, %v3817_v4  ;;  %v882_v32 = vsel %vm879_vm8, %v877_v29, %v3818_v5  ;;  %v1216_v28 = vld [vmem:[%s4674_s19 + $0x38] sm:$0xff]  ;;  %v1215_v29 = vld [vmem:[%s4674_s19 + $0x30] sm:$0xff] }
 0x7a5   :  { %927 = vmatpush.msrb.mxu1 %v883_v30  ;;  %1290 = vmatpush.msra.mxu3 %v1220_v23  ;;  %v1214_v30 = vld [vmem:[%s4674_s19 + $0x28] sm:$0xff]  ;;  %v1231_v22 = vld [vmem:[%s4674_s19 + $0xb0] sm:$0xff] }
 0x7a6   :  { %v1250_v23 = vld [vmem:[%s4674_s19 + $0x148] sm:$0xff] }
 0x7a7   :  { %928 = vmatpush.msrb.mxu1 %v882_v32  ;;  %1291 = vmatpush.msra.mxu3 %v1219_v24  ;;  %v1258_v24 = vld [vmem:[%s4674_s19 + $0x188] sm:$0xff] }
 0x7a8   :  { %v889_v37 = vpop.permute.xlu1 %888 }
 0x7a9   :  { %929 = vmatpush.msrb.mxu1 %v881_v34  ;;  %1292 = vmatpush.msra.mxu3 %v1218_v25  ;;  %v1272_v34 = vld [vmem:[%s4674_s19 + $0x1f8] sm:$0xff] }
 0x7aa   :  { %1346 = vmatpush.msrb.mxu2 %v1272_v34 }
 0x7ab   :  { %930 = vmatpush.msrb.mxu1 %v880_v36  ;;  %1293 = vmatpush.msra.mxu3 %v1217_v27  ;;  %v1271_v36 = vld [vmem:[%s4674_s19 + $0x1f0] sm:$0xff] }
 0x7ac   :  { %3499 = vmatmul.msk.f32.vlgmr.msrb.gmra.mxu1 %vm891_vm6, %v884_v10  ;;  %1347 = vmatpush.msrb.mxu2 %v1271_v36  ;;  %v1277_v36 = vld [vmem:[%s4674_s19 + $0x220] sm:$0xff] }
 0x7ad   :  { %1294 = vmatpush.msra.mxu3 %v1216_v28 }
 0x7af   :  { %1295 = vmatpush.msra.mxu3 %v1215_v29  ;;  %v1230_v29 = vld [vmem:[%s4674_s19 + $0xa8] sm:$0xff] }
 0x7b1   :  { %1296 = vmatpush.msra.mxu3 %v1214_v30  ;;  %v1249_v30 = vld [vmem:[%s4674_s19 + $0x140] sm:$0xff] }
 0x7b3   :  { %1297 = vmatpush.msra.mxu3 %v1213_v33  ;;  %v1257_v33 = vld [vmem:[%s4674_s19 + $0x180] sm:$0xff] }
 0x7b5   :  { %1298 = vmatpush.msra.mxu3 %v1212_v35 }
 0x819   :  { %v952_v38 = vpop.f32.mrf.mxu2 }
 0x81a   :  { %v953_v39 = vadd.f32 %v952_v38, %v889_v37  ;;  %v1270_v38 = vld [vmem:[%s4674_s19 + $0x1e8] sm:$0xff] }
 0x81b   :  { %1348 = vmatpush.msrb.mxu2 %v1270_v38  ;;  %v1248_v38 = vld [vmem:[%s4674_s19 + $0x138] sm:$0xff] }
 0x81c   :  { %v4985_v40 = vmax.f32 %v953_v39, 0.0  ;;  %v1210_v39 = vld [vmem:[%s4674_s19 + $0x8] sm:$0xff] }
 0x81e   :  { %v1097_v41 = vrot.slane %v4985_v40, 1  ;;  %v1131_v45 = vrot.slane %v4985_v40, 6  ;;  %v1106_v61 = vrot.slane %v4985_v40, 2  ;;  %v1123_v11 = vrot.slane %v4985_v40, 5 }
 0x81f   :  { %v1138_v15 = vrot.slane %v4985_v40, 7  ;;  %v1116_v16 = vrot.slane %v4985_v40, 4 }
 0x820   :  { %1100 = vrot.lane.b32.xlu0 %v1097_v41, %s4594_s8  ;;  %v912_v42 = vpop.f32.mrf.mxu1  ;;  %v1269_v41 = vld [vmem:[%s4674_s19 + $0x1e0] sm:$0xff] }
 0x821   :  { %v913_v43 = vadd.f32 %v912_v42, %v889_v37  ;;  %1349 = vmatpush.msrb.mxu2 %v1269_v41  ;;  %v1276_v41 = vld [vmem:[%s4674_s19 + $0x218] sm:$0xff] }
 0x823   :  { %v4988_v44 = vmax.f32 %v913_v43, 0.0 }
 0x825   :  { %v983_v46 = vrot.slane %v4988_v44, 7  ;;  %v971_v47 = vrot.slane %v4988_v44, 4  ;;  %v959_v48 = vrot.slane %v4988_v44, 1  ;;  %v963_v49 = vrot.slane %v4988_v44, 2 }
 0x826   :  { %v979_v57 = vrot.slane %v4988_v44, 6  ;;  %v975_v56 = vrot.slane %v4988_v44, 5  ;;  %v967_v9 = vrot.slane %v4988_v44, 3 }
 0x827   :  { %1047 = vrot.lane.b32.xlu2 %v983_v46, %s4595_s14  ;;  %v3834_v50 = vpack.i.bf16 %v971_v47, %v1131_v45  ;;  %v3829_v51 = vpack.i.bf16 %v963_v49, %v959_v48  ;;  %v1209_v45 = vld [vmem:[%s4674_s19] sm:$0xff] }
 0x829   :  { %v932_v52 = vpop.f32.mrf.mxu1  ;;  %3835 = vrot.lane.b32.xlu0 %v3834_v50, %s4593_s18  ;;  %3830 = vrot.lane.b32.xlu1 %v3829_v51, %s4591_s15  ;;  %v1267_v50 = vld [vmem:[%s4674_s19 + $0x1d0] sm:$0xff] }
 0x82a   :  { %v933_v53 = vadd.f32 %v932_v52, %v889_v37  ;;  %v1211_v37 = vld [vmem:[%s4674_s19 + $0x10] sm:$0xff]  ;;  %v1266_v52 = vld [vmem:[%s4674_s19 + $0x1c8] sm:$0xff] }
 0x82b   :  { %1299 = vmatpush.msra.mxu3 %v1211_v37  ;;  %v1239_v51 = vld [vmem:[%s4674_s19 + $0xf0] sm:$0xff]  ;;  %v1229_v37 = vld [vmem:[%s4674_s19 + $0xa0] sm:$0xff] }
 0x82c   :  { %v956_v54 = vmax.f32 %v933_v53, 0.0  ;;  %v1238_v53 = vld [vmem:[%s4674_s19 + $0xe8] sm:$0xff] }
 0x82d   :  { %1300 = vmatpush.msra.mxu3 %v1210_v39 }
 0x82e   :  { %v5003_v58 = vrot.slane %v956_v54, 1  ;;  %v1039_v60 = vrot.slane %v956_v54, 6  ;;  %v5010_v63 = vrot.slane %v956_v54, 2  ;;  %v1031_v0 = vrot.slane %v956_v54, 5 }
 0x82f   :  { %980 = vrot.lane.b32.xlu2 %v979_v57, %s4595_s14  ;;  %v3839_v55 = vpack.i.bf16 %v956_v54, %v4988_v44  ;;  %v5016_v3 = vrot.slane %v956_v54, 3  ;;  %v3844_v4 = vpack.i.bf16 %v4985_v40, %v956_v54  ;;  %v1046_v6 = vrot.slane %v956_v54, 7  ;;  %1301 = vmatpush.msra.mxu3 %v1209_v45 }
 0x830   :  { %v3849_v59 = vpack.i.bf16 %v5003_v58, %v956_v54  ;;  %v3864_v62 = vpack.i.bf16 %v1039_v60, %v979_v57  ;;  %v3854_v1 = vpack.i.bf16 %v5010_v63, %v5003_v58  ;;  %v3874_v2 = vpack.i.bf16 %v1039_v60, %v1031_v0 }
 0x831   :  { %976 = vrot.lane.b32.xlu1 %v975_v56, %s4596_s23  ;;  %v3869_v5 = vpack.i.bf16 %v5016_v3, %v5010_v63  ;;  %v1024_v7 = vrot.slane %v956_v54, 4  ;;  %v3859_v8 = vpack.i.bf16 %v1031_v0, %v975_v56  ;;  %v3879_v12 = vpack.i.bf16 %v1123_v11, %v1031_v0  ;;  %v1265_v54 = vld [vmem:[%s4674_s19 + $0x1c0] sm:$0xff]  ;;  %v1255_v0 = vld [vmem:[%s4674_s19 + $0x170] sm:$0xff]  ;;  %1377 = vmatpush.msrb.mxu3 %v1277_v36 }
 0x832   :  { %3850 = vrot.lane.b32.xlu0 %v3849_v59, %s4594_s8  ;;  %v3884_v13 = vpack.i.bf16 %v5016_v3, %v967_v9  ;;  %v1237_v56 = vld [vmem:[%s4674_s19 + $0xe0] sm:$0xff]  ;;  %v1256_v59 = vld [vmem:[%s4674_s19 + $0x178] sm:$0xff]  ;;  %s4609_s8 = smov 45  }
 0x833   :  { %v3889_v10 = vpack.i.bf16 %v967_v9, %v1024_v7  ;;  %v3894_v14 = vpack.i.bf16 %v1024_v7, %v963_v49  ;;  %v3899_v17 = vpack.i.bf16 %v1116_v16, %v1024_v7  ;;  %v1240_v49 = vld [vmem:[%s4674_s19 + $0xf8] sm:$0xff]  ;;  %1326 = vmatpush.msra.mxu1 %v1256_v59  ;;  %v1253_v7 = vld [vmem:[%s4674_s19 + $0x160] sm:$0xff]  ;;  %1378 = vmatpush.msrb.mxu3 %v1276_v41 }
 0x834   :  { %1306 = vmatpush.msrb.mxu0 %v1240_v49  ;;  %v1233_v9 = vld [vmem:[%s4674_s19 + $0xc0] sm:$0xff]  ;;  %v1232_v16 = vld [vmem:[%s4674_s19 + $0xb8] sm:$0xff] }
 0x835   :  { %1327 = vmatpush.msra.mxu1 %v1255_v0 }
 0x836   :  { %1307 = vmatpush.msrb.mxu0 %v1239_v51 }
 0x837   :  { %1109 = vrot.lane.b32.xlu2 %v1106_v61, %s4597_s22 }
 0x838   :  { %1308 = vmatpush.msrb.mxu0 %v1238_v53  ;;  %v1228_v53 = vld [vmem:[%s4674_s19 + $0x98] sm:$0xff] }
 0x839   :  { %984 = vrot.lane.b32.xlu1 %v983_v46, %s4598_s26  ;;  %v1268_v46 = vld [vmem:[%s4674_s19 + $0x1d8] sm:$0xff] }
 0x83a   :  { %3865 = vrot.lane.b32.xlu0 %v3864_v62, %s4596_s23  ;;  %1350 = vmatpush.msrb.mxu2 %v1268_v46  ;;  %v1236_v62 = vld [vmem:[%s4674_s19 + $0xd8] sm:$0xff] }
 0x83b   :  { %1309 = vmatpush.msrb.mxu0 %v1237_v56  ;;  %v1275_v56 = vld [vmem:[%s4674_s19 + $0x210] sm:$0xff] }
 0x83c   :  { %1351 = vmatpush.msrb.mxu2 %v1267_v50  ;;  %1379 = vmatpush.msrb.mxu3 %v1275_v56 }
 0x83d   :  { %1310 = vmatpush.msrb.mxu0 %v1236_v62  ;;  %v1274_v62 = vld [vmem:[%s4674_s19 + $0x208] sm:$0xff] }
 0x83e   :  { %1352 = vmatpush.msrb.mxu2 %v1266_v52  ;;  %1380 = vmatpush.msrb.mxu3 %v1274_v62 }
 0x83f   :  { %3840 = vrot.lane.b32.xlu2 %v3839_v55, %s4597_s22  ;;  %v1263_v55 = vld [vmem:[%s4674_s19 + $0x1b0] sm:$0xff] }
 0x840   :  { %1353 = vmatpush.msrb.mxu2 %v1265_v54  ;;  %v1247_v54 = vld [vmem:[%s4674_s19 + $0x130] sm:$0xff] }
 0x841   :  { %3855 = vrot.lane.b32.xlu1 %v3854_v1, %s4597_s22  ;;  %s4610_s22 = smov 114  }
 0x842   :  { %3875 = vrot.lane.b32.xlu0 %v3874_v2, %s4593_s18  ;;  %v1235_v2 = vld [vmem:[%s4674_s19 + $0xd0] sm:$0xff] }
 0x843   :  { %1311 = vmatpush.msrb.mxu0 %v1235_v2  ;;  %v1245_v2 = vld [vmem:[%s4674_s19 + $0x120] sm:$0xff] }
 0x847   :  { %3845 = vrot.lane.b32.xlu2 %v3844_v4, %s4599_s20  ;;  %v1254_v4 = vld [vmem:[%s4674_s19 + $0x168] sm:$0xff]  ;;  %s4611_s20 = smov 84  }
 0x848   :  { %1328 = vmatpush.msra.mxu1 %v1254_v4 }
 0x849   :  { %3870 = vrot.lane.b32.xlu1 %v3869_v5, %s4591_s15  ;;  %v1262_v5 = vld [vmem:[%s4674_s19 + $0x1a8] sm:$0xff] }
 0x84a   :  { %1079 = vrot.lane.b32.xlu0 %v1046_v6, %s4596_s23  ;;  %1329 = vmatpush.msra.mxu1 %v1253_v7  ;;  %s6737_s23 = sld [smem:[#allocation17_spill]] }
 0x84f   :  { %3860 = vrot.lane.b32.xlu2 %v3859_v8, %s4600_s1  ;;  %v1261_v8 = vld [vmem:[%s4674_s19 + $0x1a0] sm:$0xff] }
 0x851   :  { %1076 = vrot.lane.b32.xlu1 %v1039_v60, %s4600_s1  ;;  %v1264_v60 = vld [vmem:[%s4674_s19 + $0x1b8] sm:$0xff] }
 0x852   :  { %3890 = vrot.lane.b32.xlu0 %v3889_v10, %s4593_s18  ;;  %1354 = vmatpush.msrb.mxu2 %v1264_v60  ;;  %v1252_v10 = vld [vmem:[%s4674_s19 + $0x158] sm:$0xff]  ;;  %s4608_s18 = smov 15  }
 0x853   :  { %1330 = vmatpush.msra.mxu1 %v1252_v10 }
 0x854   :  { %1355 = vmatpush.msrb.mxu2 %v1263_v55 }
 0x856   :  { %1356 = vmatpush.msrb.mxu2 %v1262_v5  ;;  %v1273_v5 = vld [vmem:[%s4674_s19 + $0x200] sm:$0xff] }
 0x857   :  { %3880 = vrot.lane.b32.xlu2 %v3879_v12, %s4592_s16  ;;  %1381 = vmatpush.msrb.mxu3 %v1273_v5 }
 0x858   :  { %1357 = vmatpush.msrb.mxu2 %v1261_v8 }
 0x859   :  { %1049 = vrot.lane.b32.xlu1 %v1046_v6, %s4595_s14 }
 0x85a   :  { %1139 = vrot.lane.b32.xlu0 %v1046_v6, %s4600_s1  ;;  %v1234_v6 = vld [vmem:[%s4674_s19 + $0xc8] sm:$0xff] }
 0x85b   :  { %1312 = vmatpush.msrb.mxu0 %v1234_v6  ;;  %v1225_v6 = vld [vmem:[%s4674_s19 + $0x80] sm:$0xff] }
 0x85d   :  { %1313 = vmatpush.msrb.mxu0 %v1233_v9  ;;  %v1244_v9 = vld [vmem:[%s4674_s19 + $0x118] sm:$0xff] }
 0x85f   :  { %3885 = vrot.lane.b32.xlu2 %v3884_v13, %s4592_s16  ;;  %v1260_v13 = vld [vmem:[%s4674_s19 + $0x198] sm:$0xff]  ;;  %1314 = vmatpush.msrb.mxu0 %v1232_v16  ;;  %v1243_v16 = vld [vmem:[%s4674_s19 + $0x110] sm:$0xff] }
 0x860   :  { %1358 = vmatpush.msrb.mxu2 %v1260_v13 }
 0x861   :  { %3895 = vrot.lane.b32.xlu1 %v3894_v14, %s4592_s16  ;;  %1315 = vmatpush.msrb.mxu0 %v1231_v22  ;;  %s4607_s16 = smov 16  }
 0x862   :  { %1141 = vrot.lane.b32.xlu0 %v1138_v15, %s4600_s1  ;;  %1359 = vmatpush.msrb.mxu2 %v1259_v18 }
 0x863   :  { %1316 = vmatpush.msrb.mxu0 %v1230_v29 }
 0x864   :  { %1360 = vmatpush.msrb.mxu2 %v1258_v24 }
 0x865   :  { %1317 = vmatpush.msrb.mxu0 %v1229_v37 }
 0x866   :  { %1361 = vmatpush.msrb.mxu2 %v1257_v33 }
 0x867   :  { %3900 = vrot.lane.b32.xlu2 %v3899_v17, %s4591_s15  ;;  %v1251_v17 = vld [vmem:[%s4674_s19 + $0x150] sm:$0xff]  ;;  %1318 = vmatpush.msrb.mxu0 %v1228_v53  ;;  %s4606_s15 = smov 64  }
 0x868   :  { %1331 = vmatpush.msra.mxu1 %v1251_v17  ;;  %v1242_v17 = vld [vmem:[%s4674_s19 + $0x108] sm:$0xff] }
 0x869   :  { %972 = vrot.lane.b32.xlu1 %v971_v47, %s4600_s1  ;;  %s6740_s1 = sld [smem:[#allocation18_spill]] }
 0x86a   :  { %1332 = vmatpush.msra.mxu1 %v1250_v23 }
 0x86c   :  { %1333 = vmatpush.msra.mxu1 %v1249_v30 }
 0x86e   :  { %1334 = vmatpush.msra.mxu1 %v1248_v38 }
 0x870   :  { %1335 = vmatpush.msra.mxu1 %v1247_v54 }
 0x881   :  { %v5038_v21 = vpop.permute.xlu2 %1047 }
 0x889   :  { %v5044_v26 = vpop.permute.xlu2 %980 }
 0x891   :  { %v5050_v31 = vpop.permute.xlu2 %1109 }
 0x892   :  { %v5052_v32 = vpop.permute.xlu0 %1100 }
 0x899   :  { %v3841_v47 = vpop.permute.xlu2 %3840 }
 0x89a   :  { %v3843_v11 = vunpack.i.h.bf16 %v3841_v47  ;;  %v3842_v12 = vunpack.i.l.bf16 %v3841_v47 }
 0x89b   :  { %v5062_v42 = vpop.permute.xlu0 %3835  ;;  %v5064_v43 = vpop.permute.xlu1 %3830 }
 0x89c   :  { %v1004_v19 = vsel %vm1003_vm9, %v3842_v12, %v3843_v11  ;;  %v3832_v35 = vunpack.i.l.bf16 %v5064_v43 }
 0x89d   :  { %v1053_v34 = vsel %vm757_vm5, %v1004_v19, %v959_v48 }
 0x89e   :  { %v1156_v48 = vrot.slane %v1053_v34, 7  ;;  %v987_v51 = vsel %vm757_vm5, %v4988_v44, %v3832_v35  ;;  %v1246_v44 = vld [vmem:[%s4674_s19 + $0x128] sm:$0xff]  ;;  %v3837_v34 = vunpack.i.l.bf16 %v5062_v42 }
 0x89f   :  { %1336 = vmatpush.msra.mxu1 %v1246_v44 }
 0x8a0   :  { %v1194_v55 = vsel %vm155_vm2, %v987_v51, %v1156_v48  ;;  %v3833_v51 = vunpack.i.h.bf16 %v5064_v43 }
 0x8a1   :  { %v5084_v1 = vpop.permute.xlu2 %3845  ;;  %1337 = vmatpush.msra.mxu1 %v1245_v2 }
 0x8a2   :  { %v3848_v25 = vunpack.i.h.bf16 %v5084_v1  ;;  %v3847_v27 = vunpack.i.l.bf16 %v5084_v1  ;;  %v1226_v1 = vld [vmem:[%s4674_s19 + $0x88] sm:$0xff] }
 0x8a3   :  { %v5074_v57 = vpop.permute.xlu1 %976  ;;  %1338 = vmatpush.msra.mxu1 %v1244_v9 }
 0x8a4   :  { %v5079_v61 = vpop.permute.xlu0 %3850  ;;  %v1095_v46 = vsel %vm1094_vm13, %v3847_v27, %v3848_v25  ;;  %vm996_vm13 = vcmask 809984  }
 0x8a5   :  { %v3853_v20 = vunpack.i.h.bf16 %v5079_v61  ;;  %v3852_v47 = vunpack.i.l.bf16 %v5079_v61  ;;  %v1227_v61 = vld [vmem:[%s4674_s19 + $0x90] sm:$0xff]  ;;  %1339 = vmatpush.msra.mxu1 %v1243_v16 }
 0x8a6   :  { %1319 = vmatpush.msrb.mxu0 %v1227_v61 }
 0x8a7   :  { %v1103_v39 = vsel %vm1102_vm10, %v3853_v20, %v5052_v32  ;;  %v1241_v20 = vld [vmem:[%s4674_s19 + $0x100] sm:$0xff]  ;;  %1340 = vmatpush.msra.mxu1 %v1242_v17  ;;  %vm994_vm10 = vcmask 244736   ;;  %s6710_s19 = sld [smem:[#allocation7_spill]] }
 0x8a8   :  { %v1145_v52 = vsel %vm757_vm5, %v1095_v46, %v1103_v39  ;;  %1320 = vmatpush.msrb.mxu0 %v1226_v1 }
 0x8a9   :  { %v5109_v28 = vpop.permute.xlu2 %3860  ;;  %v1184_v0 = vrot.slane %v1145_v52, 5  ;;  %1341 = vmatpush.msra.mxu1 %v1241_v20  ;;  %v1113_v20 = vrot.slane %v4985_v40, 3 }
 0x8aa   :  { %1321 = vmatpush.msrb.mxu0 %v1225_v6  ;;  %v3863_v18 = vunpack.i.h.bf16 %v5109_v28  ;;  %v3862_v19 = vunpack.i.l.bf16 %v5109_v28 }
 0x8ab   :  { %v5095_v14 = vpop.permute.xlu1 %984 }
 0x8ac   :  { %v5097_v15 = vpop.permute.xlu0 %3865  ;;  %v1036_v23 = vsel %vm990_vm15, %v3862_v19, %v3863_v18 }
 0x8ad   :  { %v3868_v12 = vunpack.i.h.bf16 %v5097_v15  ;;  %v3867_v13 = vunpack.i.l.bf16 %v5097_v15 }
 0x8af   :  { %v1044_v22 = vsel %vm992_vm14, %v3867_v13, %v3868_v12 }
 0x8b0   :  { %v1058_v25 = vsel %vm994_vm10, %v1036_v23, %v1044_v22 }
 0x8b1   :  { %v5150_v7 = vpop.permute.xlu2 %3880  ;;  %v1059_v36 = vsel %vm996_vm13, %v1058_v25, %v5038_v21 }
 0x8b2   :  { %v3883_v37 = vunpack.i.h.bf16 %v5150_v7  ;;  %v3882_v38 = vunpack.i.l.bf16 %v5150_v7 }
 0x8b3   :  { %v5124_v45 = vpop.permute.xlu1 %3855 }
 0x8b4   :  { %v3857_v49 = vunpack.i.l.bf16 %v5124_v45  ;;  %v5128_v50 = vpop.permute.xlu0 %3875  ;;  %v3858_v39 = vunpack.i.h.bf16 %v5124_v45  ;;  %v1128_v56 = vsel %vm874_vm7, %v3882_v38, %v3883_v37 }
 0x8b5   :  { %v3877_v15 = vunpack.i.l.bf16 %v5128_v50  ;;  %v3878_v30 = vunpack.i.h.bf16 %v5128_v50 }
 0x8b6   :  { %v1082_v59 = vsel %vm757_vm5, %v3852_v47, %v3857_v49  ;;  %v1159_v47 = vrot.slane %v1059_v36, 7  ;;  %v1111_v52 = vsel %vm1003_vm9, %v3858_v39, %v5050_v31  ;;  %v1083_v18 = vsel %vm874_vm7, %v3857_v49, %v5010_v63 }
 0x8b7   :  { %v1170_v60 = vrot.slane %v1082_v59, 6  ;;  %v1136_v46 = vsel %vm879_vm8, %v3878_v30, %v3837_v34  ;;  %v995_v59 = vsel %vm994_vm10, %v5074_v57, %v5044_v26  ;;  %vm1282_vm9 = vcmask 326656  }
 0x8b8   :  { %v997_v44 = vsel %vm996_vm13, %v995_v59, %v5095_v14 }
 0x8b9   :  { %v1199_v4 = vsel %vm157_vm3, %v1194_v55, %v1170_v60  ;;  %v3886_v27 = vpop.permute.xlu2 %3885  ;;  %v1150_v60 = vsel %vm994_vm10, %v1128_v56, %v1136_v46  ;;  %v1146_v55 = vsel %vm874_vm7, %v5052_v32, %v1111_v52  ;;  %v1197_v26 = vsel %vm155_vm2, %v997_v44, %v1159_v47  ;;  %v1399_v44 = vld [vmem:[%s4684_s30 + $0x60] sm:$0xff] }
 0x8ba   :  { %v1204_v8 = vsel %vm249_vm4, %v1199_v4, %v1184_v0  ;;  %v3888_v4 = vunpack.i.h.bf16 %v3886_v27  ;;  %v3887_v5 = vunpack.i.l.bf16 %v3886_v27  ;;  %v3838_v32 = vunpack.i.h.bf16 %v5062_v42 }
 0x8bb   :  { %v5154_v10 = vpop.permute.xlu1 %3870  ;;  %1302 = vmatmul.f32.vlgmr.msra.gmra.mxu3 %v1204_v8  ;;  %v1147_v42 = vsel %vm879_vm8, %v1146_v55, %v5016_v3  ;;  %v1394_v55 = vld [vmem:[%s4684_s30 + $0x38] sm:$0xff] }
 0x8bc   :  { %v5156_v11 = vpop.permute.xlu0 %1079  ;;  %v3872_v48 = vunpack.i.l.bf16 %v5154_v10  ;;  %v3873_v9 = vunpack.i.h.bf16 %v5154_v10  ;;  %v1021_v10 = vsel %vm874_vm7, %v3887_v5, %v3888_v4  ;;  %v1185_v46 = vrot.slane %v1147_v42, 5  ;;  %v1390_v4 = vld [vmem:[%s4684_s30 + $0x18] sm:$0xff] }
 0x8bd   :  { %v1174_v40 = vrot.slane %v5156_v11, 6 }
 0x8be   :  { %v1014_v62 = vsel %vm757_vm5, %v3833_v51, %v3872_v48 }
 0x8c1   :  { %v3901_v1 = vpop.permute.xlu2 %3900 }
 0x8c2   :  { %v3903_v16 = vunpack.i.h.bf16 %v3901_v1  ;;  %v3902_v17 = vunpack.i.l.bf16 %v3901_v1  ;;  %v1393_v1 = vld [vmem:[%s4684_s30 + $0x30] sm:$0xff] }
 0x8c3   :  { %v1077_v24 = vpop.permute.xlu1 %1076 }
 0x8c4   :  { %v5171_v29 = vpop.permute.xlu0 %3890  ;;  %v1087_v33 = vsel %vm994_vm10, %v3877_v15, %v1077_v24  ;;  %v1084_v24 = vsel %vm879_vm8, %v1083_v18, %v3873_v9  ;;  %v1121_v27 = vsel %vm757_vm5, %v3902_v17, %v3903_v16  ;;  %vm1447_vm5 = vcmask 1043456   ;;  %v1476_v16 = vld [vmem:[%s4704_s27 + $0x28] sm:$0xff]  ;;  %v1435_v17 = vld [vmem:[%s4694_s12 + $0x20] sm:$0xff] }
 0x8c5   :  { %v1088_v41 = vsel %vm996_vm13, %v1087_v33, %v5156_v11  ;;  %v3892_v6 = vunpack.i.l.bf16 %v5171_v29  ;;  %v3893_v30 = vunpack.i.h.bf16 %v5171_v29  ;;  %v1148_v48 = vsel %vm990_vm15, %v1113_v20, %v1121_v27  ;;  %v1475_v18 = vld [vmem:[%s4704_s27 + $0x20] sm:$0xff]  ;;  %v1434_v20 = vld [vmem:[%s4694_s12 + $0x18] sm:$0xff] }
 0x8c6   :  { %v1173_v53 = vrot.slane %v1088_v41, 6  ;;  %v1149_v28 = vsel %vm992_vm14, %v1148_v48, %v3882_v38  ;;  %v1401_v38 = vld [vmem:[%s4684_s30 + $0x70] sm:$0xff] }
 0x8c7   :  { %v1029_v22 = vsel %vm879_vm8, %v3838_v32, %v3892_v6  ;;  %v1186_v59 = vrot.slane %v1149_v28, 5  ;;  %1411 = vmatpush.msra.mxu0 %v1401_v38  ;;  %v1388_v6 = vld [vmem:[%s4684_s30 + $0x8] sm:$0xff] }
 0x8c8   :  { %v1202_v8 = vsel %vm157_vm3, %v1197_v26, %v1173_v53  ;;  %v1056_v34 = vsel %vm990_vm15, %v1021_v10, %v1029_v22  ;;  %v1391_v26 = vld [vmem:[%s4684_s30 + $0x20] sm:$0xff]  ;;  %v1436_v32 = vld [vmem:[%s4694_s12 + $0x28] sm:$0xff]  ;;  %v1474_v10 = vld [vmem:[%s4704_s27 + $0x18] sm:$0xff] }
 0x8c9   :  { %v1057_v43 = vsel %vm992_vm14, %v1056_v34, %v3862_v19  ;;  %v1473_v34 = vld [vmem:[%s4704_s27 + $0x10] sm:$0xff] }
 0x8cb   :  { %v1050_v54 = vpop.permute.xlu1 %1049 }
 0x8cc   :  { %v1140_v61 = vpop.permute.xlu0 %1139  ;;  %v1051_v31 = vsel %vm994_vm10, %v5038_v21, %v1050_v54  ;;  %v1054_v21 = vsel %vm874_vm7, %v5003_v58, %v1014_v62  ;;  %v1158_v54 = vrot.slane %v1057_v43, 7  ;;  %v1397_v62 = vld [vmem:[%s4684_s30 + $0x50] sm:$0xff] }
 0x8cd   :  { %v1151_v0 = vsel %vm996_vm13, %v1150_v60, %v1140_v61  ;;  %v1160_v12 = vrot.slane %v1051_v31, 7  ;;  %v1055_v58 = vsel %vm879_vm8, %v1054_v21, %v3887_v5  ;;  %v1396_v31 = vld [vmem:[%s4684_s30 + $0x48] sm:$0xff]  ;;  %v1389_v5 = vld [vmem:[%s4684_s30 + $0x10] sm:$0xff]  ;;  %v1478_v21 = vld [vmem:[%s4704_s27 + $0x38] sm:$0xf]  ;;  %vm2528_vm13 = vcmask 121856  }
 0x8ce   :  { %v1187_v2 = vrot.slane %v1151_v0, 5  ;;  %v1157_v37 = vrot.slane %v1055_v58, 7  ;;  %v1395_v0 = vld [vmem:[%s4684_s30 + $0x40] sm:$0xff]  ;;  %3505 = vmatpush.msk.msrb.mxu1 %vm1447_vm5, %v1478_v21  ;;  %v1655_v21 = vld [vmem:[%s6716_s13 + $0x210] sm:$0xff] }
 0x8cf   :  { %v1198_v45 = vsel %vm155_vm2, %v5095_v14, %v1160_v12  ;;  %v1171_v14 = vrot.slane %v1084_v24, 6  ;;  %v1437_v12 = vld [vmem:[%s4694_s12 + $0x30] sm:$0xff]  ;;  %v4509_v58 = vld [vmem:[%s4679_s24] ss:$0 sm:$0xff]  ;;  %s6711_s24 = sld [smem:[#allocation10_spill]] }
 0x8d0   :  { %v1207_v13 = vsel %vm249_vm4, %v1202_v8, %v1187_v2  ;;  %v1203_v41 = vsel %vm157_vm3, %v1198_v45, %v1174_v40  ;;  %v1392_v2 = vld [vmem:[%s4684_s30 + $0x28] sm:$0xff]  ;;  %v1387_v8 = vld [vmem:[%s4684_s30] sm:$0xff] }
 0x8d1   :  { %1362 = vmatmul.f32.vlgmr.msrb.gmra.mxu2 %v1207_v13  ;;  %v1477_v13 = vld [vmem:[%s4704_s27 + $0x30] sm:$0xff] }
 0x8d2   :  { %1495 = vmatpush.msrb.mxu1 %v1477_v13  ;;  %v1657_v13 = vld [vmem:[%s6716_s13 + $0x220] sm:$0xff] }
 0x8d3   :  { %v3896_v23 = vpop.permute.xlu1 %3895 }
 0x8d4   :  { %v3898_v25 = vunpack.i.h.bf16 %v3896_v23  ;;  %v3897_v63 = vunpack.i.l.bf16 %v3896_v23  ;;  %v1142_v49 = vpop.permute.xlu0 %1141  ;;  %1496 = vmatpush.msrb.mxu1 %v1476_v16  ;;  %v1650_v16 = vld [vmem:[%s6716_s13 + $0x1e8] sm:$0xff] }
 0x8d5   :  { %v1143_v33 = vsel %vm990_vm15, %v1140_v61, %v1142_v49  ;;  %v1400_v61 = vld [vmem:[%s4684_s30 + $0x68] sm:$0xff]  ;;  %v1514_v43 = vld [vmem:[%s6711_s24 + $0x18] sm:$0xff] }
 0x8d6   :  { %v988_v3 = vsel %vm874_vm7, %v3832_v35, %v3897_v63  ;;  %v1188_v36 = vrot.slane %v1143_v33, 5  ;;  %v1085_v39 = vsel %vm990_vm15, %v3873_v9, %v3898_v25  ;;  %1412 = vmatpush.msra.mxu0 %v1400_v61  ;;  %v1438_v9 = vld [vmem:[%s4694_s12 + $0x38] sm:$0xf]  ;;  %1497 = vmatpush.msrb.mxu1 %v1475_v18  ;;  %vm1406_vm7 = vcmask 982016   ;;  %v1433_v33 = vld [vmem:[%s4694_s12 + $0x10] sm:$0xff] }
 0x8d7   :  { %v989_v11 = vsel %vm879_vm8, %v988_v3, %v3893_v30  ;;  %v1086_v51 = vsel %vm992_vm14, %v1085_v39, %v3877_v15  ;;  %3503 = vmatpush.msk.msra.mxu3 %vm1447_vm5, %v1438_v9  ;;  %v1432_v3 = vld [vmem:[%s4694_s12 + $0x8] sm:$0xff]  ;;  %v4510_v39 = vld [vmem:[%s6710_s19] ss:$0 sm:$0xff]  ;;  %vm1443_vm8 = vcmask 490496   ;;  %v1652_v18 = vld [vmem:[%s6716_s13 + $0x1f8] sm:$0xff]  ;;  %s4612_s19 = smov 97  }
 0x8d8   :  { %v1208_v29 = vsel %vm249_vm4, %v1203_v41, %v1188_v36  ;;  %v1195_v47 = vsel %vm155_vm2, %v989_v11, %v1157_v37  ;;  %v1172_v56 = vrot.slane %v1086_v51, 6  ;;  %1413 = vmatpush.msra.mxu0 %v1399_v44  ;;  %1498 = vmatpush.msrb.mxu1 %v1474_v10  ;;  %v1472_v36 = vld [vmem:[%s4704_s27 + $0x8] sm:$0xff]  ;;  %v1431_v37 = vld [vmem:[%s4694_s12] sm:$0xff]  ;;  %s6713_s12 = sld [smem:[#allocation9_spill]] }
 0x8d9   :  { %3501 = vmatmul.msk.f32.vlgmr.msrb.gmra.mxu3 %vm1282_vm9, %v1208_v29  ;;  %v1200_v35 = vsel %vm157_vm3, %v1195_v47, %v1171_v14  ;;  %v1471_v14 = vld [vmem:[%s4704_s27] sm:$0xff]  ;;  %v1517_v29 = vld [vmem:[%s6711_s24 + $0x30] sm:$0x1f]  ;;  %v1512_v51 = vld [vmem:[%s6711_s24 + $0x8] sm:$0xff]  ;;  %s6714_s27 = sld [smem:[#allocation8_spill]]  ;;  %vm2547_vm9 = vcmask 367616  }
 0x8da   :  { %v1205_v52 = vsel %vm249_vm4, %v1200_v35, %v1185_v46  ;;  %1460 = vmatpush.msra.mxu3 %v1437_v12  ;;  %1499 = vmatpush.msrb.mxu1 %v1473_v34  ;;  %v1516_v46 = vld [vmem:[%s6711_s24 + $0x28] sm:$0xff]  ;;  %v1515_v47 = vld [vmem:[%s6711_s24 + $0x20] sm:$0xff]  ;;  %v1513_v35 = vld [vmem:[%s6711_s24 + $0x10] sm:$0xff] }
 0x8db   :  { %v973_v53 = vpop.permute.xlu1 %972  ;;  %1322 = vmatmul.f32.vlgmr.msrb.gmra.mxu0 %v1205_v52  ;;  %v1511_v52 = vld [vmem:[%s6711_s24] sm:$0xff]  ;;  %v1662_v9 = vld [vmem:[%s6716_s13 + $0x248] sm:$0xff]  ;;  %v1656_v12 = vld [vmem:[%s6716_s13 + $0x218] sm:$0xff]  ;;  %s4613_s24 = smov 113  }
 0x8dc   :  { %v991_v19 = vsel %vm990_vm15, %v3893_v30, %v973_v53  ;;  %1461 = vmatpush.msra.mxu3 %v1436_v32  ;;  %1500 = vmatpush.msrb.mxu1 %v1472_v36  ;;  %v1508_v61 = vld [vmem:[%s6715_s2] sm:$0xf]  ;;  %v1639_v32 = vld [vmem:[%s6716_s13 + $0x190] sm:$0xff]  ;;  %v1634_v10 = vld [vmem:[%s6716_s13 + $0x168] sm:$0xff]  ;;  %vm1849_vm15 = vcmask 1046528  }
 0x8dd   :  { %v993_v50 = vsel %vm992_vm14, %v991_v19, %v5074_v57  ;;  %v1398_v57 = vld [vmem:[%s4684_s30 + $0x58] sm:$0xff]  ;;  %s6712_s30 = sld [smem:[#allocation12_spill]]  ;;  %vm1525_vm14 = vcmask 1044480   ;;  %v1614_v36 = vld [vmem:[%s6716_s13 + $0xc8] sm:$0xff] }
 0x8de   :  { %v1196_v15 = vsel %vm155_vm2, %v993_v50, %v1158_v54  ;;  %1414 = vmatpush.msra.mxu0 %v1398_v57  ;;  %1462 = vmatpush.msra.mxu3 %v1435_v17  ;;  %v1651_v17 = vld [vmem:[%s6716_s13 + $0x1f0] sm:$0xff]  ;;  %v1632_v34 = vld [vmem:[%s6716_s13 + $0x158] sm:$0xff] }
 0x8df   :  { %v1201_v60 = vsel %vm157_vm3, %v1196_v15, %v1172_v56  ;;  %1501 = vmatpush.msrb.mxu1 %v1471_v14  ;;  %3507 = vmatpush.msk.msra.mxu2 %vm1525_vm14, %v1517_v29  ;;  %v4511_v56 = vld [vmem:[%s6713_s12] ss:$0 sm:$0xff]  ;;  %v1627_v14 = vld [vmem:[%s6716_s13 + $0x130] sm:$0xff] }
 0x8e0   :  { %v1206_v7 = vsel %vm249_vm4, %v1201_v60, %v1186_v59  ;;  %1415 = vmatpush.msra.mxu0 %v1397_v62  ;;  %1463 = vmatpush.msra.mxu3 %v1434_v20  ;;  %v1645_v20 = vld [vmem:[%s6716_s13 + $0x1c0] sm:$0xff]  ;;  %v1615_v29 = vld [vmem:[%s6716_s13 + $0xd0] sm:$0xff] }
 0x8e1   :  { %1342 = vmatmul.f32.vlgmr.msra.gmra.mxu1 %v1206_v7  ;;  %1539 = vmatpush.msra.mxu2 %v1516_v46  ;;  %v4512_v7 = vld [vmem:[%s6714_s27] ss:$0 sm:$0xff]  ;;  %v1604_v46 = vld [vmem:[%s6716_s13 + $0x78] sm:$0xff]  ;;  %s4533_s27 = scalar_lea.hbm %s4782_s6, 4 }
 0x8e2   :  { %1416 = vmatpush.msra.mxu0 %v1396_v31  ;;  %1464 = vmatpush.msra.mxu3 %v1433_v33  ;;  %v1631_v33 = vld [vmem:[%s6716_s13 + $0x150] sm:$0xff] }
 0x8e3   :  { %1540 = vmatpush.msra.mxu2 %v1515_v47  ;;  %v1557_v53 = vld [vmem:[%s6712_s30 + $0x38] sm:$0xf]  ;;  %v1556_v28 = vld [vmem:[%s6712_s30 + $0x30] sm:$0xff]  ;;  %v1555_v54 = vld [vmem:[%s6712_s30 + $0x28] sm:$0xff] }
 0x8e4   :  { %1417 = vmatpush.msra.mxu0 %v1395_v0  ;;  %1465 = vmatpush.msra.mxu3 %v1432_v3  ;;  %v1554_v19 = vld [vmem:[%s6712_s30 + $0x20] sm:$0xff]  ;;  %v1553_v50 = vld [vmem:[%s6712_s30 + $0x18] sm:$0xff]  ;;  %v1552_v0 = vld [vmem:[%s6712_s30 + $0x10] sm:$0xff] }
 0x8e5   :  { %1541 = vmatpush.msra.mxu2 %v1514_v43  ;;  %v1625_v3 = vld [vmem:[%s6716_s13 + $0x120] sm:$0xff]  ;;  %v1616_v47 = vld [vmem:[%s6716_s13 + $0xd8] sm:$0xff] }
 0x8e6   :  { %1418 = vmatpush.msra.mxu0 %v1394_v55  ;;  %1466 = vmatpush.msra.mxu3 %v1431_v37  ;;  %v1551_v55 = vld [vmem:[%s6712_s30 + $0x8] sm:$0xff]  ;;  %v1617_v43 = vld [vmem:[%s6716_s13 + $0xe0] sm:$0xff] }
 0x8e7   :  { %1542 = vmatpush.msra.mxu2 %v1513_v35  ;;  %v1626_v37 = vld [vmem:[%s6716_s13 + $0x128] sm:$0xff] }
 0x8e8   :  { %1419 = vmatpush.msra.mxu0 %v1393_v1  ;;  %3509 = vmatpush.msk.msrb.mxu3 %vm1447_vm5, %v1557_v53  ;;  %v1550_v1 = vld [vmem:[%s6712_s30] sm:$0xff]  ;;  %v1610_v35 = vld [vmem:[%s6716_s13 + $0xa8] sm:$0xff]  ;;  %v1612_v53 = vld [vmem:[%s6716_s13 + $0xb8] sm:$0xff]  ;;  %s4614_s30 = smov 81  }
 0x8e9   :  { %1543 = vmatpush.msra.mxu2 %v1512_v51  ;;  %v1599_v51 = vld [vmem:[%s6716_s13 + $0x50] sm:$0xff] }
 0x8ea   :  { %1420 = vmatpush.msra.mxu0 %v1392_v2  ;;  %1577 = vmatpush.msrb.mxu3 %v1556_v28  ;;  %v1659_v2 = vld [vmem:[%s6716_s13 + $0x230] sm:$0xff]  ;;  %v1605_v28 = vld [vmem:[%s6716_s13 + $0x80] sm:$0xff] }
 0x8eb   :  { %1544 = vmatpush.msra.mxu2 %v1511_v52  ;;  %v1611_v52 = vld [vmem:[%s6716_s13 + $0xb0] sm:$0xff] }
 0x8ec   :  { %1421 = vmatpush.msra.mxu0 %v1391_v26  ;;  %1578 = vmatpush.msrb.mxu3 %v1555_v54  ;;  %v1654_v26 = vld [vmem:[%s6716_s13 + $0x208] sm:$0xff]  ;;  %v4513_v54 = vld [vmem:[%s6717_s17] ss:$0 sm:$0xff] }
 0x8ed   :  { %1680 = vmatpush.msrb.mxu2 %v1659_v2  ;;  %v1601_v2 = vld [vmem:[%s6716_s13 + $0x60] sm:$0xff] }
 0x8ee   :  { %1422 = vmatpush.msra.mxu0 %v1390_v4  ;;  %1579 = vmatpush.msrb.mxu3 %v1554_v19  ;;  %v1649_v4 = vld [vmem:[%s6716_s13 + $0x1e0] sm:$0xff]  ;;  %v1594_v19 = vld [vmem:[%s6716_s13 + $0x28] sm:$0xff] }
 0x8ef   :  { %1681 = vmatpush.msrb.mxu2 %v1654_v26  ;;  %v1602_v26 = vld [vmem:[%s6716_s13 + $0x68] sm:$0xff] }
 0x8f0   :  { %1423 = vmatpush.msra.mxu0 %v1389_v5  ;;  %1580 = vmatpush.msrb.mxu3 %v1553_v50  ;;  %v1660_v5 = vld [vmem:[%s6716_s13 + $0x238] sm:$0xff]  ;;  %v1606_v50 = vld [vmem:[%s6716_s13 + $0x88] sm:$0xff] }
 0x8f1   :  { %1700 = vmatpush.msra.mxu1 %v1660_v5  ;;  %1682 = vmatpush.msrb.mxu2 %v1649_v4  ;;  %v1623_v4 = vld [vmem:[%s6716_s13 + $0x110] sm:$0xff] }
 0x8f2   :  { %1424 = vmatpush.msra.mxu0 %v1388_v6  ;;  %1581 = vmatpush.msrb.mxu3 %v1552_v0  ;;  %v1644_v6 = vld [vmem:[%s6716_s13 + $0x1b8] sm:$0xff]  ;;  %v1633_v0 = vld [vmem:[%s6716_s13 + $0x160] sm:$0xff]  ;;  %v1595_v5 = vld [vmem:[%s6716_s13 + $0x30] sm:$0xff] }
 0x8f3   :  { %1701 = vmatpush.msra.mxu1 %v1655_v21  ;;  %1683 = vmatpush.msrb.mxu2 %v1644_v6  ;;  %v1596_v6 = vld [vmem:[%s6716_s13 + $0x38] sm:$0xff]  ;;  %v1590_v21 = vld [vmem:[%s6716_s13 + $0x8] sm:$0xff] }
 0x8f4   :  { %1425 = vmatpush.msra.mxu0 %v1387_v8  ;;  %1582 = vmatpush.msrb.mxu3 %v1551_v55  ;;  %v1661_v8 = vld [vmem:[%s6716_s13 + $0x240] sm:$0xff]  ;;  %v1628_v55 = vld [vmem:[%s6716_s13 + $0x138] sm:$0xff] }
 0x8f5   :  { %1702 = vmatpush.msra.mxu1 %v1650_v16  ;;  %1684 = vmatpush.msrb.mxu2 %v1639_v32  ;;  %v1613_v32 = vld [vmem:[%s6716_s13 + $0xc0] sm:$0xff]  ;;  %v1608_v16 = vld [vmem:[%s6716_s13 + $0x98] sm:$0xff] }
 0x8f6   :  { %1583 = vmatpush.msrb.mxu3 %v1550_v1  ;;  %1720 = vmatpush.msrb.mxu0 %v1661_v8  ;;  %v1600_v1 = vld [vmem:[%s6716_s13 + $0x58] sm:$0xff]  ;;  %v1597_v8 = vld [vmem:[%s6716_s13 + $0x40] sm:$0xff] }
 0x8f7   :  { %1703 = vmatpush.msra.mxu1 %v1645_v20  ;;  %1685 = vmatpush.msrb.mxu2 %v1634_v10  ;;  %v1593_v20 = vld [vmem:[%s6716_s13 + $0x20] sm:$0xff] }
 0x8f8   :  { %1721 = vmatpush.msrb.mxu0 %v1656_v12  ;;  %v1591_v12 = vld [vmem:[%s6716_s13 + $0x10] sm:$0xff]  ;;  %v4514_v10 = vld [vmem:[%s6718_s7] ss:$0 sm:$0xff] }
 0x8fa   :  { %1722 = vmatpush.msrb.mxu0 %v1651_v17  ;;  %v1603_v17 = vld [vmem:[%s6716_s13 + $0x70] sm:$0xff] }
 0x93e   :  { %v1303_v22 = vpop.f32.mrf.mxu3 }
 0x93f   :  { %v1304_v42 = vadd.f32 %v4509_v58, %v1303_v22  ;;  %v1646_v58 = vld [vmem:[%s6716_s13 + $0x1c8] sm:$0xff]  ;;  %v1647_v22 = vld [vmem:[%s6716_s13 + $0x1d0] sm:$0xff] }
 0x940   :  { %1723 = vmatpush.msrb.mxu0 %v1646_v58 }
 0x954   :  { %v1363_v63 = vpop.f32.mrf.mxu2 }
 0x958   :  { %v1323_v23 = vpop.f32.mrf.mxu0 }
 0x959   :  { %v1324_v24 = vadd.f32 %v1323_v23, %v1304_v42  ;;  %v1640_v23 = vld [vmem:[%s6716_s13 + $0x198] sm:$0xff]  ;;  %v1629_v42 = vld [vmem:[%s6716_s13 + $0x140] sm:$0xff] }
 0x95a   :  { %1704 = vmatpush.msra.mxu1 %v1640_v23  ;;  %1686 = vmatpush.msrb.mxu2 %v1629_v42  ;;  %v1664_v42 = vld [vmem:[%s6719_s21] sm:$0x1f] }
 0x95c   :  { %v1383_v40 = vpop.f32.mrf.mxu3 }
 0x95e   :  { %v1343_v45 = vpop.f32.mrf.mxu1 }
 0x95f   :  { %v1344_v25 = vadd.f32 %v1343_v45, %v1324_v24  ;;  %v1641_v24 = vld [vmem:[%s6716_s13 + $0x1a0] sm:$0xff]  ;;  %v1642_v45 = vld [vmem:[%s6716_s13 + $0x1a8] sm:$0xff] }
 0x960   :  { %1724 = vmatpush.msrb.mxu0 %v1641_v24  ;;  %v1667_v24 = vperm.slane %v1664_v42, 1 }
 0x961   :  { %v1364_v49 = vadd.f32 %v1363_v63, %v1344_v25  ;;  %v1635_v25 = vld [vmem:[%s6716_s13 + $0x170] sm:$0xff]  ;;  %v1624_v63 = vld [vmem:[%s6716_s13 + $0x118] sm:$0xff] }
 0x962   :  { %1705 = vmatpush.msra.mxu1 %v1635_v25  ;;  %1687 = vmatpush.msrb.mxu2 %v1624_v63 }
 0x963   :  { %v1384_v27 = vadd.f32 %v1383_v40, %v1364_v49  ;;  %v1636_v49 = vld [vmem:[%s6716_s13 + $0x178] sm:$0xff]  ;;  %v1637_v40 = vld [vmem:[%s6716_s13 + $0x180] sm:$0xff] }
 0x964   :  { %1725 = vmatpush.msrb.mxu0 %v1636_v49 }
 0x965   :  { %v1386_v30 = vmax.f32 %v1384_v27, 0.0  ;;  %v1630_v27 = vld [vmem:[%s6716_s13 + $0x148] sm:$0xff] }
 0x966   :  { %1706 = vmatpush.msra.mxu1 %v1630_v27  ;;  %1726 = vmatpush.msrb.mxu0 %v1631_v33 }
 0x967   :  { %3502 = vmatmul.msk.f32.vlgmr.msra.gmra.mxu0 %vm1406_vm7, %v1386_v30  ;;  %v1619_v30 = vld [vmem:[%s6716_s13 + $0xf0] sm:$0xff] }
 0x968   :  { %1688 = vmatpush.msrb.mxu2 %v1619_v30  ;;  %1707 = vmatpush.msra.mxu1 %v1625_v3 }
 0x969   :  { %1727 = vmatpush.msrb.mxu0 %v1626_v37 }
 0x96a   :  { %1689 = vmatpush.msrb.mxu2 %v1614_v36 }
 0x9e4   :  { %v1427_v41 = vpop.f32.mrf.mxu0 }
 0x9e5   :  { %v1428_v11 = vadd.f32 %v4510_v39, %v1427_v41  ;;  %v1620_v39 = vld [vmem:[%s6716_s13 + $0xf8] sm:$0xff]  ;;  %v1609_v41 = vld [vmem:[%s6716_s13 + $0xa0] sm:$0xff] }
 0x9e6   :  { %1708 = vmatpush.msra.mxu1 %v1620_v39  ;;  %1690 = vmatpush.msrb.mxu2 %v1609_v41  ;;  %v1669_v39 = vperm.slane %v1664_v42, 3 }
 0x9e7   :  { %v1430_v48 = vmax.f32 %v1428_v11, 0.0  ;;  %v1621_v11 = vld [vmem:[%s6716_s13 + $0x100] sm:$0xff] }
 0x9e8   :  { %1728 = vmatpush.msrb.mxu0 %v1621_v11  ;;  %1709 = vmatpush.msra.mxu1 %v1615_v29 }
 0x9e9   :  { %3504 = vmatmul.msk.f32.vlgmr.msra.gmra.mxu3 %vm1443_vm8, %v1430_v48  ;;  %3506 = vmatmul.msk.f32.vlgmr.msrb.gmra.mxu1 %vm1443_vm8, %v1430_v48  ;;  %v1622_v48 = vld [vmem:[%s6716_s13 + $0x108] sm:$0xff] }
 0x9ea   :  { %1740 = vmatpush.msra.mxu3 %v1662_v9  ;;  %1691 = vmatpush.msrb.mxu2 %v1604_v46  ;;  %v1618_v9 = vld [vmem:[%s6716_s13 + $0xe8] sm:$0xff] }
 0x9eb   :  { %1729 = vmatpush.msrb.mxu0 %v1616_v47  ;;  %1710 = vmatpush.msra.mxu1 %v1610_v35  ;;  %v1666_v47 = vperm.slane %v1664_v42, 0 }
 0x9ec   :  { %1741 = vmatpush.msra.mxu3 %v1657_v13  ;;  %1692 = vmatpush.msrb.mxu2 %v1599_v51  ;;  %v1592_v13 = vld [vmem:[%s6716_s13 + $0x18] sm:$0xff] }
 0x9ed   :  { %1730 = vmatpush.msrb.mxu0 %v1611_v52  ;;  %1711 = vmatpush.msra.mxu1 %v1605_v28  ;;  %v1670_v52 = vperm.slane %v1664_v42, 4 }
 0x9ee   :  { %1742 = vmatpush.msra.mxu3 %v1652_v18  ;;  %1693 = vmatpush.msrb.mxu2 %v1594_v19  ;;  %v1598_v18 = vld [vmem:[%s6716_s13 + $0x48] sm:$0xff] }
 0x9ef   :  { %1731 = vmatpush.msrb.mxu0 %v1606_v50  ;;  %1712 = vmatpush.msra.mxu1 %v1600_v1 }
 0x9f0   :  { %1743 = vmatpush.msra.mxu3 %v1647_v22 }
 0x9f1   :  { %1732 = vmatpush.msrb.mxu0 %v1601_v2  ;;  %1713 = vmatpush.msra.mxu1 %v1595_v5 }
 0x9f2   :  { %1744 = vmatpush.msra.mxu3 %v1642_v45  ;;  %v1668_v45 = vperm.slane %v1664_v42, 2 }
 0x9f3   :  { %1733 = vmatpush.msrb.mxu0 %v1596_v6  ;;  %1714 = vmatpush.msra.mxu1 %v1590_v21 }
 0x9f4   :  { %1745 = vmatpush.msra.mxu3 %v1637_v40 }
 0x9f5   :  { %1734 = vmatpush.msrb.mxu0 %v1591_v12 }
 0x9f6   :  { %1746 = vmatpush.msra.mxu3 %v1632_v34 }
 0x9f8   :  { %1747 = vmatpush.msra.mxu3 %v1627_v14 }
 0x9fa   :  { %1748 = vmatpush.msra.mxu3 %v1622_v48 }
 0x9fc   :  { %1749 = vmatpush.msra.mxu3 %v1617_v43 }
 0x9fe   :  { %1750 = vmatpush.msra.mxu3 %v1612_v53 }
 0xa66   :  { %v1503_v15 = vpop.f32.mrf.mxu1 }
 0xa67   :  { %v1504_v59 = vadd.f32 %v4511_v56, %v1503_v15  ;;  %v1607_v56 = vld [vmem:[%s6716_s13 + $0x90] sm:$0xff]  ;;  %v1589_v15 = vld [vmem:[%s6716_s13] sm:$0xff] }
 0xa68   :  { %1751 = vmatpush.msra.mxu3 %v1607_v56  ;;  %1694 = vmatpush.msrb.mxu2 %v1589_v15 }
 0xa69   :  { %v1506_v60 = vmul.f32 1.442695, %v1504_v59 }
 0xa6a   :  { %1752 = vmatpush.msra.mxu3 %v1602_v26 }
 0xa6b   :  { %4515 = vpow2.f32 %v1506_v60  ;;  %v1663_v60 = vld [vmem:[%s6716_s13 + $0x250] sm:$0xff] }
 0xa6c   :  { %v1468_v38 = vpop.f32.mrf.mxu3  ;;  %1753 = vmatpush.msra.mxu3 %v1597_v8 }
 0xa6d   :  { %v1469_v57 = vadd.f32 %v4512_v7, %v1468_v38  ;;  %v1658_v38 = vld [vmem:[%s6716_s13 + $0x228] sm:$0xff] }
 0xa6e   :  { %1754 = vmatpush.msra.mxu3 %v1592_v13 }
 0xa71   :  { %v4516_v44 = vpop.eup %4515 }
 0xa72   :  { %v1509_v62 = vmul.f32 %v4516_v44, %v1508_v61  ;;  %v1653_v44 = vld [vmem:[%s6716_s13 + $0x200] sm:$0xff] }
 0xa74   :  { %v1510_v31 = vadd.f32 %v1509_v62, %v1469_v57  ;;  %v1648_v57 = vld [vmem:[%s6716_s13 + $0x1d8] sm:$0xff]  ;;  %v1643_v62 = vld [vmem:[%s6716_s13 + $0x1b0] sm:$0xff] }
 0xa76   :  { %3508 = vmatmul.msk.f32.vlgmr.msra.gmra.mxu2 %vm819_vm1, %v1510_v31  ;;  %v1638_v31 = vld [vmem:[%s6716_s13 + $0x188] sm:$0xff]  ;;  %vm1847_vm1 = vcmask 1045504  }
 0xa77   :  { %1760 = vmatpush.msra.mxu2 %v1663_v60 }
 0xa79   :  { %1761 = vmatpush.msra.mxu2 %v1658_v38 }
 0xa7b   :  { %1762 = vmatpush.msra.mxu2 %v1653_v44 }
 0xa7d   :  { %1763 = vmatpush.msra.mxu2 %v1648_v57 }
 0xa7f   :  { %1764 = vmatpush.msra.mxu2 %v1643_v62 }
 0xa81   :  { %1765 = vmatpush.msra.mxu2 %v1638_v31 }
 0xa83   :  { %1766 = vmatpush.msra.mxu2 %v1633_v0 }
 0xa85   :  { %1767 = vmatpush.msra.mxu2 %v1628_v55 }
 0xa87   :  { %1768 = vmatpush.msra.mxu2 %v1623_v4 }
 0xa89   :  { %1769 = vmatpush.msra.mxu2 %v1618_v9 }
 0xa8b   :  { %1770 = vmatpush.msra.mxu2 %v1613_v32 }
 0xa8d   :  { %1771 = vmatpush.msra.mxu2 %v1608_v16 }
 0xa8f   :  { %1772 = vmatpush.msra.mxu2 %v1603_v17 }
 0xa91   :  { %1773 = vmatpush.msra.mxu2 %v1598_v18 }
 0xa93   :  { %1774 = vmatpush.msra.mxu2 %v1593_v20 }
 0xaf9   :  { %v1546_v59 = vpop.f32.mrf.mxu2 }
 0xafa   :  { %v1547_v7 = vadd.f32 %v4513_v54, %v1546_v59 }
 0xafc   :  { %v1549_v61 = vmax.f32 %v1547_v7, 0.0 }
 0xafe   :  { %3510 = vmatmul.msk.f32.vlgmr.msrb.gmra.mxu3 %vm1443_vm8, %v1549_v61  ;;  %vm2868_vm8 = vcmask 138240  }
 0xb81   :  { %v1585_v58 = vpop.f32.mrf.mxu3 }
 0xb82   :  { %v1586_v22 = vadd.f32 %v4514_v10, %v1585_v58 }
 0xb84   :  { %v1588_v23 = vmax.f32 %v1586_v22, 0.0 }
 0xb86   :  { %3511 = vmatmul.msk.f32.vlgmr.msrb.gmra.mxu2 %vm1406_vm7, %v1588_v23  ;;  %3512 = vmatmul.msk.f32.vlgmr.msra.gmra.mxu1 %vm1406_vm7, %v1588_v23 }
 0xb87   :  { %3513 = vmatmul.msk.f32.vlgmr.msrb.gmra.mxu0 %vm1406_vm7, %v1588_v23  ;;  %3514 = vmatmul.msk.f32.vlgmr.msra.gmra.mxu3 %vm1406_vm7, %v1588_v23 }
 0xb8e   :  { %3515 = vmatmul.msk.f32.vlgmr.msra.gmra.mxu2 %vm1406_vm7, %v1588_v23  ;;  %vm2578_vm7 = vcmask 588800  }
 0xc03   :  { %v1716_v25 = vpop.f32.mrf.mxu1 }
 0xc04   :  { %v1717_v63 = vadd.f32 %v1716_v25, %v1667_v24  ;;  %v1736_v49 = vpop.f32.mrf.mxu0 }
 0xc05   :  { %v1737_v40 = vadd.f32 %v1736_v49, %v1668_v45 }
 0xc06   :  { %v5401_v27 = vmax.f32 %v1717_v63, 0.0 }
 0xc07   :  { %v5403_v30 = vmax.f32 %v1737_v40, 0.0 }
 0xc08   :  { %6720 = vst [vmem:[#allocation21_spill] sm:$0xff] %v5401_v27  ;;  %v5406_v33 = vrot.slane %v5401_v27, 4  ;;  %v5409_v34 = vrot.slane %v5401_v27, 7  ;;  %v5427_v29 = vrot.slane %v5401_v27, 3  ;;  %v5433_v35 = vrot.slane %v5401_v27, 6 }
 0xc09   :  { %6721 = vst [vmem:[#allocation22_spill] sm:$0xff] %v5403_v30  ;;  %v1696_v3 = vpop.f32.mrf.mxu2  ;;  %v5412_v36 = vrot.slane %v5403_v30, 1  ;;  %v5415_v37 = vrot.slane %v5403_v30, 5  ;;  %v5430_v46 = vrot.slane %v5403_v30, 4  ;;  %v5436_v51 = vrot.slane %v5403_v30, 7 }
 0xc0a   :  { %v3909_v14 = vpack.i.bf16 %v5409_v34, %v5403_v30  ;;  %v1756_v48 = vpop.f32.mrf.mxu3  ;;  %v1697_v54 = vadd.f32 %v1696_v3, %v1666_v47  ;;  %v5453_v60 = vrot.slane %v5401_v27, 5  ;;  %v5456_v7 = vrot.slane %v5403_v30, 6 }
 0xc0b   :  { %v3904_v41 = vpack.i.bf16 %v5401_v27, %v5412_v36  ;;  %v3924_v11 = vpack.i.bf16 %v5406_v33, %v5415_v37  ;;  %v1757_v43 = vadd.f32 %v1756_v48, %v1669_v39  ;;  %v3934_v28 = vpack.i.bf16 %v5427_v29, %v5430_v46 }
 0xc0c   :  { %3910 = vrot.lane.b32.xlu0 %v3909_v14, %s4601_s25  ;;  %v3914_v50 = vpack.i.bf16 %v5433_v35, %v5436_v51  ;;  %v5447_v15 = vmax.f32 %v1697_v54, 0.0  ;;  %v3919_v62 = vpack.i.bf16 %v5453_v60, %v5456_v7  ;;  %v4149_v1 = vpack.i.bf16 %v5433_v35, %v5456_v7 }
 0xc0d   :  { %3905 = vrot.lane.b32.xlu2 %v3904_v41, %s4602_s10  ;;  %3925 = vrot.lane.b32.xlu1 %v3924_v11, %s4603_s29  ;;  %v5440_v19 = vmax.f32 %v1757_v43, 0.0  ;;  %v4159_v4 = vpack.i.bf16 %v5453_v60, %v5415_v37  ;;  %v5498_v21 = vrot.slane %v5401_v27, 2  ;;  %v5524_v58 = vrot.slane %v5403_v30, 3 }
 0xc0e   :  { %6723 = vst [vmem:[#allocation24_spill] sm:$0xff] %v5447_v15  ;;  %v5470_v31 = vrot.slane %v5447_v15, 4  ;;  %v5484_v26 = vrot.slane %v5447_v15, 7  ;;  %v5493_v8 = vrot.slane %v5447_v15, 6  ;;  %v5535_v24 = vrot.slane %v5447_v15, 1 }
 0xc0f   :  { %6722 = vst [vmem:[#allocation23_spill] sm:$0xff] %v5440_v19  ;;  %v5450_v59 = vrot.slane %v5440_v19, 2  ;;  %v5461_v61 = vrot.slane %v5440_v19, 4  ;;  %v3964_v44 = vpack.i.bf16 %v5440_v19, %v5456_v7  ;;  %v1892_v5 = vrot.slane %v5440_v19, 6 }
 0xc10   :  { %v5490_v6 = vrot.slane %v5440_v19, 5  ;;  %v4179_v9 = vpack.i.bf16 %v5470_v31, %v5406_v33  ;;  %v3969_v32 = vpack.i.bf16 %v5498_v21, %v5447_v15  ;;  %v1888_v17 = vrot.slane %v5440_v19, 7 }
 0xc11   :  { %v1776_v53 = vpop.f32.mrf.mxu2  ;;  %v3984_v57 = vpack.i.bf16 %v5450_v59, %v5403_v30  ;;  %v4154_v2 = vpack.i.bf16 %v5430_v46, %v5461_v61  ;;  %v5521_v10 = vrot.slane %v5440_v19, 1  ;;  %v3944_v42 = vpack.i.bf16 %v5498_v21, %v5524_v58 }
 0xc12   :  { %v1777_v56 = vadd.f32 %v1776_v53, %v1670_v52  ;;  %v3999_v16 = vpack.i.bf16 %v1892_v5, %v5490_v6  ;;  %v3979_v18 = vpack.i.bf16 %v5440_v19, %v1888_v17  ;;  %v4004_v20 = vpack.i.bf16 %v5490_v6, %v5461_v61 }
 0xc13   :  { %v3994_v22 = vpack.i.bf16 %v5521_v10, %v5436_v51  ;;  %v4009_v23 = vpack.i.bf16 %v1888_v17, %v5415_v37  ;;  %v4059_v45 = vpack.i.bf16 %v1892_v5, %v5535_v24  ;;  %v4019_v25 = vpack.i.bf16 %v1892_v5, %v5430_v46 }
 0xc14   :  { %3935 = vrot.lane.b32.xlu0 %v3934_v28, %s4604_s3  ;;  %v5458_v38 = vmax.f32 %v1777_v56, 0.0  ;;  %v5543_v63 = vrot.slane %v5401_v27, 1  ;;  %v4069_v49 = vpack.i.bf16 %v5484_v26, %v5493_v8  ;;  %v3959_v40 = vpack.i.bf16 %v5409_v34, %v5436_v51 }
 0xc15   :  { %3950 = vrot.lane.b32.xlu1 %v3924_v11, %s4604_s3  ;;  %3915 = vrot.lane.b32.xlu2 %v3914_v50, %s4605_s11  ;;  %v5555_v14 = vrot.slane %v5447_v15, 3  ;;  %v3974_v41 = vpack.i.bf16 %v5521_v10, %v5440_v19  ;;  %v4039_v11 = vpack.i.bf16 %v5401_v27, %v5493_v8  ;;  %v5567_v48 = vrot.slane %v5447_v15, 5 }
 0xc16   :  { %v5474_v0 = vrot.slane %v5458_v38, 7  ;;  %v1935_v55 = vrot.slane %v5458_v38, 6  ;;  %v4029_v3 = vpack.i.bf16 %v5543_v63, %v5484_v26  ;;  %v5570_v47 = vrot.slane %v5447_v15, 2 }
 0xc17   :  { %v4079_v39 = vpack.i.bf16 %v5453_v60, %v5555_v14  ;;  %v4094_v43 = vpack.i.bf16 %v5567_v48, %v5470_v31  ;;  %v3989_v51 = vpack.i.bf16 %v1888_v17, %v1892_v5  ;;  %v5579_v53 = vrot.slane %v5440_v19, 3 }
 0xc18   :  { %v4199_v12 = vpack.i.bf16 %v5484_v26, %v5474_v0  ;;  %v5505_v13 = vpack.i.bf16 %v5493_v8, %v1935_v55  ;;  %v4049_v52 = vpack.i.bf16 %v1888_v17, %v5570_v47  ;;  %v4119_v56 = vpack.i.bf16 %v5412_v36, %v5474_v0 }
 0xc19   :  { %v4014_v54 = vpack.i.bf16 %v5461_v61, %v5579_v53  ;;  %v4129_v5 = vpack.i.bf16 %v5403_v30, %v1935_v55  ;;  %v6685_v17 = vrot.slane %v5458_v38, 2 }
 0xc1b   :  { %v4134_v55 = vpack.i.bf16 %v5535_v24, %v6685_v17 }
 0xc1c   :  { %3965 = vrot.lane.b32.xlu0 %v3964_v44, %s4605_s11  ;;  %v4024_v44 = vpack.i.bf16 %v5579_v53, %v5450_v59 }
 0xc1d   :  { %3985 = vrot.lane.b32.xlu1 %v3984_v57, %s4602_s10  ;;  %3920 = vrot.lane.b32.xlu2 %v3919_v62, %s4606_s15  ;;  %v4074_v57 = vpack.i.bf16 %v5490_v6, %v5447_v15 }
 0xc24   :  { %3970 = vrot.lane.b32.xlu0 %v3969_v32, %s4602_s10  ;;  %v4034_v32 = vpack.i.bf16 %v5490_v6, %v5524_v58 }
 0xc25   :  { %4000 = vrot.lane.b32.xlu1 %v3999_v16, %s4606_s15  ;;  %3930 = vrot.lane.b32.xlu2 %v3914_v50, %s4606_s15  ;;  %v4054_v50 = vpack.i.bf16 %v5409_v34, %v5567_v48  ;;  %v4084_v16 = vpack.i.bf16 %v5493_v8, %v5567_v48  ;;  %v4099_v8 = vpack.i.bf16 %v5470_v31, %v5555_v14 }
 0xc2c   :  { %3980 = vrot.lane.b32.xlu0 %v3979_v18, %s4601_s25 }
 0xc2d   :  { %4005 = vrot.lane.b32.xlu1 %v4004_v20, %s4603_s29  ;;  %3940 = vrot.lane.b32.xlu2 %v3919_v62, %s4603_s29  ;;  %v5615_v20 = vrot.slane %v5403_v30, 2 }
 0xc2f   :  { %v4044_v6 = vpack.i.bf16 %v5461_v61, %v5615_v20 }
 0xc34   :  { %3995 = vrot.lane.b32.xlu0 %v3994_v22, %s4601_s25 }
 0xc35   :  { %4010 = vrot.lane.b32.xlu1 %v4009_v23, %s4606_s15  ;;  %3945 = vrot.lane.b32.xlu2 %v3944_v42, %s4607_s16  ;;  %v4139_v23 = vpack.i.bf16 %v5474_v0, %v5409_v34  ;;  %v4064_v42 = vpack.i.bf16 %v5433_v35, %v5470_v31  ;;  %v4174_v35 = vpack.i.bf16 %v5412_v36, %v5521_v10 }
 0xc3c   :  { %4060 = vrot.lane.b32.xlu0 %v4059_v45, %s4601_s25  ;;  %v4109_v45 = vpack.i.bf16 %v5458_v38, %v5401_v27 }
 0xc3d   :  { %4020 = vrot.lane.b32.xlu1 %v4019_v25, %s4603_s29  ;;  %3955 = vrot.lane.b32.xlu2 %v3934_v28, %s4607_s16  ;;  %v4114_v28 = vpack.i.bf16 %v5484_v26, %v5458_v38 }
 0xc44   :  { %4070 = vrot.lane.b32.xlu0 %v4069_v49, %s4606_s15  ;;  %v5641_v49 = vrot.slane %v5458_v38, 1 }
 0xc45   :  { %3960 = vrot.lane.b32.xlu2 %v3959_v40, %s4602_s10  ;;  %4030 = vrot.lane.b32.xlu1 %v4029_v3, %s4601_s25 }
 0xc46   :  { %v4144_v3 = vpack.i.bf16 %v5447_v15, %v5641_v49 }
 0xc4c   :  { %4080 = vrot.lane.b32.xlu0 %v4079_v39, %s4604_s3  ;;  %v4089_v39 = vpack.i.bf16 %v5406_v33, %v5570_v47 }
 0xc4d   :  { %3975 = vrot.lane.b32.xlu2 %v3974_v41, %s4602_s10  ;;  %4040 = vrot.lane.b32.xlu1 %v4039_v11, %s4605_s11  ;;  %v4124_v41 = vpack.i.bf16 %v5641_v49, %v5543_v63 }
 0xc54   :  { %4095 = vrot.lane.b32.xlu0 %v4094_v43, %s4604_s3 }
 0xc55   :  { %3990 = vrot.lane.b32.xlu2 %v3989_v51, %s4605_s11  ;;  %4050 = vrot.lane.b32.xlu1 %v4049_v52, %s4602_s10  ;;  %v4104_v52 = vpack.i.bf16 %v5615_v20, %v5458_v38 }
 0xc5c   :  { %4115 = vrot.lane.b32.xlu0 %v4114_v28, %s4605_s11 }
 0xc5d   :  { %4015 = vrot.lane.b32.xlu2 %v4014_v54, %s4604_s3  ;;  %4055 = vrot.lane.b32.xlu1 %v4054_v50, %s4606_s15 }
 0xc64   :  { %4120 = vrot.lane.b32.xlu0 %v4119_v56, %s4601_s25  ;;  %v4164_v56 = vpack.i.bf16 %v5524_v58, %v5579_v53 }
 0xc65   :  { %4025 = vrot.lane.b32.xlu2 %v4024_v44, %s4607_s16  ;;  %4075 = vrot.lane.b32.xlu1 %v4074_v57, %s4605_s11  ;;  %v4194_v44 = vpack.i.bf16 %v5535_v24, %v5543_v63  ;;  %v4189_v57 = vpack.i.bf16 %v5570_v47, %v5498_v21 }
 0xc67   :  { %v5599_v62 = vpop.permute.xlu2 %3905 }
 0xc6c   :  { %4130 = vrot.lane.b32.xlu0 %v4129_v5, %s4605_s11  ;;  %v1939_v5 = vrot.slane %v5458_v38, 5 }
 0xc6d   :  { %4035 = vrot.lane.b32.xlu2 %v4034_v32, %s4604_s3  ;;  %4085 = vrot.lane.b32.xlu1 %v4084_v16, %s4603_s29 }
 0xc6e   :  { %v4209_v32 = vpack.i.bf16 %v5567_v48, %v1939_v5 }
 0xc6f   :  { %v5612_v18 = vpop.permute.xlu2 %3915 }
 0xc70   :  { %v3917_v5 = vunpack.i.l.bf16 %v5612_v18 }
 0xc74   :  { %4135 = vrot.lane.b32.xlu0 %v4134_v55, %s4602_s10 }
 0xc75   :  { %4045 = vrot.lane.b32.xlu2 %v4044_v6, %s4607_s16  ;;  %4100 = vrot.lane.b32.xlu1 %v4099_v8, %s4607_s16 }
 0xc77   :  { %v5627_v22 = vpop.permute.xlu2 %3920 }
 0xc7c   :  { %4140 = vrot.lane.b32.xlu0 %v4139_v23, %s4605_s11 }
 0xc7d   :  { %4065 = vrot.lane.b32.xlu2 %v4064_v42, %s4603_s29  ;;  %4110 = vrot.lane.b32.xlu1 %v4109_v45, %s4601_s25  ;;  %v3907_v45 = vunpack.i.l.bf16 %v5599_v62 }
 0xc7e   :  { %v5638_v25 = vpop.permute.xlu0 %3910 }
 0xc7f   :  { %v5643_v40 = vpop.permute.xlu1 %3925  ;;  %v5645_v34 = vpop.permute.xlu2 %3930 }
 0xc84   :  { %4145 = vrot.lane.b32.xlu0 %v4144_v3, %s4601_s25  ;;  %v3913_v3 = vunpack.i.h.bf16 %v5638_v25 }
 0xc85   :  { %4090 = vrot.lane.b32.xlu2 %v4089_v39, %s4607_s16  ;;  %4125 = vrot.lane.b32.xlu1 %v4124_v41, %s4602_s10  ;;  %v3912_v39 = vunpack.i.l.bf16 %v5638_v25 }
 0xc86   :  { %v5656_v11 = vpop.permute.xlu0 %3935 }
 0xc87   :  { %v5658_v43 = vpop.permute.xlu1 %3950  ;;  %v5660_v51 = vpop.permute.xlu2 %3940 }
 0xc8c   :  { %4150 = vrot.lane.b32.xlu0 %v4149_v1, %s4601_s25  ;;  %v4169_v1 = vpack.i.bf16 %v5615_v20, %v5450_v59 }
 0xc8d   :  { %4105 = vrot.lane.b32.xlu2 %v4104_v52, %s4602_s10  ;;  %4155 = vrot.lane.b32.xlu1 %v4154_v2, %s4606_s15  ;;  %v4184_v2 = vpack.i.bf16 %v5555_v14, %v5427_v29 }
 0xc8e   :  { %v5673_v28 = vpop.permute.xlu0 %3965 }
 0xc8f   :  { %v5675_v54 = vpop.permute.xlu1 %3985  ;;  %v5677_v50 = vpop.permute.xlu2 %3945 }
 0xc94   :  { %4165 = vrot.lane.b32.xlu0 %v4164_v56, %s4603_s29 }
 0xc95   :  { %4160 = vrot.lane.b32.xlu2 %v4159_v4, %s4605_s11  ;;  %4175 = vrot.lane.b32.xlu1 %v4174_v35, %s4607_s16 }
 0xc96   :  { %v5689_v46 = vpop.permute.xlu0 %3970 }
 0xc97   :  { %v5691_v7 = vpop.permute.xlu1 %4000  ;;  %v5693_v61 = vpop.permute.xlu2 %3955 }
 0xc9c   :  { %4180 = vrot.lane.b32.xlu0 %v4179_v9, %s4606_s15 }
 0xc9d   :  { %4170 = vrot.lane.b32.xlu2 %v4169_v1, %s4604_s3  ;;  %4185 = vrot.lane.b32.xlu1 %v4184_v2, %s4603_s29  ;;  %v2178_v1 = vsel %vm155_vm2, %v5615_v20, %v3907_v45  ;;  %v3923_v20 = vunpack.i.h.bf16 %v5627_v22 }
 0xc9e   :  { %v5705_v37 = vpop.permute.xlu0 %3980  ;;  %v2179_v25 = vsel %vm157_vm3, %v2178_v1, %v3912_v39  ;;  %v3922_v39 = vunpack.i.l.bf16 %v5627_v22 }
 0xc9f   :  { %v5707_v60 = vpop.permute.xlu1 %4005  ;;  %v5709_v4 = vpop.permute.xlu2 %3960  ;;  %v3983_v35 = vunpack.i.h.bf16 %v5705_v37 }
 0xca0   :  { %6724 = vst [vmem:[#allocation25_spill] sm:$0xff] %v5709_v4  ;;  %v4008_v22 = vunpack.i.h.bf16 %v5707_v60  ;;  %v4007_v19 = vunpack.i.l.bf16 %v5707_v60 }
 0xca4   :  { %4195 = vrot.lane.b32.xlu0 %v4194_v44, %s4607_s16  ;;  %v3918_v44 = vunpack.i.h.bf16 %v5612_v18  ;;  %v2180_v18 = vsel %vm249_vm4, %v2179_v25, %v3917_v5  ;;  %v3938_v25 = vunpack.i.h.bf16 %v5656_v11 }
 0xca5   :  { %4190 = vrot.lane.b32.xlu2 %v4189_v57, %s4604_s3  ;;  %4200 = vrot.lane.b32.xlu1 %v4199_v12, %s4602_s10 }
 0xca6   :  { %v5721_v33 = vpop.permute.xlu0 %3995 }
 0xca7   :  { %v5723_v31 = vpop.permute.xlu1 %4010  ;;  %v5725_v9 = vpop.permute.xlu2 %3975 }
 0xca8   :  { %v3978_v8 = vunpack.i.h.bf16 %v5725_v9 }
 0xcaa   :  { %v2185_v41 = vsel %vm155_vm2, %v5450_v59, %v3978_v8  ;;  %v3997_v59 = vunpack.i.l.bf16 %v5721_v33 }
 0xcab   :  { %v2186_v57 = vsel %vm157_vm3, %v2185_v41, %v3983_v35  ;;  %v3928_v41 = vunpack.i.h.bf16 %v5643_v40 }
 0xcac   :  { %4205 = vrot.lane.b32.xlu0 %v5505_v13, %s4601_s25  ;;  %v3908_v13 = vunpack.i.h.bf16 %v5599_v62  ;;  %v3987_v62 = vunpack.i.l.bf16 %v5675_v54 }
 0xcad   :  { %4210 = vrot.lane.b32.xlu2 %v4209_v32, %s4605_s11 }
 0xcae   :  { %v5732_v16 = vpop.permute.xlu0 %4060  ;;  %v1997_v56 = vsel %vm155_vm2, %v5543_v63, %v3908_v13  ;;  %v4003_v13 = vunpack.i.h.bf16 %v5691_v7 }
 0xcaf   :  { %v5734_v55 = vpop.permute.xlu1 %4020  ;;  %v5736_v0 = vpop.permute.xlu2 %3990  ;;  %v1998_v2 = vsel %vm157_vm3, %v1997_v56, %v3913_v3  ;;  %v3927_v56 = vunpack.i.l.bf16 %v5643_v40  ;;  %v2181_v40 = vsel %vm1447_vm5, %v2180_v18, %v3922_v39 }
 0xcb0   :  { %v3993_v52 = vunpack.i.h.bf16 %v5736_v0  ;;  %v1999_v8 = vsel %vm249_vm4, %v1998_v2, %v3918_v44  ;;  %v3992_v30 = vunpack.i.l.bf16 %v5736_v0 }
 0xcb1   :  { %v2000_v44 = vsel %vm1447_vm5, %v1999_v8, %v3923_v20  ;;  %v4012_v8 = vunpack.i.l.bf16 %v5723_v31  ;;  %v2182_v39 = vsel %vm1525_vm14, %v2181_v40, %v3927_v56 }
 0xcb2   :  { %v2187_v63 = vsel %vm249_vm4, %v2186_v57, %v3993_v52  ;;  %v2048_v52 = vsel %vm155_vm2, %v5412_v36, %v3987_v62  ;;  %v3967_v57 = vunpack.i.l.bf16 %v5673_v28  ;;  %v3937_v36 = vunpack.i.l.bf16 %v5656_v11 }
 0xcb3   :  { %v2049_v35 = vsel %vm157_vm3, %v2048_v52, %v3997_v59  ;;  %v2188_v1 = vsel %vm1447_vm5, %v2187_v63, %v4003_v13  ;;  %v3948_v62 = vunpack.i.h.bf16 %v5677_v50  ;;  %v3947_v59 = vunpack.i.l.bf16 %v5677_v50 }
 0xcb4   :  { %v2050_v5 = vsel %vm249_vm4, %v2049_v35, %v3967_v57  ;;  %v4022_v63 = vunpack.i.l.bf16 %v5734_v55  ;;  %v2189_v20 = vsel %vm1525_vm14, %v2188_v1, %v4008_v22  ;;  %v2001_v11 = vsel %vm1525_vm14, %v2000_v44, %v3928_v41 }
 0xcb5   :  { %v2002_v35 = vsel %vm1847_vm1, %v2001_v11, %v3938_v25  ;;  %v2183_v1 = vsel %vm1847_vm1, %v2182_v39, %v3937_v36  ;;  %v2051_v57 = vsel %vm1447_vm5, %v2050_v5, %v4012_v8 }
 0xcb6   :  { %v5738_v26 = vpop.permute.xlu0 %4070  ;;  %v5822_v41 = vsel %vm1849_vm15, %v2183_v1, %v3947_v59 }
 0xcb7   :  { %v5740_v12 = vpop.permute.xlu2 %4015  ;;  %v5742_v6 = vpop.permute.xlu1 %4030  ;;  %v6687_v5 = vrot.slane %v5822_v41, 4 }
 0xcb8   :  { %v4018_v2 = vunpack.i.h.bf16 %v5740_v12 }
 0xcba   :  { %v2190_v13 = vsel %vm1847_vm1, %v2189_v20, %v4018_v2  ;;  %v5819_v20 = vsel %vm1849_vm15, %v2002_v35, %v3948_v62  ;;  %v3988_v35 = vunpack.i.h.bf16 %v5675_v54  ;;  %v3968_v54 = vunpack.i.h.bf16 %v5673_v28 }
 0xcbb   :  { %v6689_v40 = vrot.slane %v5819_v20, 4 }
 0xcbe   :  { %v5745_v48 = vpop.permute.xlu0 %4080 }
 0xcbf   :  { %v5748_v23 = vpop.permute.xlu2 %4025  ;;  %v5750_v42 = vpop.permute.xlu1 %4040 }
 0xcc0   :  { %v4028_v17 = vunpack.i.h.bf16 %v5748_v23  ;;  %v4042_v59 = vunpack.i.l.bf16 %v5750_v42 }
 0xcc2   :  { %v5807_v18 = vsel %vm1849_vm15, %v2190_v13, %v4028_v17  ;;  %v2052_v17 = vsel %vm1525_vm14, %v2051_v57, %v4022_v63 }
 0xcc3   :  { %v6686_v44 = vrot.slane %v5807_v18, 4 }
 0xcc5   :  { %v2403_v8 = vsel %vm1447_vm5, %v6687_v5, %v6686_v44  ;;  %v3973_v44 = vunpack.i.h.bf16 %v5689_v46  ;;  %v4032_v5 = vunpack.i.l.bf16 %v5742_v6 }
 0xcc6   :  { %v5771_v32 = vpop.permute.xlu0 %4095 }
 0xcc7   :  { %v5776_v45 = vpop.permute.xlu2 %4035  ;;  %v5778_v3 = vpop.permute.xlu1 %4050 }
 0xcc8   :  { %v4037_v52 = vunpack.i.l.bf16 %v5776_v45 }
 0xcca   :  { %v2053_v25 = vsel %vm1847_vm1, %v2052_v17, %v4037_v52 }
 0xcce   :  { %v5809_v50 = vpop.permute.xlu0 %4115 }
 0xccf   :  { %v5814_v22 = vpop.permute.xlu2 %4045  ;;  %v5816_v2 = vpop.permute.xlu1 %4055 }
 0xcd0   :  { %v4047_v56 = vunpack.i.l.bf16 %v5814_v22  ;;  %v4057_v28 = vunpack.i.l.bf16 %v5816_v2  ;;  %v4058_v0 = vunpack.i.h.bf16 %v5816_v2 }
 0xcd2   :  { %v5829_v36 = vsel %vm1849_vm15, %v2053_v25, %v4047_v56  ;;  %v3977_v56 = vunpack.i.l.bf16 %v5725_v9  ;;  %v3932_v25 = vunpack.i.l.bf16 %v5645_v34  ;;  %v3957_v9 = vunpack.i.l.bf16 %v5693_v61 }
 0xcd3   :  { %v6688_v62 = vrot.slane %v5829_v36, 4 }
 0xcd4   :  { %v2055_v15 = vsel %vm155_vm2, %v5521_v10, %v3977_v56 }
 0xcd5   :  { %v2375_v63 = vsel %vm1447_vm5, %v6689_v40, %v6688_v62  ;;  %v4002_v62 = vunpack.i.l.bf16 %v5691_v7  ;;  %v3998_v40 = vunpack.i.h.bf16 %v5721_v33  ;;  %v3982_v7 = vunpack.i.l.bf16 %v5705_v37 }
 0xcd6   :  { %v5846_v13 = vpop.permute.xlu0 %4120  ;;  %v4219_v52 = vpack.i.bf16 %v2375_v63, %v2403_v8  ;;  %v3942_v63 = vunpack.i.l.bf16 %v5660_v51  ;;  %v3972_v8 = vunpack.i.l.bf16 %v5689_v46  ;;  %v2257_v33 = vsel %vm155_vm2, %v5427_v29, %v3973_v44 }
 0xcd7   :  { %v4066_v11 = vpop.permute.xlu2 %4065  ;;  %v5848_v39 = vpop.permute.xlu1 %4075 }
 0xcd8   :  { %4220 = vrot.lane.b32.xlu0 %v4219_v52, %s4577_s5  ;;  %v2315_v52 = vsel %vm155_vm2, %v5579_v53, %v3988_v35  ;;  %v4033_v53 = vunpack.i.h.bf16 %v5742_v6  ;;  %v1990_v46 = vsel %vm155_vm2, %v5535_v24, %v3972_v8  ;;  %v4043_v35 = vunpack.i.h.bf16 %v5750_v42 }
 0xcd9   :  { %v4067_v27 = vunpack.i.l.bf16 %v4066_v11  ;;  %v1991_v10 = vsel %vm157_vm3, %v1990_v46, %v4032_v5  ;;  %v2316_v56 = vsel %vm157_vm3, %v2315_v52, %v3998_v40  ;;  %v2056_v24 = vsel %vm157_vm3, %v2055_v15, %v3982_v7 }
 0xcda   :  { %v1992_v37 = vsel %vm249_vm4, %v1991_v10, %v4042_v59  ;;  %v4068_v8 = vunpack.i.h.bf16 %v4066_v11  ;;  %v2057_v29 = vsel %vm249_vm4, %v2056_v24, %v3992_v30  ;;  %v2258_v60 = vsel %vm157_vm3, %v2257_v33, %v4033_v53 }
 0xcdb   :  { %v1993_v44 = vsel %vm1447_vm5, %v1992_v37, %v4057_v28  ;;  %v2259_v5 = vsel %vm249_vm4, %v2258_v60, %v4043_v35  ;;  %v4123_v15 = vunpack.i.h.bf16 %v5846_v13  ;;  %v4082_v11 = vunpack.i.l.bf16 %v5745_v48 }
 0xcdc   :  { %v1994_v40 = vsel %vm1525_vm14, %v1993_v44, %v4067_v27  ;;  %v2260_v52 = vsel %vm1447_vm5, %v2259_v5, %v4058_v0  ;;  %v2317_v28 = vsel %vm249_vm4, %v2316_v56, %v3968_v54  ;;  %v4023_v35 = vunpack.i.h.bf16 %v5734_v55 }
 0xcdd   :  { %v2261_v46 = vsel %vm1525_vm14, %v2260_v52, %v4068_v8  ;;  %v4083_v33 = vunpack.i.h.bf16 %v5745_v48  ;;  %v1995_v10 = vsel %vm1847_vm1, %v1994_v40, %v4082_v11  ;;  %v2058_v24 = vsel %vm1447_vm5, %v2057_v29, %v4002_v62 }
 0xcde   :  { %v5852_v1 = vpop.permute.xlu0 %4130  ;;  %v4038_v37 = vunpack.i.h.bf16 %v5776_v45  ;;  %v4027_v60 = vunpack.i.l.bf16 %v5748_v23  ;;  %v4048_v62 = vunpack.i.h.bf16 %v5814_v22  ;;  %v2059_v44 = vsel %vm1525_vm14, %v2058_v24, %v4007_v19 }
 0xcdf   :  { %v5854_v57 = vpop.permute.xlu2 %4090  ;;  %v5856_v17 = vpop.permute.xlu1 %4085  ;;  %v4133_v30 = vunpack.i.h.bf16 %v5852_v1  ;;  %v2262_v55 = vsel %vm1847_vm1, %v2261_v46, %v4083_v33  ;;  %v3933_v19 = vunpack.i.h.bf16 %v5645_v34  ;;  %v4118_v24 = vunpack.i.h.bf16 %v5809_v50 }
 0xce0   :  { %v4092_v59 = vunpack.i.l.bf16 %v5854_v57  ;;  %v4093_v7 = vunpack.i.h.bf16 %v5854_v57  ;;  %v4013_v57 = vunpack.i.h.bf16 %v5723_v31 }
 0xce2   :  { %v5919_v54 = vsel %vm1849_vm15, %v1995_v10, %v4092_v59  ;;  %v2318_v45 = vsel %vm1447_vm5, %v2317_v28, %v4013_v57  ;;  %v6726_v28 = vrot.slane %v5819_v20, 4  ;;  %v4097_v10 = vunpack.i.l.bf16 %v5771_v32 }
 0xce3   :  { %v4117_v57 = vunpack.i.l.bf16 %v5809_v50 }
 0xce6   :  { %v5886_v6 = vpop.permute.xlu0 %4135 }
 0xce7   :  { %v5891_v42 = vpop.permute.xlu2 %4105  ;;  %v5893_v4 = vpop.permute.xlu1 %4100 }
 0xce8   :  { %v4108_v2 = vunpack.i.h.bf16 %v5891_v42 }
 0xcea   :  { %v2308_v53 = vsel %vm155_vm2, %v5524_v58, %v4108_v2  ;;  %v4017_v58 = vunpack.i.l.bf16 %v5740_v12  ;;  %v5931_v12 = vsel %vm1849_vm15, %v2262_v55, %v4093_v7  ;;  %v2319_v2 = vsel %vm1525_vm14, %v2318_v45, %v4023_v35 }
 0xceb   :  { %v2309_v27 = vsel %vm157_vm3, %v2308_v53, %v4123_v15  ;;  %v2320_v5 = vsel %vm1847_vm1, %v2319_v2, %v4038_v37  ;;  %v2424_v40 = vrot.slane %v5931_v12, 4  ;;  %v4137_v53 = vunpack.i.l.bf16 %v5886_v6 }
 0xcec   :  { %v2310_v0 = vsel %vm249_vm4, %v2309_v27, %v4133_v30  ;;  %v2060_v23 = vsel %vm1847_vm1, %v2059_v44, %v4017_v58  ;;  %v5956_v52 = vsel %vm1849_vm15, %v2320_v5, %v4048_v62  ;;  %v4138_v30 = vunpack.i.h.bf16 %v5886_v6 }
 0xced   :  { %v2311_v56 = vsel %vm1447_vm5, %v2310_v0, %v3932_v25  ;;  %v6725_v25 = vunpack.i.l.bf16 %v5658_v43  ;;  %v5953_v11 = vsel %vm1849_vm15, %v2060_v23, %v4027_v60  ;;  %v3953_v7 = vunpack.i.h.bf16 %v5658_v43 }
 0xcee   :  { %v2312_v48 = vsel %vm1525_vm14, %v2311_v56, %v3942_v63  ;;  %v5926_v8 = vpop.permute.xlu0 %4140  ;;  %v2371_v63 = vrot.slane %v5919_v54, 4  ;;  %v3943_v27 = vunpack.i.h.bf16 %v5660_v51  ;;  %v4072_v35 = vunpack.i.l.bf16 %v5738_v26 }
 0xcef   :  { %v5933_v29 = vpop.permute.xlu1 %4110  ;;  %v2313_v31 = vsel %vm1847_vm1, %v2312_v48, %v6725_v25  ;;  %v2376_v6 = vrot.slane %v5953_v11, 4  ;;  %v4052_v0 = vunpack.i.l.bf16 %v5778_v3  ;;  %v2428_v56 = vrot.slane %v5956_v52, 4 }
 0xcf0   :  { %v5944_v22 = vsel %vm1849_vm15, %v2313_v31, %v3957_v9  ;;  %v2322_v9 = vrot.slane %v5458_v38, 3  ;;  %v2373_v46 = vsel %vm1447_vm5, %v2371_v63, %v6726_v28  ;;  %v4087_v55 = vunpack.i.l.bf16 %v5856_v17 }
 0xcf1   :  { %v2426_v15 = vrot.slane %v5944_v22, 4  ;;  %v4319_v59 = vpack.i.bf16 %v5931_v12, %v5944_v22  ;;  %v2120_v48 = vsel %vm155_vm2, %v5570_v47, %v4138_v30  ;;  %v4112_v25 = vunpack.i.l.bf16 %v5933_v29 }
 0xcf2   :  { %v2333_v60 = vsel %vm155_vm2, %v2322_v9, %v4137_v53  ;;  %v4142_v44 = vunpack.i.l.bf16 %v5926_v8  ;;  %v4107_v5 = vunpack.i.l.bf16 %v5891_v42  ;;  %v4102_v28 = vunpack.i.l.bf16 %v5893_v4 }
 0xcf3   :  { %v2427_v34 = vsel %vm1447_vm5, %v2424_v40, %v2426_v15  ;;  %v6728_v42 = vrot.slane %v5458_v38, 2 }
 0xcf4   :  { %v4214_v33 = vpack.i.bf16 %v2427_v34, %v2373_v46 }
 0xcf6   :  { %v4146_v58 = vpop.permute.xlu0 %4145  ;;  %4215 = vrot.lane.b32.xlu2 %v4214_v33, %s4577_s5  ;;  %v6727_v33 = vrot.slane %v5829_v36, 4 }
 0xcf7   :  { %v4148_v43 = vunpack.i.h.bf16 %v4146_v58  ;;  %v4147_v51 = vunpack.i.l.bf16 %v4146_v58  ;;  %v4126_v37 = vpop.permute.xlu1 %4125 }
 0xcf8   :  { %v4127_v62 = vunpack.i.l.bf16 %v4126_v37  ;;  %v4128_v50 = vunpack.i.h.bf16 %v4126_v37 }
 0xcf9   :  { %v2121_v31 = vsel %vm157_vm3, %v2120_v48, %v4148_v43  ;;  %v2334_v45 = vsel %vm157_vm3, %v2333_v60, %v4147_v51  ;;  %v4113_v51 = vunpack.i.h.bf16 %v5933_v29 }
 0xcfa   :  { %v2122_v2 = vsel %vm249_vm4, %v2121_v31, %v4118_v24  ;;  %v5991_v23 = vsel %vm249_vm4, %v2334_v45, %v4117_v57  ;;  %v2127_v47 = vsel %vm155_vm2, %v5498_v21, %v4127_v62  ;;  %v2377_v21 = vsel %vm1447_vm5, %v6727_v33, %v2376_v6  ;;  %v6007_v24 = vpop.permute.xlu2 %4160 }
 0xcfb   :  { %v2123_v9 = vsel %vm1447_vm5, %v2122_v2, %v4072_v35  ;;  %v2430_v30 = vrot.slane %v5991_v23, 4  ;;  %v2128_v53 = vsel %vm157_vm3, %v2127_v47, %v4112_v25  ;;  %v2203_v35 = vsel %vm155_vm2, %v6728_v42, %v4128_v50 }
 0xcfc   :  { %v2124_v46 = vsel %vm1525_vm14, %v2123_v9, %v4087_v55  ;;  %v2129_v34 = vsel %vm249_vm4, %v2128_v53, %v4142_v44  ;;  %v3958_v62 = vunpack.i.h.bf16 %v5693_v61  ;;  %v2250_v25 = vsel %vm155_vm2, %v5555_v14, %v4052_v0 }
 0xcfd   :  { %v2130_v58 = vsel %vm1447_vm5, %v2129_v34, %v3933_v19  ;;  %v2431_v57 = vsel %vm1447_vm5, %v2428_v56, %v2430_v30  ;;  %v2125_v43 = vsel %vm1847_vm1, %v2124_v46, %v4097_v10  ;;  %v2073_v19 = vsel %vm155_vm2, %v5641_v49, %v4107_v5 }
 0xcfe   :  { %v2131_v37 = vsel %vm1525_vm14, %v2130_v58, %v3943_v27  ;;  %v6017_v55 = vpop.permute.xlu0 %4150  ;;  %v4244_v48 = vpack.i.bf16 %v2431_v57, %v2377_v21  ;;  %v6020_v60 = vsel %vm1849_vm15, %v2125_v43, %v4102_v28  ;;  %v4122_v27 = vunpack.i.l.bf16 %v5846_v13 }
 0xcff   :  { %v6027_v31 = vpop.permute.xlu1 %4155  ;;  %v2132_v29 = vsel %vm1847_vm1, %v2131_v37, %v3953_v7  ;;  %v4077_v10 = vunpack.i.l.bf16 %v5848_v39  ;;  %v2204_v45 = vsel %vm157_vm3, %v2203_v35, %v4113_v51  ;;  %v2397_v61 = vrot.slane %v6020_v60, 4 }
 0xd00   :  { %4245 = vrot.lane.b32.xlu2 %v4244_v48, %s4577_s5  ;;  %v4062_v50 = vunpack.i.l.bf16 %v5732_v16  ;;  %v4143_v14 = vunpack.i.h.bf16 %v5926_v8  ;;  %v6038_v49 = vsel %vm1849_vm15, %v2132_v29, %v3958_v62  ;;  %v2074_v0 = vsel %vm157_vm3, %v2073_v19, %v4122_v27  ;;  %v6731_v29 = vld [vmem:[#allocation25_spill] sm:$0xff] }
 0xd01   :  { %v2398_v7 = vrot.slane %v6038_v49, 4  ;;  %v4132_v44 = vunpack.i.l.bf16 %v5852_v1  ;;  %v6729_v5 = vrot.slane %v5822_v41, 4  ;;  %v2429_v9 = vsel %vm1447_vm5, %v2426_v15, %v2428_v56 }
 0xd02   :  { %v2251_v13 = vsel %vm157_vm3, %v2250_v25, %v4062_v50  ;;  %v6045_v2 = vsel %vm249_vm4, %v2204_v45, %v4143_v14  ;;  %v4088_v53 = vunpack.i.h.bf16 %v5856_v17  ;;  %v4073_v34 = vunpack.i.h.bf16 %v5738_v26  ;;  %v6065_v42 = vpop.permute.xlu2 %4170  ;;  %v6732_v45 = vld [vmem:[#allocation23_spill] sm:$0xff] }
 0xd03   :  { %v2252_v47 = vsel %vm249_vm4, %v2251_v13, %v4077_v10  ;;  %v2401_v8 = vsel %vm1447_vm5, %v2398_v7, %v6729_v5  ;;  %v2399_v30 = vsel %vm1447_vm5, %v2397_v61, %v2398_v7  ;;  %v6057_v28 = vsel %vm249_vm4, %v2074_v0, %v4132_v44 }
 0xd04   :  { %v4224_v1 = vpack.i.bf16 %v2401_v8, %v2429_v9  ;;  %v4229_v46 = vpack.i.bf16 %v2399_v30, %v2371_v63  ;;  %v2404_v33 = vrot.slane %v6045_v2, 4  ;;  %v2253_v15 = vsel %vm1447_vm5, %v2252_v47, %v4073_v34  ;;  %v6733_v8 = vld [vmem:[#allocation21_spill] sm:$0xff]  ;;  %v6734_v9 = vld [vmem:[#allocation22_spill] sm:$0xff] }
 0xd05   :  { %v2378_v56 = vrot.slane %v6057_v28, 4  ;;  %v2254_v63 = vsel %vm1525_vm14, %v2253_v15, %v4088_v53  ;;  %v4103_v26 = vunpack.i.h.bf16 %v5893_v4  ;;  %v4098_v35 = vunpack.i.h.bf16 %v5771_v32 }
 0xd06   :  { %v6063_v21 = vpop.permute.xlu0 %4165  ;;  %4225 = vrot.lane.b32.xlu1 %v4224_v1, %s4577_s5  ;;  %4230 = vrot.lane.b32.xlu0 %v4229_v46, %s4577_s5  ;;  %v6730_v58 = vrot.slane %v5807_v18, 4  ;;  %v4053_v4 = vunpack.i.h.bf16 %v5778_v3  ;;  %v3963_v27 = vunpack.i.h.bf16 %v6731_v29  ;;  %v4063_v10 = vunpack.i.h.bf16 %v5732_v16 }
 0xd07   :  { %v6069_v17 = vpop.permute.xlu1 %4175  ;;  %v2255_v43 = vsel %vm1847_vm1, %v2254_v63, %v4098_v35  ;;  %v2379_v51 = vsel %vm1447_vm5, %v2376_v6, %v2378_v56  ;;  %v3962_v6 = vunpack.i.l.bf16 %v6731_v29  ;;  %v4078_v14 = vunpack.i.h.bf16 %v5848_v39 }
 0xd08   :  { %v2405_v57 = vsel %vm1447_vm5, %v6730_v58, %v2404_v33  ;;  %v6084_v37 = vsel %vm1849_vm15, %v2255_v43, %v4103_v26  ;;  %v1923_v50 = vsel %vm155_vm2, %v6732_v45, %v4053_v4  ;;  %v4153_v3 = vunpack.i.h.bf16 %v6017_v55 }
 0xd09   :  { %v4234_v48 = vpack.i.bf16 %v2405_v57, %v2379_v51  ;;  %v2423_v25 = vrot.slane %v6084_v37, 4  ;;  %v4152_v0 = vunpack.i.l.bf16 %v6017_v55  ;;  %v4157_v7 = vunpack.i.l.bf16 %v6027_v31 }
 0xd0a   :  { %v6093_v19 = vpop.permute.xlu2 %4190  ;;  %v4167_v44 = vunpack.i.l.bf16 %v6063_v21  ;;  %v1924_v47 = vsel %vm157_vm3, %v1923_v50, %v4063_v10  ;;  %v1851_v39 = vsel %vm155_vm2, %v6733_v8, %v3963_v27  ;;  %v1916_v55 = vsel %vm155_vm2, %v6734_v9, %v3962_v6 }
 0xd0b   :  { %v2425_v13 = vsel %vm1447_vm5, %v2423_v25, %v2424_v40  ;;  %v1925_v30 = vsel %vm249_vm4, %v1924_v47, %v4078_v14  ;;  %v1852_v53 = vsel %vm157_vm3, %v1851_v39, %v4153_v3  ;;  %v1917_v40 = vsel %vm157_vm3, %v1916_v55, %v4152_v0 }
 0xd0c   :  { %v4239_v16 = vpack.i.bf16 %v2425_v13, %v2397_v61  ;;  %v1926_v1 = vsel %vm1447_vm5, %v1925_v30, %v4157_v7  ;;  %v4163_v61 = vunpack.i.h.bf16 %v6007_v24  ;;  %v4162_v46 = vunpack.i.l.bf16 %v6007_v24  ;;  %v6735_v13 = vld [vmem:[#allocation24_spill] sm:$0xff] }
 0xd0d   :  { %v1927_v34 = vsel %vm1525_vm14, %v1926_v1, %v4167_v44  ;;  %v4172_v56 = vunpack.i.l.bf16 %v6065_v42  ;;  %v4158_v26 = vunpack.i.h.bf16 %v6027_v31  ;;  %v4168_v58 = vunpack.i.h.bf16 %v6063_v21 }
 0xd0e   :  { %v6086_v62 = vpop.permute.xlu0 %4180  ;;  %4235 = vrot.lane.b32.xlu1 %v4234_v48, %s4577_s5  ;;  %v1918_v63 = vsel %vm249_vm4, %v1917_v40, %v4162_v46  ;;  %v1853_v57 = vsel %vm249_vm4, %v1852_v53, %v4163_v61  ;;  %v4173_v4 = vunpack.i.h.bf16 %v6065_v42  ;;  %v4177_v29 = vunpack.i.l.bf16 %v6069_v17 }
 0xd0f   :  { %v6090_v32 = vpop.permute.xlu1 %4185  ;;  %v4182_v33 = vunpack.i.l.bf16 %v6086_v62  ;;  %v1928_v43 = vsel %vm1847_vm1, %v1927_v34, %v4172_v56  ;;  %v4193_v6 = vunpack.i.h.bf16 %v6093_v19  ;;  %v1919_v31 = vsel %vm1447_vm5, %v1918_v63, %v4158_v26 }
 0xd10   :  { %v4187_v24 = vunpack.i.l.bf16 %v6090_v32  ;;  %v1920_v50 = vsel %vm1525_vm14, %v1919_v31, %v4168_v58  ;;  %v6138_v14 = vsel %vm1849_vm15, %v1928_v43, %v4177_v29  ;;  %v4192_v47 = vunpack.i.l.bf16 %v6093_v19 }
 0xd11   :  { %v1854_v27 = vsel %vm1447_vm5, %v1853_v57, %v4182_v33  ;;  %v4183_v8 = vunpack.i.h.bf16 %v6086_v62  ;;  %v1921_v55 = vsel %vm1847_vm1, %v1920_v50, %v4173_v4  ;;  %v4188_v30 = vunpack.i.h.bf16 %v6090_v32 }
 0xd12   :  { %v4211_v35 = vpop.permute.xlu2 %4210  ;;  %v1855_v42 = vsel %vm1525_vm14, %v1854_v27, %v4187_v24  ;;  %v2346_v1 = vrot.slane %v6138_v14, 4  ;;  %v4178_v61 = vunpack.i.h.bf16 %v6069_v17 }
 0xd13   :  { %v4213_v10 = vunpack.i.h.bf16 %v4211_v35  ;;  %v4212_v21 = vunpack.i.l.bf16 %v4211_v35 }
 0xd14   :  { %v6167_v56 = vsel %vm1849_vm15, %v1921_v55, %v4178_v61  ;;  %v2561_v61 = vld [vmem:[%s6737_s23 + $0x8] sm:$0xff] }
 0xd15   :  { %v2344_v35 = vrot.slane %v6167_v56, 4 }
 0xd16   :  { %v4196_v5 = vpop.permute.xlu0 %4195  ;;  %4240 = vrot.lane.b32.xlu1 %v4239_v16, %s4577_s5 }
 0xd17   :  { %v4201_v15 = vpop.permute.xlu1 %4200  ;;  %v4197_v7 = vunpack.i.l.bf16 %v4196_v5  ;;  %v4198_v46 = vunpack.i.h.bf16 %v4196_v5 }
 0xd18   :  { %v4203_v51 = vunpack.i.h.bf16 %v4201_v15  ;;  %v4202_v48 = vunpack.i.l.bf16 %v4201_v15 }
 0xd1a   :  { %v1842_v44 = vsel %vm155_vm2, %v6735_v13, %v4203_v51  ;;  %v1943_v16 = vsel %vm155_vm2, %v5458_v38, %v4202_v48  ;;  %v1856_v38 = vsel %vm1847_vm1, %v1855_v42, %v4192_v47 }
 0xd1b   :  { %v6161_v34 = vsel %vm1849_vm15, %v1856_v38, %v4197_v7 }
 0xd1c   :  { %v2342_v17 = vrot.slane %v6161_v34, 4 }
 0xd1e   :  { %v4206_v45 = vpop.permute.xlu0 %4205  ;;  %v2345_v43 = vsel %vm1447_vm5, %v2342_v17, %v2344_v35 }
 0xd1f   :  { %v4208_v3 = vunpack.i.h.bf16 %v4206_v45  ;;  %v4207_v0 = vunpack.i.l.bf16 %v4206_v45 }
 0xd21   :  { %v1843_v39 = vsel %vm157_vm3, %v1842_v44, %v4208_v3  ;;  %v1944_v9 = vsel %vm157_vm3, %v1943_v16, %v4207_v0 }
 0xd22   :  { %v1844_v53 = vsel %vm249_vm4, %v1843_v39, %v4213_v10  ;;  %v6153_v40 = vsel %vm249_vm4, %v1944_v9, %v4212_v21 }
 0xd23   :  { %v1845_v19 = vsel %vm1447_vm5, %v1844_v53, %v4183_v8  ;;  %v2348_v62 = vrot.slane %v6153_v40, 4 }
 0xd24   :  { %v1846_v32 = vsel %vm1525_vm14, %v1845_v19, %v4188_v30  ;;  %vm3061_vm14 = vcmask 220160  }
 0xd25   :  { %v2349_v33 = vsel %vm1447_vm5, %v2346_v1, %v2348_v62  ;;  %v1848_v15 = vsel %vm1847_vm1, %v1846_v32, %v4193_v6  ;;  %v4314_v32 = vpack.i.bf16 %v6038_v49, %v5822_v41 }
 0xd26   :  { %v4249_v63 = vpack.i.bf16 %v2349_v33, %v2423_v25  ;;  %v6172_v26 = vsel %vm1849_vm15, %v1848_v15, %v4198_v46  ;;  %v2347_v25 = vsel %vm1447_vm5, %v2344_v35, %v2346_v1 }
 0xd27   :  { %v2341_v5 = vrot.slane %v6172_v26, 4  ;;  %v4254_v24 = vpack.i.bf16 %v2345_v43, %v2347_v25 }
 0xd28   :  { %4250 = vrot.lane.b32.xlu2 %v4249_v63, %s4577_s5 }
 0xd29   :  { %v2343_v58 = vsel %vm1447_vm5, %v2341_v5, %v2342_v17 }
 0xd2a   :  { %v4259_v57 = vpack.i.bf16 %v2341_v5, %v2343_v58 }
 0xd2c   :  { %4260 = vrot.lane.b32.xlu0 %v4259_v57, %s4577_s5 }
 0xd30   :  { %4255 = vrot.lane.b32.xlu2 %v4254_v24, %s4577_s5 }
 0xd4a   :  { %v4221_v51 = vpop.permute.xlu0 %4220 }
 0xd4b   :  { %v4223_v4 = vunpack.i.h.bf16 %v4221_v51  ;;  %v4222_v30 = vunpack.i.l.bf16 %v4221_v51 }
 0xd50   :  { %v4216_v48 = vpop.permute.xlu2 %4215 }
 0xd51   :  { %v4217_v29 = vunpack.i.l.bf16 %v4216_v48  ;;  %v4218_v13 = vunpack.i.h.bf16 %v4216_v48 }
 0xd53   :  { %v4264_v27 = vpack.i.bf16 %v4217_v29, %v4223_v4 }
 0xd55   :  { %4265 = vrot.lane.b32.xlu1 %v4264_v27, %s4608_s18 }
 0xd5a   :  { %v4246_v44 = vpop.permute.xlu2 %4245 }
 0xd5b   :  { %v4247_v1 = vunpack.i.l.bf16 %v4246_v44 }
 0xd78   :  { %v4226_v6 = vpop.permute.xlu1 %4225  ;;  %v4231_v31 = vpop.permute.xlu0 %4230 }
 0xd79   :  { %v4232_v10 = vunpack.i.l.bf16 %v4231_v31  ;;  %v4228_v50 = vunpack.i.h.bf16 %v4226_v6  ;;  %v4233_v3 = vunpack.i.h.bf16 %v4231_v31 }
 0xd7b   :  { %v2391_v21 = vsel %vm1447_vm5, %v6057_v28, %v4232_v10  ;;  %v4274_v42 = vpack.i.bf16 %v4233_v3, %v4228_v50 }
 0xd7c   :  { %v4269_v45 = vpack.i.bf16 %v5953_v11, %v2391_v21  ;;  %v6736_v11 = vpack.i.bf16 %v5819_v20, %v5829_v36  ;;  %v4248_v36 = vunpack.i.h.bf16 %v4246_v44 }
 0xd7e   :  { %4270 = vrot.lane.b32.xlu2 %v4269_v45, %s4608_s18 }
 0xd80   :  { %v4236_v0 = vpop.permute.xlu1 %4235 }
 0xd81   :  { %v4238_v9 = vunpack.i.h.bf16 %v4236_v0  ;;  %v4237_v55 = vunpack.i.l.bf16 %v4236_v0 }
 0xd82   :  { %v4251_v53 = vpop.permute.xlu2 %4250 }
 0xd83   :  { %v4294_v38 = vpack.i.bf16 %v4222_v30, %v4238_v9  ;;  %v4252_v19 = vunpack.i.l.bf16 %v4251_v53  ;;  %v4253_v5 = vunpack.i.h.bf16 %v4251_v53 }
 0xd85   :  { %v2443_v20 = vsel %vm1447_vm5, %v5991_v23, %v4252_v19 }
 0xd86   :  { %4275 = vrot.lane.b32.xlu2 %v4274_v42, %s4595_s14  ;;  %v4299_v62 = vpack.i.bf16 %v5956_v52, %v2443_v20  ;;  %v2562_v52 = vld [vmem:[%s6737_s23 + $0x10] sm:$0x3] }
 0xd88   :  { %v4241_v7 = vpop.permute.xlu1 %4240 }
 0xd89   :  { %v4243_v16 = vunpack.i.h.bf16 %v4241_v7  ;;  %v4242_v47 = vunpack.i.l.bf16 %v4241_v7 }
 0xd8a   :  { %v4256_v23 = vpop.permute.xlu2 %4255 }
 0xd8b   :  { %v2417_v8 = vsel %vm1447_vm5, %v6045_v2, %v4242_v47  ;;  %v4279_v39 = vpack.i.bf16 %v4243_v16, %v4218_v13  ;;  %v4289_v2 = vpack.i.bf16 %v4247_v1, %v4237_v55  ;;  %v4257_v35 = vunpack.i.l.bf16 %v4256_v23 }
 0xd8c   :  { %v4284_v28 = vpack.i.bf16 %v5807_v18, %v2417_v8  ;;  %v4227_v18 = vunpack.i.l.bf16 %v4226_v6  ;;  %v4258_v10 = vunpack.i.h.bf16 %v4256_v23 }
 0xd8d   :  { %4280 = vrot.lane.b32.xlu1 %v4279_v39, %s4609_s8 }
 0xd8e   :  { %4285 = vrot.lane.b32.xlu0 %v4284_v28, %s4595_s14  ;;  %4305 = vrot.lane.b32.xlu2 %v6736_v11, %s4608_s18  ;;  %v4309_v46 = vpack.i.bf16 %v4227_v18, %v4248_v36 }
 0xd95   :  { %4295 = vrot.lane.b32.xlu1 %v4294_v38, %s4595_s14 }
 0xd96   :  { %2445 = vrot.lane.b32.xlu2 %v5919_v54, %s4608_s18  ;;  %4290 = vrot.lane.b32.xlu0 %v4289_v2, %s4608_s18  ;;  %v2560_v54 = vld [vmem:[%s6737_s23] sm:$0xff] }
 0xd9d   :  { %4300 = vrot.lane.b32.xlu1 %v4299_v62, %s4609_s8 }
 0xd9e   :  { %2570 = vperm.xlu2 %3718, %v2561_v61   ;;  %4310 = vrot.lane.b32.xlu0 %v4309_v46, %s4609_s8  ;;  %v4261_v15 = vpop.permute.xlu0 %4260 }
 0xd9f   :  { %v4263_v57 = vunpack.i.h.bf16 %v4261_v15  ;;  %v4262_v3 = vunpack.i.l.bf16 %v4261_v15 }
 0xda1   :  { %v2365_v47 = vsel %vm1447_vm5, %v6153_v40, %v4263_v57 }
 0xda5   :  { %4320 = vrot.lane.b32.xlu1 %v4319_v59, %s4609_s8 }
 0xda6   :  { %4315 = vrot.lane.b32.xlu0 %v4314_v32, %s4595_s14 }
 0xdad   :  { %2501 = vrot.lane.b32.xlu1 %v6084_v37, %s4609_s8 }
 0xdae   :  { %2473 = vrot.lane.b32.xlu0 %v6020_v60, %s4595_s14  ;;  %s6738_s14 = sld [smem:[#allocation16_spill]] }
 0xdb5   :  { %2565 = vperm.xlu1 %3602, %v2560_v54  }
 0xdb6   :  { %2575 = vperm.xlu0 %3601, %v2562_v52  }
 0xdc7   :  { %v4266_v33 = vpop.permute.xlu1 %4265 }
 0xdc8   :  { %v4268_v43 = vunpack.i.h.bf16 %v4266_v33  ;;  %v4267_v51 = vunpack.i.l.bf16 %v4266_v33 }
 0xdca   :  { %v2535_v16 = vsel %vm2528_vm13, %v4258_v10, %v4267_v51  ;;  %v2534_v28 = vsel %vm2528_vm13, %v4262_v3, %v4268_v43 }
 0xdd8   :  { %v4271_v63 = vpop.permute.xlu2 %4270 }
 0xdd9   :  { %v4272_v0 = vunpack.i.l.bf16 %v4271_v63  ;;  %v4273_v11 = vunpack.i.h.bf16 %v4271_v63 }
 0xddb   :  { %v2533_v40 = vsel %vm2528_vm13, %v2365_v47, %v4272_v0  ;;  %v2532_v32 = vsel %vm2528_vm13, %v6138_v14, %v4273_v11 }
 0xde0   :  { %v4276_v59 = vpop.permute.xlu2 %4275 }
 0xde1   :  { %v4277_v27 = vunpack.i.l.bf16 %v4276_v59  ;;  %v4278_v42 = vunpack.i.h.bf16 %v4276_v59 }
 0xde3   :  { %v2544_v39 = vsel %vm994_vm10, %v2535_v16, %v4277_v27  ;;  %v2543_v2 = vsel %vm994_vm10, %v2534_v28, %v4278_v42 }
 0xde8   :  { %v4306_v21 = vpop.permute.xlu2 %4305 }
 0xde9   :  { %v4307_v9 = vunpack.i.l.bf16 %v4306_v21  ;;  %v4308_v19 = vunpack.i.h.bf16 %v4306_v21 }
 0xdeb   :  { %v2531_v54 = vsel %vm2528_vm13, %v6167_v56, %v4307_v9 }
 0xdf0   :  { %v2446_v33 = vpop.permute.xlu2 %2445 }
 0xdff   :  { %v4281_v41 = vpop.permute.xlu1 %4280 }
 0xe00   :  { %v6216_v49 = vpop.permute.xlu0 %4285  ;;  %v4282_v45 = vunpack.i.l.bf16 %v4281_v41  ;;  %v4283_v13 = vunpack.i.h.bf16 %v4281_v41  ;;  %v2530_v41 = vsel %vm2528_vm13, %v6161_v34, %v4308_v19 }
 0xe01   :  { %v4287_v8 = vunpack.i.l.bf16 %v6216_v49  ;;  %v4288_v1 = vunpack.i.h.bf16 %v6216_v49 }
 0xe02   :  { %v2554_v53 = vsel %vm2547_vm9, %v2544_v39, %v4282_v45  ;;  %v2553_v36 = vsel %vm2547_vm9, %v2543_v2, %v4283_v13 }
 0xe03   :  { %v2542_v61 = vsel %vm994_vm10, %v2533_v40, %v4287_v8  ;;  %v2541_v52 = vsel %vm994_vm10, %v2532_v32, %v4288_v1 }
 0xe07   :  { %v4296_v12 = vpop.permute.xlu1 %4295 }
 0xe08   :  { %v4291_v22 = vpop.permute.xlu0 %4290  ;;  %v4297_v25 = vunpack.i.l.bf16 %v4296_v12  ;;  %v4298_v6 = vunpack.i.h.bf16 %v4296_v12  ;;  %v2529_v12 = vsel %vm2528_vm13, %v6172_v26, %v2446_v33 }
 0xe09   :  { %v4292_v17 = vunpack.i.l.bf16 %v4291_v22  ;;  %v4293_v37 = vunpack.i.h.bf16 %v4291_v22 }
 0xe0b   :  { %v2537_v60 = vsel %vm2528_vm13, %v4253_v5, %v4292_v17  ;;  %v2536_v29 = vsel %vm2528_vm13, %v4257_v35, %v4293_v37  ;;  %v2557_v37 = vld [vmem:[%s6738_s14] sm:$0xff]  ;;  %v2558_v35 = vld [vmem:[%s6738_s14 + $0x8] sm:$0xff] }
 0xe0c   :  { %v2546_v31 = vsel %vm994_vm10, %v2537_v60, %v4297_v25  ;;  %v2545_v7 = vsel %vm994_vm10, %v2536_v29, %v4298_v6  ;;  %v2559_v60 = vld [vmem:[%s6738_s14 + $0x10] sm:$0x3]  ;;  %v2571_v25 = vpop.permute.xlu2 %2570 }
 0xe0f   :  { %v4301_v58 = vpop.permute.xlu1 %4300 }
 0xe10   :  { %v4311_v24 = vpop.permute.xlu0 %4310  ;;  %v4302_v55 = vunpack.i.l.bf16 %v4301_v58  ;;  %v4303_v18 = vunpack.i.h.bf16 %v4301_v58 }
 0xe11   :  { %v4313_v48 = vunpack.i.h.bf16 %v4311_v24  ;;  %v4312_v4 = vunpack.i.l.bf16 %v4311_v24 }
 0xe12   :  { %v2552_v46 = vsel %vm2547_vm9, %v2542_v61, %v4302_v55  ;;  %v2551_v63 = vsel %vm2547_vm9, %v2541_v52, %v4303_v18 }
 0xe13   :  { %v2556_v50 = vsel %vm2547_vm9, %v2546_v31, %v4312_v4  ;;  %v2555_v44 = vsel %vm2547_vm9, %v2545_v7, %v4313_v48 }
 0xe14   :  { %2595 = vmatpush.msrb.mxu1 %v2556_v50 }
 0xe16   :  { %2596 = vmatpush.msrb.mxu1 %v2555_v44 }
 0xe17   :  { %v4321_v30 = vpop.permute.xlu1 %4320 }
 0xe18   :  { %v4316_v38 = vpop.permute.xlu0 %4315  ;;  %2597 = vmatpush.msrb.mxu1 %v2554_v53  ;;  %v4322_v15 = vunpack.i.l.bf16 %v4321_v30  ;;  %v4323_v49 = vunpack.i.h.bf16 %v4321_v30 }
 0xe19   :  { %v4317_v20 = vunpack.i.l.bf16 %v4316_v38  ;;  %v4318_v62 = vunpack.i.h.bf16 %v4316_v38 }
 0xe1a   :  { %2598 = vmatpush.msrb.mxu1 %v2553_v36 }
 0xe1b   :  { %v2540_v23 = vsel %vm994_vm10, %v2531_v54, %v4317_v20  ;;  %v2539_v14 = vsel %vm994_vm10, %v2530_v41, %v4318_v62 }
 0xe1c   :  { %2599 = vmatpush.msrb.mxu1 %v2552_v46  ;;  %v2550_v56 = vsel %vm2547_vm9, %v2540_v23, %v4322_v15  ;;  %v2549_v5 = vsel %vm2547_vm9, %v2539_v14, %v4323_v49 }
 0xe1e   :  { %2600 = vmatpush.msrb.mxu1 %v2551_v63 }
 0xe1f   :  { %v2502_v59 = vpop.permute.xlu1 %2501 }
 0xe20   :  { %v2474_v22 = vpop.permute.xlu0 %2473  ;;  %2601 = vmatpush.msrb.mxu1 %v2550_v56 }
 0xe21   :  { %v2538_v17 = vsel %vm994_vm10, %v2529_v12, %v2474_v22  ;;  %vm2823_vm10 = vcmask 293888  }
 0xe22   :  { %2602 = vmatpush.msrb.mxu1 %v2549_v5  ;;  %v2548_v34 = vsel %vm2547_vm9, %v2538_v17, %v2502_v59 }
 0xe24   :  { %2603 = vmatpush.msrb.mxu1 %v2548_v34 }
 0xe25   :  { %3516 = vmatmul.msk.f32.vlgmr.msrb.gmra.mxu1 %vm2578_vm7, %v2557_v37 }
 0xe27   :  { %v2566_v58 = vpop.permute.xlu1 %2565 }
 0xe28   :  { %v2576_v4 = vpop.permute.xlu0 %2575 }
 0xe2d   :  { %3517 = vmatmul.msk.f32.gmra.mxu1 %vm2578_vm7, %v2558_v35 }
 0xe35   :  { %3518 = vmatmul.msk.f32.gmra.mxu1 %vm2578_vm7, %v2559_v60 }
 0xea2   :  { %v2605_v26 = vpop.f32.mrf.mxu1 }
 0xea3   :  { %v2606_v57 = vadd.f32 %v2605_v26, %v2566_v58 }
 0xea5   :  { %v2614_v43 = vmax.f32 %v2606_v57, 0.0 }
 0xea7   :  { %2653 = vrot.lane.b32.xlu0 %v2614_v43, %s4610_s22 }
 0xeaa   :  { %v2608_v24 = vpop.f32.mrf.mxu1 }
 0xeab   :  { %v2609_v51 = vadd.f32 %v2608_v24, %v2571_v25 }
 0xead   :  { %v2615_v48 = vmax.f32 %v2609_v51, 0.0 }
 0xeaf   :  { %2686 = vrot.lane.b32.xlu1 %v2615_v48, %s4598_s26  ;;  %2655 = vrot.lane.b32.xlu2 %v2615_v48, %s4610_s22 }
 0xeb2   :  { %v2611_v29 = vpop.f32.mrf.mxu1 }
 0xeb3   :  { %v2612_v27 = vadd.f32 %v2611_v29, %v2576_v4 }
 0xeb5   :  { %v2616_v6 = vmax.f32 %v2612_v27, 0.0 }
 0xeb7   :  { %2717 = vrot.lane.b32.xlu1 %v2615_v48, %s4611_s20  ;;  %2688 = vrot.lane.b32.xlu2 %v2616_v6, %s4598_s26 }
 0xeb8   :  { %2657 = vrot.lane.b32.xlu0 %v2616_v6, %s4610_s22 }
 0xebf   :  { %2719 = vrot.lane.b32.xlu2 %v2616_v6, %s4611_s20  ;;  %2715 = vrot.lane.b32.xlu1 %v2614_v43, %s4611_s20 }
 0xec0   :  { %2684 = vrot.lane.b32.xlu0 %v2614_v43, %s4598_s26  ;;  %s6739_s26 = sld [smem:[#allocation19_spill]] }
 0xec7   :  { %2622 = vrot.lane.b32.xlu2 %v2615_v48, %s4575_s28  ;;  %2620 = vrot.lane.b32.xlu1 %v2614_v43, %s4575_s28 }
 0xec8   :  { %2624 = vrot.lane.b32.xlu0 %v2616_v6, %s4575_s28 }
 0xf09   :  { %v2656_v31 = vpop.permute.xlu2 %2655 }
 0xf0a   :  { %v2663_v10 = vsel %vm142_vm0, 0.0, %v2656_v31 }
 0xf0b   :  { %v6264_v21 = vsel %vm665_vm12, %v2663_v10, 0.0 }
 0xf0c   :  { %v2672_v42 = vrot.slane %v6264_v21, 6 }
 0xf11   :  { %v2689_v3 = vpop.permute.xlu2 %2688 }
 0xf12   :  { %v2695_v44 = vsel %vm142_vm0, 0.0, %v2689_v3 }
 0xf13   :  { %v6277_v8 = vsel %vm665_vm12, %v2695_v44, 0.0 }
 0xf14   :  { %v2705_v9 = vrot.slane %v6277_v8, 6 }
 0xf19   :  { %v2654_v45 = vpop.permute.xlu0 %2653  ;;  %v2720_v53 = vpop.permute.xlu2 %2719 }
 0xf1a   :  { %v2662_v50 = vsel %vm142_vm0, 0.0, %v2654_v45  ;;  %v2726_v20 = vsel %vm142_vm0, 0.0, %v2720_v53  ;;  %v2811_v53 = vld [vmem:[%s6739_s26] sm:$0xff] }
 0xf1b   :  { %v6268_v0 = vsel %vm665_vm12, %v2662_v50, 0.0  ;;  %v2729_v46 = vsel %vm665_vm12, %v2726_v20, 0.0 }
 0xf1c   :  { %v4359_v7 = vpack.i.bf16 %v6268_v0, %v6264_v21  ;;  %v2671_v13 = vrot.slane %v6268_v0, 6  ;;  %v2736_v49 = vrot.slane %v2729_v46, 6  ;;  %v2812_v21 = vld [vmem:[%s6739_s26 + $0x8] sm:$0x1] }
 0xf1e   :  { %v2673_v16 = vsel %vm157_vm3, %v2671_v13, %v2672_v42 }
 0xf1f   :  { %v4324_v47 = vpack.i.bf16 %v2671_v13, %v2673_v16 }
 0xf21   :  { %v2687_v39 = vpop.permute.xlu1 %2686  ;;  %4325 = vrot.lane.b32.xlu1 %v4324_v47, %s4577_s5  ;;  %v2623_v52 = vpop.permute.xlu2 %2622 }
 0xf22   :  { %v2694_v28 = vsel %vm142_vm0, 0.0, %v2687_v39  ;;  %v2630_v22 = vsel %vm142_vm0, 0.0, %v2623_v52 }
 0xf23   :  { %v6282_v11 = vsel %vm665_vm12, %v2694_v28, 0.0  ;;  %v6311_v35 = vsel %vm665_vm12, %v2630_v22, 0.0 }
 0xf24   :  { %v2703_v55 = vrot.slane %v6282_v11, 6  ;;  %v2639_v43 = vrot.slane %v6311_v35, 6 }
 0xf26   :  { %v2706_v30 = vsel %vm157_vm3, %v2703_v55, %v2705_v9 }
 0xf27   :  { %2711 = vrot.lane.b32.xlu0 %v2706_v30, %s4577_s5 }
 0xf29   :  { %v2718_v1 = vpop.permute.xlu1 %2717 }
 0xf2a   :  { %v2658_v38 = vpop.permute.xlu0 %2657  ;;  %v2725_v19 = vsel %vm142_vm0, 0.0, %v2718_v1 }
 0xf2b   :  { %v2664_v2 = vsel %vm142_vm0, 0.0, %v2658_v38  ;;  %v6294_v62 = vsel %vm665_vm12, %v2725_v19, 0.0 }
 0xf2c   :  { %v2667_v40 = vsel %vm665_vm12, %v2664_v2, 0.0  ;;  %v2734_v23 = vrot.slane %v6294_v62, 6 }
 0xf2d   :  { %v2674_v18 = vrot.slane %v2667_v40, 6 }
 0xf2e   :  { %v2737_v34 = vsel %vm157_vm3, %v2734_v23, %v2736_v49 }
 0xf2f   :  { %v2675_v36 = vsel %vm157_vm3, %v2672_v42, %v2674_v18 }
 0xf30   :  { %2680 = vrot.lane.b32.xlu2 %v2675_v36, %s4577_s5 }
 0xf31   :  { %v2716_v61 = vpop.permute.xlu1 %2715 }
 0xf32   :  { %v2724_v32 = vsel %vm142_vm0, 0.0, %v2716_v61  ;;  %v2685_v54 = vpop.permute.xlu0 %2684 }
 0xf33   :  { %v2727_v33 = vsel %vm665_vm12, %v2724_v32, 0.0  ;;  %v2693_v15 = vsel %vm142_vm0, 0.0, %v2685_v54 }
 0xf34   :  { %v4369_v63 = vpack.i.bf16 %v2727_v33, %v6294_v62  ;;  %v2733_v41 = vrot.slane %v2727_v33, 6  ;;  %v2696_v14 = vsel %vm665_vm12, %v2693_v15, 0.0 }
 0xf35   :  { %v4364_v56 = vpack.i.bf16 %v2696_v14, %v6282_v11  ;;  %v2702_v12 = vrot.slane %v2696_v14, 6 }
 0xf36   :  { %v2735_v59 = vsel %vm157_vm3, %v2733_v41, %v2734_v23 }
 0xf37   :  { %v4334_v17 = vpack.i.bf16 %v2733_v41, %v2735_v59  ;;  %v2704_v5 = vsel %vm157_vm3, %v2702_v12, %v2703_v55 }
 0xf38   :  { %v4329_v37 = vpack.i.bf16 %v2702_v12, %v2704_v5  ;;  %2742 = vrot.lane.b32.xlu2 %v2737_v34, %s4577_s5 }
 0xf39   :  { %v2621_v60 = vpop.permute.xlu1 %2620  ;;  %4335 = vrot.lane.b32.xlu1 %v4334_v17, %s4577_s5 }
 0xf3a   :  { %v2629_v58 = vsel %vm142_vm0, 0.0, %v2621_v60  ;;  %4330 = vrot.lane.b32.xlu0 %v4329_v37, %s4577_s5  ;;  %v2625_v57 = vpop.permute.xlu0 %2624 }
 0xf3b   :  { %v6317_v26 = vsel %vm665_vm12, %v2629_v58, 0.0  ;;  %v2631_v51 = vsel %vm142_vm0, 0.0, %v2625_v57 }
 0xf3c   :  { %v2638_v25 = vrot.slane %v6317_v26, 6  ;;  %v2634_v4 = vsel %vm665_vm12, %v2631_v51, 0.0 }
 0xf3d   :  { %v2641_v29 = vrot.slane %v2634_v4, 6 }
 0xf3e   :  { %v2640_v24 = vsel %vm157_vm3, %v2638_v25, %v2639_v43 }
 0xf3f   :  { %v4339_v48 = vpack.i.bf16 %v2638_v25, %v2640_v24  ;;  %v2642_v27 = vsel %vm157_vm3, %v2639_v43, %v2641_v29  ;;  %v2809_v29 = vld [vmem:[%s6740_s1] sm:$0xff] }
 0xf41   :  { %4340 = vrot.lane.b32.xlu2 %v4339_v48, %s4577_s5 }
 0xf49   :  { %2647 = vrot.lane.b32.xlu2 %v2642_v27, %s4577_s5  ;;  %v2810_v27 = vld [vmem:[%s6740_s1 + $0x8] sm:$0x1] }
 0xf8a   :  { %v2681_v50 = vpop.permute.xlu2 %2680 }
 0xf92   :  { %v2743_v13 = vpop.permute.xlu2 %2742 }
 0xf93   :  { %v4326_v6 = vpop.permute.xlu1 %4325 }
 0xf94   :  { %v4328_v31 = vunpack.i.h.bf16 %v4326_v6  ;;  %v4327_v10 = vunpack.i.l.bf16 %v4326_v6 }
 0xf96   :  { %v2683_v45 = vsel %vm157_vm3, %v2667_v40, %v4328_v31 }
 0xf97   :  { %v4344_v3 = vpack.i.bf16 %v2683_v45, %v4327_v10 }
 0xf99   :  { %4345 = vrot.lane.b32.xlu0 %v4344_v3, %s4607_s16  ;;  %v2712_v42 = vpop.permute.xlu0 %2711 }
 0xf9a   :  { %2771 = vrot.lane.b32.xlu1 %v2712_v42, %s4604_s3 }
 0xf9b   :  { %v4341_v0 = vpop.permute.xlu2 %4340 }
 0xf9c   :  { %v4343_v20 = vunpack.i.h.bf16 %v4341_v0  ;;  %v4342_v36 = vunpack.i.l.bf16 %v4341_v0 }
 0xf9e   :  { %v2652_v33 = vsel %vm157_vm3, %v2634_v4, %v4343_v20 }
 0xfa2   :  { %2787 = vrot.lane.b32.xlu1 %v2743_v13, %s4603_s29 }
 0xfa3   :  { %v2648_v2 = vpop.permute.xlu2 %2647 }
 0xfaa   :  { %4360 = vrot.lane.b32.xlu1 %v4359_v7, %s4607_s16 }
 0xfab   :  { %v4336_v44 = vpop.permute.xlu1 %4335 }
 0xfac   :  { %v4338_v16 = vunpack.i.h.bf16 %v4336_v44  ;;  %v4337_v47 = vunpack.i.l.bf16 %v4336_v44  ;;  %v4331_v39 = vpop.permute.xlu0 %4330 }
 0xfad   :  { %v4333_v28 = vunpack.i.h.bf16 %v4331_v39  ;;  %v4332_v11 = vunpack.i.l.bf16 %v4331_v39 }
 0xfae   :  { %v2745_v9 = vsel %vm157_vm3, %v2729_v46, %v4338_v16 }
 0xfaf   :  { %v4354_v55 = vpack.i.bf16 %v2745_v9, %v4337_v47  ;;  %v2714_v30 = vsel %vm157_vm3, %v6277_v8, %v4333_v28 }
 0xfb0   :  { %v4349_v1 = vpack.i.bf16 %v2714_v30, %v4332_v11 }
 0xfb1   :  { %4355 = vrot.lane.b32.xlu0 %v4354_v55, %s4603_s29 }
 0xfb2   :  { %4350 = vrot.lane.b32.xlu2 %v4349_v1, %s4604_s3  ;;  %2815 = vperm.xlu1 %3602, %v2811_v53  }
 0xfb9   :  { %2755 = vrot.lane.b32.xlu0 %v2681_v50, %s4607_s16 }
 0xfba   :  { %4365 = vrot.lane.b32.xlu2 %v4364_v56, %s4604_s3 }
 0xfc1   :  { %4370 = vrot.lane.b32.xlu0 %v4369_v63, %s4603_s29 }
 0xfc2   :  { %2820 = vperm.xlu2 %3718, %v2812_v21  }
0x100b   :  { %v4346_v38 = vpop.permute.xlu0 %4345 }
0x100c   :  { %v2772_v7 = vpop.permute.xlu1 %2771  ;;  %v4351_v19 = vpop.permute.xlu2 %4350  ;;  %v4347_v18 = vunpack.i.l.bf16 %v4346_v38  ;;  %v4348_v62 = vunpack.i.h.bf16 %v4346_v38 }
0x100d   :  { %v4352_v61 = vunpack.i.l.bf16 %v4351_v19  ;;  %v4353_v15 = vunpack.i.h.bf16 %v4351_v19 }
0x100e   :  { %v2797_v23 = vsel %vm665_vm12, %v4342_v36, %v4347_v18  ;;  %v2796_v56 = vsel %vm665_vm12, %v2652_v33, %v4348_v62 }
0x100f   :  { %v2802_v12 = vsel %vm891_vm6, %v2797_v23, %v4352_v61  ;;  %v2801_v5 = vsel %vm891_vm6, %v2796_v56, %v4353_v15 }
0x1014   :  { %v2788_v8 = vpop.permute.xlu1 %2787  ;;  %v4366_v22 = vpop.permute.xlu2 %4365 }
0x1015   :  { %v4367_v60 = vunpack.i.l.bf16 %v4366_v22  ;;  %v4368_v24 = vunpack.i.h.bf16 %v4366_v22 }
0x101c   :  { %v4361_v46 = vpop.permute.xlu1 %4360  ;;  %v2821_v45 = vpop.permute.xlu2 %2820 }
0x101d   :  { %v4362_v41 = vunpack.i.l.bf16 %v4361_v46  ;;  %v4363_v59 = vunpack.i.h.bf16 %v4361_v46 }
0x101f   :  { %v2795_v37 = vsel %vm665_vm12, %v6311_v35, %v4362_v41  ;;  %v2794_v25 = vsel %vm665_vm12, %v6317_v26, %v4363_v59 }
0x1020   :  { %v2800_v51 = vsel %vm891_vm6, %v2795_v37, %v4367_v60  ;;  %v2799_v4 = vsel %vm891_vm6, %v2794_v25, %v4368_v24 }
0x1023   :  { %v4356_v40 = vpop.permute.xlu0 %4355 }
0x1024   :  { %v4357_v54 = vunpack.i.l.bf16 %v4356_v40  ;;  %v4358_v14 = vunpack.i.h.bf16 %v4356_v40  ;;  %v2816_v6 = vpop.permute.xlu1 %2815 }
0x1026   :  { %v2807_v17 = vsel %vm516_vm11, %v2802_v12, %v4357_v54  ;;  %v2806_v34 = vsel %vm516_vm11, %v2801_v5, %v4358_v14 }
0x102b   :  { %v2756_v32 = vpop.permute.xlu0 %2755 }
0x102c   :  { %v2798_v52 = vsel %vm665_vm12, %v2648_v2, %v2756_v32 }
0x102d   :  { %v2803_v63 = vsel %vm891_vm6, %v2798_v52, %v2772_v7 }
0x102e   :  { %v2808_v49 = vsel %vm516_vm11, %v2803_v63, %v2788_v8 }
0x102f   :  { %3519 = vmatpush.msk.msra.mxu0 %vm1447_vm5, %v2808_v49 }
0x1031   :  { %2845 = vmatpush.msra.mxu0 %v2807_v17 }
0x1033   :  { %v4371_v58 = vpop.permute.xlu0 %4370  ;;  %2846 = vmatpush.msra.mxu0 %v2806_v34 }
0x1034   :  { %v4373_v57 = vunpack.i.h.bf16 %v4371_v58  ;;  %v4372_v43 = vunpack.i.l.bf16 %v4371_v58 }
0x1036   :  { %v2805_v48 = vsel %vm516_vm11, %v2800_v51, %v4372_v43  ;;  %v2804_v35 = vsel %vm516_vm11, %v2799_v4, %v4373_v57 }
0x1037   :  { %2847 = vmatpush.msra.mxu0 %v2805_v48 }
0x1039   :  { %2848 = vmatpush.msra.mxu0 %v2804_v35 }
0x103a   :  { %3520 = vmatmul.msk.f32.vlgmr.msra.gmra.mxu0 %vm2823_vm10, %v2809_v29 }
0x1042   :  { %3521 = vmatmul.msk.f32.gmra.mxu0 %vm2823_vm10, %v2810_v27 }
0x10b7   :  { %v2850_v31 = vpop.f32.mrf.mxu0 }
0x10b8   :  { %v2851_v10 = vadd.f32 %v2850_v31, %v2816_v6 }
0x10ba   :  { %v2856_v26 = vmax.f32 %v2851_v10, 0.0 }
0x10bc   :  { %2924 = vrot.lane.b32.xlu2 %v2856_v26, %s4612_s19  ;;  %2893 = vrot.lane.b32.xlu0 %v2856_v26, %s4613_s24 }
0x10bf   :  { %v2853_v50 = vpop.f32.mrf.mxu0 }
0x10c0   :  { %v2854_v3 = vadd.f32 %v2853_v50, %v2821_v45 }
0x10c2   :  { %v2857_v42 = vmax.f32 %v2854_v3, 0.0 }
0x10c4   :  { %2895 = vrot.lane.b32.xlu1 %v2857_v42, %s4613_s24  ;;  %2957 = vrot.lane.b32.xlu2 %v2857_v42, %s4614_s30 }
0x10c5   :  { %2926 = vrot.lane.b32.xlu0 %v2857_v42, %s4612_s19 }
0x10cc   :  { %2955 = vrot.lane.b32.xlu1 %v2856_v26, %s4614_s30 }
0x10cd   :  { %2860 = vrot.lane.b32.xlu0 %v2856_v26, %s4575_s28 }
0x10d4   :  { %2862 = vrot.lane.b32.xlu1 %v2857_v42, %s4575_s28 }
0x1116   :  { %v2925_v13 = vpop.permute.xlu2 %2924 }
0x1117   :  { %v2930_v44 = vsel %vm142_vm0, 0.0, %v2925_v13 }
0x1118   :  { %v6376_v16 = vsel %vm2868_vm8, %v2930_v44, 0.0 }
0x1119   :  { %v2945_v11 = vrot.slane %v6376_v16, 6  ;;  %v2936_v19 = vrot.slane %v6376_v16, 7 }
0x111e   :  { %v2958_v21 = vpop.permute.xlu2 %2957 }
0x111f   :  { %v2962_v20 = vsel %vm142_vm0, 0.0, %v2958_v21 }
0x1120   :  { %v6404_v32 = vsel %vm2868_vm8, %v2962_v20, 0.0 }
0x1121   :  { %v2968_v15 = vrot.slane %v6404_v32, 7  ;;  %v2977_v12 = vrot.slane %v6404_v32, 6 }
0x112e   :  { %v2894_v47 = vpop.permute.xlu0 %2893 }
0x112f   :  { %v2899_v39 = vsel %vm142_vm0, 0.0, %v2894_v47 }
0x1130   :  { %v6380_v28 = vsel %vm2868_vm8, %v2899_v39, 0.0 }
0x1131   :  { %v2914_v9 = vrot.slane %v6380_v28, 6  ;;  %v2905_v38 = vrot.slane %v6380_v28, 7 }
0x1133   :  { %v4374_v55 = vpack.i.bf16 %v2945_v11, %v2914_v9 }
0x1135   :  { %4375 = vrot.lane.b32.xlu1 %v4374_v55, %s4576_s0 }
0x1136   :  { %v2896_v30 = vpop.permute.xlu1 %2895 }
0x1137   :  { %v2900_v53 = vsel %vm142_vm0, 0.0, %v2896_v30  ;;  %v2927_v1 = vpop.permute.xlu0 %2926 }
0x1138   :  { %v6387_v0 = vsel %vm2868_vm8, %v2900_v53, 0.0  ;;  %v2931_v7 = vsel %vm142_vm0, 0.0, %v2927_v1 }
0x1139   :  { %v2906_v2 = vrot.slane %v6387_v0, 7  ;;  %v2915_v8 = vrot.slane %v6387_v0, 6  ;;  %v6394_v40 = vsel %vm2868_vm8, %v2931_v7, 0.0 }
0x113a   :  { %v2937_v18 = vrot.slane %v6394_v40, 7  ;;  %v2946_v52 = vrot.slane %v6394_v40, 6 }
0x113b   :  { %v2907_v36 = vsel %vm155_vm2, %v2905_v38, %v2906_v2  ;;  %v2916_v62 = vsel %vm157_vm3, %v2914_v9, %v2915_v8  ;;  %v3044_v2 = vld [vmem:[%s4769_s4 + $0x8] sm:$0xff]  ;;  %v3043_v8 = vld [vmem:[%s4769_s4] sm:$0xff] }
0x113c   :  { %v2938_v61 = vsel %vm155_vm2, %v2936_v19, %v2937_v18  ;;  %2919 = vrot.lane.b32.xlu2 %v2916_v62, %s4576_s0  ;;  %v2947_v56 = vsel %vm157_vm3, %v2945_v11, %v2946_v52 }
0x113d   :  { %v4379_v46 = vpack.i.bf16 %v2938_v61, %v2907_v36 }
0x113e   :  { %v2956_v54 = vpop.permute.xlu1 %2955 }
0x113f   :  { %v2961_v23 = vsel %vm142_vm0, 0.0, %v2956_v54  ;;  %4380 = vrot.lane.b32.xlu0 %v4379_v46, %s4577_s5  ;;  %v2861_v49 = vpop.permute.xlu0 %2860 }
0x1140   :  { %v6410_v33 = vsel %vm2868_vm8, %v2961_v23, 0.0  ;;  %v2866_v59 = vsel %vm142_vm0, 0.0, %v2861_v49 }
0x1141   :  { %v2967_v63 = vrot.slane %v6410_v33, 7  ;;  %v2976_v41 = vrot.slane %v6410_v33, 6  ;;  %v6425_v37 = vsel %vm2868_vm8, %v2866_v59, 0.0 }
0x1142   :  { %v2882_v58 = vrot.slane %v6425_v37, 6  ;;  %v2873_v25 = vrot.slane %v6425_v37, 7 }
0x1143   :  { %v2969_v14 = vsel %vm155_vm2, %v2967_v63, %v2968_v15  ;;  %v2978_v5 = vsel %vm157_vm3, %v2976_v41, %v2977_v12  ;;  %v4389_v57 = vpack.i.bf16 %v2967_v63, %v2936_v19 }
0x1144   :  { %2950 = vrot.lane.b32.xlu2 %v2947_v56, %s4576_s0  ;;  %v4384_v22 = vpack.i.bf16 %v2969_v14, %v2905_v38 }
0x1146   :  { %v2863_v17 = vpop.permute.xlu1 %2862  ;;  %4385 = vrot.lane.b32.xlu1 %v4384_v22, %s4577_s5 }
0x1147   :  { %2981 = vrot.lane.b32.xlu0 %v2978_v5, %s4576_s0  ;;  %v2867_v34 = vsel %vm142_vm0, 0.0, %v2863_v17 }
0x1148   :  { %v6428_v60 = vsel %vm2868_vm8, %v2867_v34, 0.0 }
0x1149   :  { %v2874_v43 = vrot.slane %v6428_v60, 7  ;;  %v2883_v24 = vrot.slane %v6428_v60, 6 }
0x114b   :  { %v2875_v51 = vsel %vm155_vm2, %v2873_v25, %v2874_v43  ;;  %v2884_v48 = vsel %vm157_vm3, %v2882_v58, %v2883_v24 }
0x114c   :  { %2979 = vrot.lane.b32.xlu2 %v2976_v41, %s4576_s0  ;;  %v4394_v4 = vpack.i.bf16 %v2873_v25, %v2875_v51 }
0x114e   :  { %2885 = vrot.lane.b32.xlu1 %v2882_v58, %s4576_s0 }
0x114f   :  { %4390 = vrot.lane.b32.xlu0 %v4389_v57, %s4577_s5 }
0x1156   :  { %2887 = vrot.lane.b32.xlu1 %v2884_v48, %s4576_s0 }
0x1157   :  { %4395 = vrot.lane.b32.xlu0 %v4394_v4, %s4577_s5 }
0x1196   :  { %v2920_v29 = vpop.permute.xlu2 %2919 }
0x1197   :  { %2994 = vrot.lane.b32.xlu2 %v2920_v29, %s4607_s16 }
0x119e   :  { %v2951_v35 = vpop.permute.xlu2 %2950 }
0x119f   :  { %3008 = vrot.lane.b32.xlu2 %v2951_v35, %s4604_s3 }
0x11a6   :  { %v2980_v30 = vpop.permute.xlu2 %2979 }
0x11a7   :  { %v4376_v27 = vpop.permute.xlu1 %4375 }
0x11a8   :  { %v4377_v26 = vunpack.i.l.bf16 %v4376_v27  ;;  %v4378_v11 = vunpack.i.h.bf16 %v4376_v27 }
0x11b1   :  { %v4381_v6 = vpop.permute.xlu0 %4380 }
0x11b2   :  { %v4382_v31 = vunpack.i.l.bf16 %v4381_v6  ;;  %v4383_v44 = vunpack.i.h.bf16 %v4381_v6 }
0x11b4   :  { %v2923_v3 = vsel %vm157_vm3, %v4382_v31, %v4377_v26  ;;  %v2954_v53 = vsel %vm157_vm3, %v4383_v44, %v4378_v11 }
0x11b8   :  { %v4386_v10 = vpop.permute.xlu1 %4385 }
0x11b9   :  { %v4387_v45 = vunpack.i.l.bf16 %v4386_v10  ;;  %v2982_v50 = vpop.permute.xlu0 %2981  ;;  %v4388_v47 = vunpack.i.h.bf16 %v4386_v10 }
0x11ba   :  { %3022 = vrot.lane.b32.xlu1 %v2982_v50, %s4603_s29 }
0x11bb   :  { %v2922_v42 = vsel %vm155_vm2, %v6387_v0, %v4387_v45  ;;  %v2985_v1 = vsel %vm157_vm3, %v4388_v47, %v2980_v30 }
0x11bc   :  { %v4399_v13 = vpack.i.bf16 %v2922_v42, %v2923_v3 }
0x11be   :  { %4400 = vrot.lane.b32.xlu0 %v4399_v13, %s4607_s16 }
0x11c0   :  { %v2886_v19 = vpop.permute.xlu1 %2885 }
0x11c1   :  { %v4391_v39 = vpop.permute.xlu0 %4390 }
0x11c2   :  { %v4393_v9 = vunpack.i.h.bf16 %v4391_v39  ;;  %v4392_v55 = vunpack.i.l.bf16 %v4391_v39  ;;  %2988 = vrot.lane.b32.xlu1 %v6380_v28, %s4607_s16  ;;  %v3045_v28 = vld [vmem:[%s4769_s4 + $0x10] sm:$0x3]  ;;  %s6741_s4 = sld [smem:[#allocation20_spill]] }
0x11c4   :  { %v2984_v21 = vsel %vm155_vm2, %v6404_v32, %v4393_v9  ;;  %v2953_v0 = vsel %vm155_vm2, %v6394_v40, %v4392_v55 }
0x11c5   :  { %v4409_v7 = vpack.i.bf16 %v2984_v21, %v2985_v1  ;;  %v4404_v38 = vpack.i.bf16 %v2953_v0, %v2954_v53 }
0x11c7   :  { %4405 = vrot.lane.b32.xlu2 %v4404_v38, %s4604_s3  ;;  %4410 = vrot.lane.b32.xlu0 %v4409_v7, %s4603_s29 }
0x11c8   :  { %v2888_v18 = vpop.permute.xlu1 %2887  ;;  %v3040_v48 = vld [vmem:[%s6741_s4] sm:$0xff]  ;;  %v3041_v29 = vld [vmem:[%s6741_s4 + $0x8] sm:$0xff]  ;;  %v3042_v35 = vld [vmem:[%s6741_s4 + $0x10] sm:$0x3] }
0x11c9   :  { %v4396_v20 = vpop.permute.xlu0 %4395 }
0x11ca   :  { %3053 = vperm.xlu1 %3602, %v3044_v2   ;;  %v4397_v54 = vunpack.i.l.bf16 %v4396_v20  ;;  %v4398_v23 = vunpack.i.h.bf16 %v4396_v20 }
0x11cc   :  { %v2892_v63 = vsel %vm157_vm3, %v4397_v54, %v2886_v19  ;;  %v2891_v14 = vsel %vm155_vm2, %v6428_v60, %v4398_v23 }
0x11cf   :  { %3002 = vrot.lane.b32.xlu2 %v6376_v16, %s4604_s3  ;;  %3016 = vrot.lane.b32.xlu0 %v6410_v33, %s4603_s29 }
0x11d7   :  { %3058 = vperm.xlu2 %3718, %v3045_v28   ;;  %3048 = vperm.xlu0 %3601, %v3043_v8  }
0x11f1   :  { %v2995_v40 = vpop.permute.xlu2 %2994 }
0x11f2   :  { %v3031_v62 = vsel %vm665_vm12, %v2888_v18, %v2995_v40 }
0x11f9   :  { %v3009_v36 = vpop.permute.xlu2 %3008 }
0x11fa   :  { %v3035_v61 = vsel %vm891_vm6, %v3031_v62, %v3009_v36 }
0x1221   :  { %v4406_v33 = vpop.permute.xlu2 %4405 }
0x1222   :  { %v4407_v49 = vunpack.i.l.bf16 %v4406_v33  ;;  %v4408_v17 = vunpack.i.h.bf16 %v4406_v33 }
0x1229   :  { %v3003_v25 = vpop.permute.xlu2 %3002 }
0x122c   :  { %v3023_v46 = vpop.permute.xlu1 %3022 }
0x122d   :  { %v3039_v32 = vsel %vm516_vm11, %v3035_v61, %v3023_v46 }
0x122e   :  { %3522 = vmatpush.msk.msrb.mxu3 %vm249_vm4, %v3039_v32 }
0x1230   :  { %v4401_v16 = vpop.permute.xlu0 %4400 }
0x1231   :  { %v4402_v52 = vunpack.i.l.bf16 %v4401_v16  ;;  %v4403_v15 = vunpack.i.h.bf16 %v4401_v16  ;;  %v3059_v3 = vpop.permute.xlu2 %3058 }
0x1233   :  { %v3030_v41 = vsel %vm665_vm12, %v2892_v63, %v4402_v52  ;;  %v3029_v59 = vsel %vm665_vm12, %v2891_v14, %v4403_v15 }
0x1234   :  { %v2989_v5 = vpop.permute.xlu1 %2988  ;;  %v3034_v34 = vsel %vm891_vm6, %v3030_v41, %v4407_v49  ;;  %v3033_v57 = vsel %vm891_vm6, %v3029_v59, %v4408_v17 }
0x1235   :  { %v3028_v60 = vsel %vm665_vm12, %v6425_v37, %v2989_v5 }
0x1236   :  { %v3032_v51 = vsel %vm891_vm6, %v3028_v60, %v3003_v25 }
0x1239   :  { %v4411_v56 = vpop.permute.xlu0 %4410 }
0x123a   :  { %v4413_v12 = vunpack.i.h.bf16 %v4411_v56  ;;  %v4412_v22 = vunpack.i.l.bf16 %v4411_v56 }
0x123c   :  { %v3038_v58 = vsel %vm516_vm11, %v3034_v34, %v4412_v22  ;;  %v3037_v43 = vsel %vm516_vm11, %v3033_v57, %v4413_v12  ;;  %v3054_v10 = vpop.permute.xlu1 %3053 }
0x123d   :  { %3087 = vmatpush.msrb.mxu3 %v3038_v58 }
0x123f   :  { %3088 = vmatpush.msrb.mxu3 %v3037_v43 }
0x1241   :  { %v3017_v24 = vpop.permute.xlu0 %3016 }
0x1242   :  { %v3036_v4 = vsel %vm516_vm11, %v3032_v51, %v3017_v24 }
0x1243   :  { %3089 = vmatpush.msrb.mxu3 %v3036_v4 }
0x1244   :  { %3523 = vmatmul.msk.f32.vlgmr.msrb.gmra.mxu3 %vm3061_vm14, %v3040_v48 }
0x1249   :  { %v3049_v27 = vpop.permute.xlu0 %3048 }
0x124c   :  { %3524 = vmatmul.msk.f32.gmra.mxu3 %vm3061_vm14, %v3041_v29 }
0x1254   :  { %3525 = vmatmul.msk.f32.gmra.mxu3 %vm3061_vm14, %v3042_v35 }
0x12c7   :  { %v3091_v6 = vpop.f32.mrf.mxu3 }
0x12c8   :  { %v3092_v37 = vadd.f32 %v3091_v6, %v3049_v27 }
0x12ca   :  { %v3100_v31 = vmax.f32 %v3092_v37, 0.0 }
0x12cc   :  { %3154 = vrot.lane.b32.xlu2 %v3100_v31, %s4613_s24 }
0x12cf   :  { %v3094_v26 = vpop.f32.mrf.mxu3 }
0x12d0   :  { %v3095_v45 = vadd.f32 %v3094_v26, %v3054_v10 }
0x12d2   :  { %v3101_v50 = vmax.f32 %v3095_v45, 0.0 }
0x12d4   :  { %3201 = vrot.lane.b32.xlu0 %v3101_v50, %s4612_s19  ;;  %3156 = vrot.lane.b32.xlu1 %v3101_v50, %s4613_s24 }
0x12d7   :  { %v3097_v42 = vpop.f32.mrf.mxu3 }
0x12d8   :  { %v3098_v13 = vadd.f32 %v3097_v42, %v3059_v3 }
0x12da   :  { %v3102_v44 = vmax.f32 %v3098_v13, 0.0 }
0x12dc   :  { %3246 = vrot.lane.b32.xlu0 %v3101_v50, %s4614_s30  ;;  %3203 = vrot.lane.b32.xlu1 %v3102_v44, %s4612_s19 }
0x12dd   :  { %3158 = vrot.lane.b32.xlu2 %v3102_v44, %s4613_s24 }
0x12e4   :  { %3248 = vrot.lane.b32.xlu1 %v3102_v44, %s4614_s30  ;;  %3244 = vrot.lane.b32.xlu0 %v3100_v31, %s4614_s30 }
0x12e5   :  { %3199 = vrot.lane.b32.xlu2 %v3100_v31, %s4612_s19 }
0x12ec   :  { %3108 = vrot.lane.b32.xlu1 %v3101_v50, %s4575_s28  ;;  %3106 = vrot.lane.b32.xlu0 %v3100_v31, %s4575_s28 }
0x12ed   :  { %3110 = vrot.lane.b32.xlu2 %v3102_v44, %s4575_s28 }
0x1326   :  { %v3155_v47 = vpop.permute.xlu2 %3154 }
0x1327   :  { %v3163_v9 = vsel %vm142_vm0, 0.0, %v3155_v47 }
0x1328   :  { %v6500_v1 = vsel %vm2868_vm8, %v3163_v9, 0.0 }
0x1329   :  { %v3185_v8 = vrot.slane %v6500_v1, 4  ;;  %v3172_v35 = vrot.slane %v6500_v1, 6 }
0x1337   :  { %v3159_v39 = vpop.permute.xlu2 %3158 }
0x1338   :  { %v3165_v54 = vsel %vm142_vm0, 0.0, %v3159_v39 }
0x1339   :  { %v6536_v41 = vsel %vm2868_vm8, %v3165_v54, 0.0 }
0x133a   :  { %v3175_v17 = vrot.slane %v6536_v41, 6 }
0x133f   :  { %v3200_v11 = vpop.permute.xlu2 %3199 }
0x1340   :  { %v3208_v55 = vsel %vm142_vm0, 0.0, %v3200_v11 }
0x1341   :  { %v6505_v7 = vsel %vm2868_vm8, %v3208_v55, 0.0 }
0x1342   :  { %v3230_v32 = vrot.slane %v6505_v7, 4  ;;  %v3217_v57 = vrot.slane %v6505_v7, 6 }
0x1346   :  { %v3202_v30 = vpop.permute.xlu0 %3201  ;;  %v3157_v53 = vpop.permute.xlu1 %3156 }
0x1347   :  { %v3209_v21 = vsel %vm142_vm0, 0.0, %v3202_v30  ;;  %v3164_v0 = vsel %vm142_vm0, 0.0, %v3157_v53  ;;  %v3111_v37 = vpop.permute.xlu2 %3110 }
0x1348   :  { %v6508_v38 = vsel %vm2868_vm8, %v3209_v21, 0.0  ;;  %v6511_v2 = vsel %vm2868_vm8, %v3164_v0, 0.0  ;;  %v3117_v3 = vsel %vm142_vm0, 0.0, %v3111_v37  ;;  %v3188_v21 = vrot.slane %v6536_v41, 4 }
0x1349   :  { %v4499_v28 = vpack.i.bf16 %v6505_v7, %v6508_v38  ;;  %v3186_v19 = vrot.slane %v6511_v2, 4  ;;  %v4489_v40 = vpack.i.bf16 %v6500_v1, %v6511_v2  ;;  %v3231_v36 = vrot.slane %v6508_v38, 4 }
0x134a   :  { %v3218_v14 = vrot.slane %v6508_v38, 6  ;;  %v3173_v49 = vrot.slane %v6511_v2, 6  ;;  %v6583_v30 = vsel %vm2868_vm8, %v3117_v3, 0.0 }
0x134b   :  { %v3187_v18 = vsel %vm1447_vm5, %v3185_v8, %v3186_v19  ;;  %v3232_v23 = vsel %vm1447_vm5, %v3230_v32, %v3231_v36 }
0x134c   :  { %v4414_v20 = vpack.i.bf16 %v3185_v8, %v3187_v18  ;;  %v4419_v56 = vpack.i.bf16 %v3230_v32, %v3232_v23  ;;  %v3176_v25 = vsel %vm157_vm3, %v3173_v49, %v3175_v17  ;;  %v3219_v4 = vsel %vm157_vm3, %v3217_v57, %v3218_v14 }
0x134d   :  { %v4429_v26 = vpack.i.bf16 %v3219_v4, %v3172_v35  ;;  %v3174_v11 = vsel %vm157_vm3, %v3172_v35, %v3173_v49 }
0x134e   :  { %v3247_v62 = vpop.permute.xlu0 %3246  ;;  %v3204_v61 = vpop.permute.xlu1 %3203  ;;  %4415 = vrot.lane.b32.xlu0 %v4414_v20, %s4576_s0  ;;  %v3127_v20 = vrot.slane %v6583_v30, 6 }
0x134f   :  { %v3210_v46 = vsel %vm142_vm0, 0.0, %v3204_v61  ;;  %v3254_v33 = vsel %vm142_vm0, 0.0, %v3247_v62 }
0x1350   :  { %v6527_v16 = vsel %vm2868_vm8, %v3210_v46, 0.0  ;;  %v6542_v12 = vsel %vm2868_vm8, %v3254_v33, 0.0 }
0x1351   :  { %v3233_v52 = vrot.slane %v6527_v16, 4  ;;  %v3220_v15 = vrot.slane %v6527_v16, 6  ;;  %v3276_v24 = vrot.slane %v6542_v12, 4  ;;  %v3263_v10 = vrot.slane %v6542_v12, 6 }
0x1353   :  { %v3234_v63 = vsel %vm1447_vm5, %v3231_v36, %v3233_v52  ;;  %v3221_v5 = vsel %vm157_vm3, %v3218_v14, %v3220_v15  ;;  %v3189_v36 = vsel %vm1447_vm5, %v3186_v19, %v3188_v21  ;;  %v3141_v52 = vrot.slane %v6583_v30, 4 }
0x1354   :  { %3239 = vrot.lane.b32.xlu2 %v3234_v63, %s4576_s0  ;;  %v4439_v29 = vpack.i.bf16 %v3221_v5, %v3176_v25 }
0x1356   :  { %v3249_v22 = vpop.permute.xlu1 %3248  ;;  %v3245_v59 = vpop.permute.xlu0 %3244  ;;  %4420 = vrot.lane.b32.xlu0 %v4419_v56, %s4576_s0 }
0x1357   :  { %v3255_v34 = vsel %vm142_vm0, 0.0, %v3249_v22  ;;  %v3253_v58 = vsel %vm142_vm0, 0.0, %v3245_v59 }
0x1358   :  { %v6551_v60 = vsel %vm2868_vm8, %v3255_v34, 0.0  ;;  %v6554_v43 = vsel %vm2868_vm8, %v3253_v58, 0.0 }
0x1359   :  { %v4504_v51 = vpack.i.bf16 %v6554_v43, %v6542_v12  ;;  %v3275_v48 = vrot.slane %v6554_v43, 4  ;;  %v3265_v27 = vrot.slane %v6551_v60, 6  ;;  %v3262_v61 = vrot.slane %v6554_v43, 6 }
0x135a   :  { %v3278_v46 = vrot.slane %v6551_v60, 4 }
0x135b   :  { %v3277_v6 = vsel %vm1447_vm5, %v3275_v48, %v3276_v24  ;;  %v3266_v42 = vsel %vm157_vm3, %v3263_v10, %v3265_v27  ;;  %v3264_v15 = vsel %vm157_vm3, %v3262_v61, %v3263_v10 }
0x135c   :  { %v4424_v31 = vpack.i.bf16 %v3275_v48, %v3277_v6  ;;  %4440 = vrot.lane.b32.xlu2 %v4439_v29, %s4577_s5  ;;  %v4444_v53 = vpack.i.bf16 %v3174_v11, %v3266_v42  ;;  %v3279_v23 = vsel %vm1447_vm5, %v3276_v24, %v3278_v46  ;;  %v4434_v14 = vpack.i.bf16 %v3264_v15, %v3217_v57  ;;  %v3380_v11 = vld [vmem:[#allocation2] sm:$0x1] }
0x135e   :  { %v3109_v45 = vpop.permute.xlu1 %3108  ;;  %4425 = vrot.lane.b32.xlu1 %v4424_v31, %s4576_s0  ;;  %v3107_v50 = vpop.permute.xlu0 %3106  ;;  %4430 = vrot.lane.b32.xlu0 %v4429_v26, %s4577_s5 }
0x135f   :  { %v3116_v13 = vsel %vm142_vm0, 0.0, %v3109_v45  ;;  %v3115_v44 = vsel %vm142_vm0, 0.0, %v3107_v50  ;;  %vm3387_vm0 = vcmask 441344  }
0x1360   :  { %v6574_v47 = vsel %vm2868_vm8, %v3116_v13, 0.0  ;;  %v6577_v39 = vsel %vm2868_vm8, %v3115_v44, 0.0 }
0x1361   :  { %v3139_v9 = vrot.slane %v6574_v47, 4  ;;  %v3138_v55 = vrot.slane %v6577_v39, 4  ;;  %v3125_v0 = vrot.slane %v6574_v47, 6  ;;  %v3124_v54 = vrot.slane %v6577_v39, 6 }
0x1363   :  { %v3140_v8 = vsel %vm1447_vm5, %v3138_v55, %v3139_v9  ;;  %v3128_v62 = vsel %vm157_vm3, %v3125_v0, %v3127_v20  ;;  %v3142_v19 = vsel %vm1447_vm5, %v3139_v9, %v3141_v52  ;;  %v3126_v33 = vsel %vm157_vm3, %v3124_v54, %v3125_v0 }
0x1364   :  { %v4454_v18 = vpack.i.bf16 %v3138_v55, %v3140_v8  ;;  %4445 = vrot.lane.b32.xlu2 %v4444_v53, %s4577_s5  ;;  %v4449_v32 = vpack.i.bf16 %v3128_v62, %v3262_v61  ;;  %v4459_v63 = vpack.i.bf16 %v3124_v54, %v3126_v33 }
0x1366   :  { %3194 = vrot.lane.b32.xlu1 %v3189_v36, %s4576_s0  ;;  %4455 = vrot.lane.b32.xlu0 %v4454_v18, %s4576_s0 }
0x136c   :  { %4450 = vrot.lane.b32.xlu2 %v4449_v32, %s4577_s5 }
0x136e   :  { %3284 = vrot.lane.b32.xlu1 %v3279_v23, %s4576_s0  ;;  %3147 = vrot.lane.b32.xlu0 %v3142_v19, %s4576_s0  ;;  %s3439_s0 = sshll.u32 %s4782_s6, 4  ;;  %s3440_s0 = int_to_ptr.hbm [resolvable:$true] %s3439_s0 }
0x1374   :  { %4460 = vrot.lane.b32.xlu2 %v4459_v63, %s4577_s5 }
0x1376   :  { %4435 = vrot.lane.b32.xlu1 %v4434_v14, %s4577_s5  ;;  %s4529_s5 = sshra.s32 %s3440_s0, 4  ;;  %s4530_s5 = int_to_ptr.hbm [resolvable:$true] %s4529_s5 }
0x1377   :  { %s4531_s12 = scalar_lea.hbm %s4530_s5, 4  ;;  %p4534_p1 = scmp.lt.s32.totalorder %s4530_s5, %s4782_s6 }
0x1378   :  { %p4532_p0 = scmp.ne.s32.totalorder %s4530_s5, %s4531_s12  ;;  %p4535_p2 = scmp.lt.s32.totalorder %s4533_s27, %s4531_s12 }
0x137a   :  { %p4536_p3 = por %p4535_p2, %p4534_p1 }
0x137c   :  { %p4537_p4 = pnand %p4536_p3, %p4532_p0 }
0x13ae   :  { %v3240_v49 = vpop.permute.xlu2 %3239 }
0x13af   :  { %3326 = vrot.lane.b32.xlu2 %v3240_v49, %s4604_s3 }
0x13b6   :  { %v4441_v22 = vpop.permute.xlu2 %4440 }
0x13b7   :  { %v4443_v57 = vunpack.i.h.bf16 %v4441_v22  ;;  %v4442_v2 = vunpack.i.l.bf16 %v4441_v22 }
0x13be   :  { %v4446_v17 = vpop.permute.xlu2 %4445 }
0x13bf   :  { %v4448_v25 = vunpack.i.h.bf16 %v4446_v17  ;;  %v4447_v55 = vunpack.i.l.bf16 %v4446_v17 }
0x13c0   :  { %v4416_v56 = vpop.permute.xlu0 %4415 }
0x13c1   :  { %v4418_v1 = vunpack.i.h.bf16 %v4416_v56 }
0x13c6   :  { %v4451_v31 = vpop.permute.xlu2 %4450 }
0x13c7   :  { %v4452_v10 = vunpack.i.l.bf16 %v4451_v31  ;;  %v4453_v33 = vunpack.i.h.bf16 %v4451_v31 }
0x13c8   :  { %v4421_v59 = vpop.permute.xlu0 %4420 }
0x13c9   :  { %v4423_v4 = vunpack.i.h.bf16 %v4421_v59  ;;  %v4422_v35 = vunpack.i.l.bf16 %v4421_v59  ;;  %v3287_v3 = vsel %vm157_vm3, %v6551_v60, %v4452_v10 }
0x13cb   :  { %v3243_v27 = vsel %vm1447_vm5, %v4443_v57, %v4423_v4 }
0x13cc   :  { %v4484_v6 = vpack.i.bf16 %v3243_v27, %v4422_v35 }
0x13ce   :  { %v4461_v43 = vpop.permute.xlu2 %4460 }
0x13cf   :  { %v4463_v15 = vunpack.i.h.bf16 %v4461_v43  ;;  %v4462_v49 = vunpack.i.l.bf16 %v4461_v43 }
0x13d0   :  { %v4426_v5 = vpop.permute.xlu1 %4425  ;;  %v4431_v34 = vpop.permute.xlu0 %4430 }
0x13d1   :  { %v4432_v58 = vunpack.i.l.bf16 %v4431_v34  ;;  %v4433_v50 = vunpack.i.h.bf16 %v4431_v34  ;;  %v4428_v9 = vunpack.i.h.bf16 %v4426_v5  ;;  %v4427_v53 = vunpack.i.l.bf16 %v4426_v5 }
0x13d2   :  { %v3152_v27 = vsel %vm157_vm3, %v6583_v30, %v4463_v15 }
0x13d3   :  { %v3197_v24 = vsel %vm157_vm3, %v6536_v41, %v4432_v58  ;;  %v3288_v21 = vsel %vm1447_vm5, %v4447_v55, %v4428_v9 }
0x13d4   :  { %v4464_v48 = vpack.i.bf16 %v3197_v24, %v4448_v25  ;;  %v4494_v0 = vpack.i.bf16 %v3288_v21, %v4427_v53  ;;  %v3379_v21 = vld [vmem:[%s4774_s9] sm:$0x1]  ;;  %s4615_s9 = smov [#allocation3]  }
0x13d5   :  { %s3437_s28 = sshll.u32 %s4615_s9, 4  ;;  %s3438_s28 = int_to_ptr.vmem [resolvable:$true] %s3437_s28 }
0x13d6   :  { %4465 = vrot.lane.b32.xlu0 %v4464_v48, %s4607_s16 }
0x13d8   :  { %v3195_v29 = vpop.permute.xlu1 %3194  ;;  %v4456_v12 = vpop.permute.xlu0 %4455 }
0x13d9   :  { %v4458_v38 = vunpack.i.h.bf16 %v4456_v12 }
0x13de   :  { %4485 = vrot.lane.b32.xlu0 %v4484_v6, %s4604_s3 }
0x13e0   :  { %v3285_v37 = vpop.permute.xlu1 %3284 }
0x13e1   :  { %3349 = vrot.lane.b32.xlu2 %v3285_v37, %s4603_s29 }
0x13e6   :  { %4490 = vrot.lane.b32.xlu0 %v4489_v40, %s4607_s16  ;;  %v4417_v40 = vunpack.i.l.bf16 %v4416_v56  ;;  %v3153_v56 = vsel %vm1447_vm5, %v4453_v33, %v4458_v38 }
0x13e8   :  { %v4436_v41 = vpop.permute.xlu1 %4435 }
0x13e9   :  { %v4438_v26 = vunpack.i.h.bf16 %v4436_v41  ;;  %v4437_v45 = vunpack.i.l.bf16 %v4436_v41 }
0x13eb   :  { %v3242_v42 = vsel %vm157_vm3, %v6527_v16, %v4437_v45  ;;  %v4474_v13 = vpack.i.bf16 %v3287_v3, %v4438_v26  ;;  %v3198_v16 = vsel %vm1447_vm5, %v4442_v2, %v4418_v1 }
0x13ec   :  { %v4469_v44 = vpack.i.bf16 %v3242_v42, %v4433_v50  ;;  %v4479_v60 = vpack.i.bf16 %v3198_v16, %v4417_v40 }
0x13ed   :  { %4475 = vrot.lane.b32.xlu2 %v4474_v13, %s4603_s29 }
0x13ee   :  { %4470 = vrot.lane.b32.xlu1 %v4469_v44, %s4604_s3  ;;  %3383 = vperm.xlu0 %3601, %v3380_v11  }
0x13f5   :  { %4505 = vrot.lane.b32.xlu2 %v4504_v51, %s4603_s29  ;;  %v3148_v51 = vpop.permute.xlu0 %3147 }
0x13f6   :  { %3303 = vrot.lane.b32.xlu1 %v3195_v29, %s4607_s16 }
0x13fe   :  { %4480 = vrot.lane.b32.xlu1 %v4479_v60, %s4607_s16 }
0x1406   :  { %4495 = vrot.lane.b32.xlu1 %v4494_v0, %s4603_s29 }
0x1409   :  { %v3327_v18 = vpop.permute.xlu2 %3326 }
0x140e   :  { %4500 = vrot.lane.b32.xlu1 %v4499_v28, %s4604_s3  ;;  %v4457_v28 = vunpack.i.l.bf16 %v4456_v12 }
0x143b   :  { %v3350_v61 = vpop.permute.xlu2 %3349 }
0x1447   :  { %v4476_v23 = vpop.permute.xlu2 %4475 }
0x1448   :  { %v4466_v20 = vpop.permute.xlu0 %4465  ;;  %v4477_v31 = vunpack.i.l.bf16 %v4476_v23  ;;  %v4478_v3 = vunpack.i.h.bf16 %v4476_v23 }
0x1449   :  { %v4467_v63 = vunpack.i.l.bf16 %v4466_v20  ;;  %v4468_v5 = vunpack.i.h.bf16 %v4466_v20 }
0x144b   :  { %v3361_v35 = vsel %vm665_vm12, %v4462_v49, %v4467_v63  ;;  %v3360_v41 = vsel %vm665_vm12, %v3152_v27, %v4468_v5 }
0x144f   :  { %v4506_v42 = vpop.permute.xlu2 %4505 }
0x1450   :  { %v4486_v52 = vpop.permute.xlu0 %4485  ;;  %v4507_v2 = vunpack.i.l.bf16 %v4506_v42  ;;  %v4508_v55 = vunpack.i.h.bf16 %v4506_v42 }
0x1451   :  { %v4487_v22 = vunpack.i.l.bf16 %v4486_v52  ;;  %v4488_v24 = vunpack.i.h.bf16 %v4486_v52 }
0x1458   :  { %v4491_v57 = vpop.permute.xlu0 %4490 }
0x1459   :  { %v4493_v26 = vunpack.i.h.bf16 %v4491_v57  ;;  %v4492_v45 = vunpack.i.l.bf16 %v4491_v57 }
0x145b   :  { %v3359_v40 = vsel %vm665_vm12, %v6574_v47, %v4492_v45  ;;  %v3358_v16 = vsel %vm665_vm12, %v6577_v39, %v4493_v26 }
0x1460   :  { %v4471_v8 = vpop.permute.xlu1 %4470  ;;  %v3384_v12 = vpop.permute.xlu0 %3383 }
0x1461   :  { %v4472_v59 = vunpack.i.l.bf16 %v4471_v8  ;;  %v4473_v48 = vunpack.i.h.bf16 %v4471_v8  ;;  %v3386_v47 = vperm.slane %v3384_v12, 0 }
0x1463   :  { %v3368_v37 = vsel %vm891_vm6, %v3361_v35, %v4472_v59  ;;  %v3367_v50 = vsel %vm891_vm6, %v3360_v41, %v4473_v48 }
0x1464   :  { %v3375_v30 = vsel %vm516_vm11, %v3368_v37, %v4477_v31  ;;  %v3374_v1 = vsel %vm516_vm11, %v3367_v50, %v4478_v3 }
0x1468   :  { %v3304_v36 = vpop.permute.xlu1 %3303 }
0x1469   :  { %v3364_v62 = vsel %vm665_vm12, %v3148_v51, %v3304_v36 }
0x146a   :  { %v3371_v46 = vsel %vm891_vm6, %v3364_v62, %v3327_v18 }
0x146b   :  { %v3378_v32 = vsel %vm516_vm11, %v3371_v46, %v3350_v61 }
0x146c   :  { %3526 = vmatpush.msk.msrb.mxu0 %vm1847_vm1, %v3378_v32 }
0x1470   :  { %v4481_v54 = vpop.permute.xlu1 %4480 }
0x1471   :  { %v4482_v7 = vunpack.i.l.bf16 %v4481_v54  ;;  %v4483_v19 = vunpack.i.h.bf16 %v4481_v54 }
0x1473   :  { %v3363_v14 = vsel %vm665_vm12, %v4457_v28, %v4482_v7  ;;  %v3362_v25 = vsel %vm665_vm12, %v3153_v56, %v4483_v19 }
0x1474   :  { %v3370_v4 = vsel %vm891_vm6, %v3363_v14, %v4487_v22  ;;  %v3369_v6 = vsel %vm891_vm6, %v3362_v25, %v4488_v24 }
0x1478   :  { %v4496_v17 = vpop.permute.xlu1 %4495 }
0x1479   :  { %v4498_v34 = vunpack.i.h.bf16 %v4496_v17  ;;  %v4497_v58 = vunpack.i.l.bf16 %v4496_v17 }
0x147b   :  { %v3377_v29 = vsel %vm516_vm11, %v3370_v4, %v4497_v58  ;;  %v3376_v10 = vsel %vm516_vm11, %v3369_v6, %v4498_v34 }
0x147c   :  { %3404 = vmatpush.msrb.mxu0 %v3377_v29 }
0x147e   :  { %3405 = vmatpush.msrb.mxu0 %v3376_v10 }
0x1480   :  { %v4501_v13 = vpop.permute.xlu1 %4500  ;;  %3406 = vmatpush.msrb.mxu0 %v3375_v30 }
0x1481   :  { %v4503_v44 = vunpack.i.h.bf16 %v4501_v13  ;;  %v4502_v11 = vunpack.i.l.bf16 %v4501_v13 }
0x1482   :  { %3407 = vmatpush.msrb.mxu0 %v3374_v1 }
0x1483   :  { %v3366_v60 = vsel %vm891_vm6, %v3359_v40, %v4502_v11  ;;  %v3365_v9 = vsel %vm891_vm6, %v3358_v16, %v4503_v44 }
0x1484   :  { %v3373_v53 = vsel %vm516_vm11, %v3366_v60, %v4507_v2  ;;  %v3372_v0 = vsel %vm516_vm11, %v3365_v9, %v4508_v55  ;;  %vm3430_vm11 = vcmask 125952  }
0x1485   :  { %3408 = vmatpush.msrb.mxu0 %v3373_v53 }
0x1487   :  { %3409 = vmatpush.msrb.mxu0 %v3372_v0 }
0x1488   :  { %3527 = vmatmul.msk.f32.vlgmr.msrb.gmra.mxu0 %vm3387_vm0, %v3379_v21 }
0x1505   :  { %v3411_v43 = vpop.f32.mrf.mxu0 }
0x1506   :  { %v3412_v51 = vadd.f32 %v3411_v43, %v3386_v47 }
0x1508   :  { %v3423_v39 = vrot.slane %v3412_v51, 5  ;;  %v3419_v8 = vrot.slane %v3412_v51, 6  ;;  %v3415_v18 = vrot.slane %v3412_v51, 7 }
0x150a   :  { %3424 = vrot.lane.b32.xlu0 %v3423_v39, %s4605_s11  ;;  %3420 = vrot.lane.b32.xlu2 %v3419_v8, %s4601_s25 }
0x150b   :  { %3416 = vrot.lane.b32.xlu1 %v3415_v18, %s4602_s10 }
0x1564   :  { %v3421_v36 = vpop.permute.xlu2 %3420 }
0x157c   :  { %v3425_v61 = vpop.permute.xlu0 %3424 }
0x157d   :  { %v3417_v20 = vpop.permute.xlu1 %3416 }
0x157e   :  { %v3427_v62 = vsel %vm155_vm2, %v3412_v51, %v3417_v20 }
0x157f   :  { %v3428_v46 = vsel %vm157_vm3, %v3427_v62, %v3421_v36 }
0x1580   :  { %v3429_v32 = vsel %vm249_vm4, %v3428_v46, %v3425_v61 }
0x1581   :  { %3431 = vst.msk [vmem:[#allocation3] sm:$0xf] %vm3430_vm11, %v3429_v32 }
0x1582   :  { %4540 = shalt.err (!%p4537_p4)
}
0x1583   :  { %3442 = dma.vmem_to_hbm [thread:$0]  %s3438_s28, 64, %s3440_s0, [#allocation4]  }
0x1584   :  { %4541 = dma.done.wait [#allocation4], 64  }
0x1585   :  { %4542 = vsyncadd [#allocation4], 4294967232 }
0x1586   :  { %3447 = vsyncpa [#allocation4], 1 }

</bundles_post_ra>
